<compile_context>
chip_gen: v7x
topology: tpu7x:2x2x1
jax: 0.10.0
libtpu: 0.0.40
codegen_flags: <defaults>
</compile_context>

<pallas_src>
import jax
import jax.numpy as jnp
from jax.experimental import pallas as pl
from jax.experimental.pallas import tpu as pltpu


# ----------------------------------------------------------------------------
# Pallas kernel
# ----------------------------------------------------------------------------
def _semantic_attention_kernel(z_ref, w1_ref, b1_ref, w2_ref, o_ref):
    """z_ref: (M, tm, D) block; w1: (D, Hs); b1: (1, Hs); w2: (1, Hs) row of the
    second Linear's weight (so h @ W2.T == sum(h * w2, -1)).  o_ref: (tm, D)."""
    M, tm, D = z_ref.shape
    Hs = w1_ref.shape[1]

    z = z_ref[...]                                            # (M, tm, D) f32

    # One MXU pass for every meta-path at once: (M*tm, D) @ (D, Hs).
    h = jnp.dot(z.reshape(M * tm, D), w1_ref[...],
                preferred_element_type=jnp.float32)
    h = jnp.tanh(h + b1_ref[...])                             # (M*tm, Hs)

    # Second projection (Linear(Hs, 1, bias=False)) as a VPU/XLU reduce against
    # the (1, Hs) weight row -- avoids a 1-column (1/128-lane) matmul.
    h = h.reshape(M, tm, Hs)
    s = jnp.sum(h * w2_ref[...], axis=-1, keepdims=True)      # (M, tm, 1) logits

    # Softmax over the meta-path axis (torch dim=1), numerically stabilized.
    s = s - jnp.max(s, axis=0, keepdims=True)
    e = jnp.exp(s)
    denom = jnp.sum(e, axis=0, keepdims=True)                 # (1, tm, 1)
    beta = e * pl.reciprocal(denom, approx=True)              # (M, tm, 1)

    # Weighted sum over meta-paths -> lane-dense (tm, D) store.
    o_ref[...] = jnp.sum(beta * z, axis=0).astype(o_ref.dtype)


# ----------------------------------------------------------------------------
# Wrapper
# ----------------------------------------------------------------------------
def semantic_attention(z, params, *, tm=256):
    """z: (N, M, D) exactly like the torch module (nodes, meta-paths, features).
    Returns (N, D).  params: W1 (D, Hs), b1 (1, Hs), W2_row (1, Hs)."""
    N, M, D = z.shape
    Hs = params["W1"].shape[1]

    # Meta-path-major layout so each kernel block is a dense (tm, D) slab per
    # path and D sits on the 128-lane axis.
    zt = jnp.transpose(z, (1, 0, 2))                          # (M, N, D)

    tm = min(tm, N)
    grid = (pl.cdiv(N, tm),)

    return pl.pallas_call(
        _semantic_attention_kernel,
        out_shape=jax.ShapeDtypeStruct((N, D), jnp.float32),
        grid=grid,
        in_specs=[
            pl.BlockSpec((M, tm, D), lambda i: (0, i, 0)),    # tiled over nodes
            pl.BlockSpec((D, Hs), lambda i: (0, 0)),          # weights resident
            pl.BlockSpec((1, Hs), lambda i: (0, 0)),
            pl.BlockSpec((1, Hs), lambda i: (0, 0)),
        ],
        out_specs=pl.BlockSpec((tm, D), lambda i: (i, 0)),
        compiler_params=pltpu.CompilerParams(
            dimension_semantics=("parallel",)),               # megacore-shardable
    )(zt, params["W1"], params["b1"], params["W2_row"])


def init_semantic_attention_params(key, in_size, hidden_size=128):
    k1, kb, k2 = jax.random.split(key, 3)
    return dict(
        W1=0.1 * jax.random.normal(k1, (in_size, hidden_size), jnp.float32),
        b1=0.1 * jax.random.normal(kb, (1, hidden_size), jnp.float32),
        # torch Linear(hidden, 1, bias=False).weight has shape (1, hidden);
        # forward is h @ weight.T == sum(h * weight_row, -1).
        W2_row=0.1 * jax.random.normal(k2, (1, hidden_size), jnp.float32),
    )


# ----------------------------------------------------------------------------
# Demo + pure-JAX reference check
# ----------------------------------------------------------------------------
if __name__ == "__main__":
    key = jax.random.PRNGKey(0)
    N, M, D, Hs = 512, 4, 128, 128                            # nodes, meta-paths, feat, proj

    kz, kp = jax.random.split(key)
    z = jax.random.normal(kz, (N, M, D), jnp.float32)
    params = init_semantic_attention_params(kp, D, Hs)

    out = semantic_attention(z, params, tm=256)
    out = jax.block_until_ready(out)

    # Pure-JAX reference mirroring the torch forward exactly.
    def ref(z, p):
        w = jnp.tanh(z @ p["W1"] + p["b1"][0]) @ p["W2_row"][0]   # (N, M)
        beta = jax.nn.softmax(w, axis=1)[..., None]               # (N, M, 1)
        return jnp.sum(beta * z, axis=1)                          # (N, D)

    expected = ref(z, params)
    assert out.shape == (N, D)
    assert bool(jnp.all(jnp.isfinite(out)))
    # Loose tolerance only because of pl.reciprocal(approx=True).
    assert bool(jnp.allclose(out, expected, rtol=1e-2, atol=1e-2)), float(
        jnp.max(jnp.abs(out - expected)))
    print("KERNEL_OK")
</pallas_src>

<mosaic_0001>
module attributes {stable_mosaic.version = 11 : i64} {
  func.func @_semantic_attention_kernel(%arg0: i32, %arg1: memref<4x256x128xf32, #tpu.memory_space<vmem>>, %arg2: memref<128x128xf32, #tpu.memory_space<vmem>>, %arg3: memref<1x128xf32, #tpu.memory_space<vmem>>, %arg4: memref<1x128xf32, #tpu.memory_space<vmem>>, %arg5: memref<256x128xf32, #tpu.memory_space<vmem>>) attributes {dimension_semantics = [#tpu.dimension_semantics<parallel>], iteration_bounds = array<i64: 2>, scalar_prefetch = 0 : i64, scratch_operands = 0 : i64, tpu.core_type = #tpu.core_type<tc>, window_params = [{transform_indices = @transform_0, window_bounds = array<i64: 4, 256, 128>}, {pipeline_mode = #tpu.pipeline_mode<synchronous>, transform_indices = @transform_1, window_bounds = array<i64: 128, 128>}, {pipeline_mode = #tpu.pipeline_mode<synchronous>, transform_indices = @transform_2, window_bounds = array<i64: 1, 128>}, {pipeline_mode = #tpu.pipeline_mode<synchronous>, transform_indices = @transform_3, window_bounds = array<i64: 1, 128>}, {transform_indices = @transform_4, window_bounds = array<i64: 256, 128>}]} {
    %c0 = arith.constant 0 : index
    %c0_0 = arith.constant 0 : index
    %c0_1 = arith.constant 0 : index
    %0 = vector.load %arg1[%c0, %c0_0, %c0_1] : memref<4x256x128xf32, #tpu.memory_space<vmem>>, vector<4x256x128xf32>
    %1 = vector.shape_cast %0 : vector<4x256x128xf32> to vector<1024x128xf32>
    %c0_2 = arith.constant 0 : index
    %c0_3 = arith.constant 0 : index
    %2 = vector.load %arg2[%c0_2, %c0_3] : memref<128x128xf32, #tpu.memory_space<vmem>>, vector<128x128xf32>
    %cst = arith.constant dense<0.000000e+00> : vector<1024x128xf32>
    %3 = tpu.matmul %1, %2, %cst {dimension_numbers = #tpu.dot_dimension_numbers<[1], [0], [0], [1], [0, 0, 1, 1], [], []>} : vector<1024x128xf32>, vector<128x128xf32>, vector<1024x128xf32> -> vector<1024x128xf32>
    %c0_4 = arith.constant 0 : index
    %c0_5 = arith.constant 0 : index
    %4 = vector.load %arg3[%c0_4, %c0_5] : memref<1x128xf32, #tpu.memory_space<vmem>>, vector<1x128xf32>
    %5 = vector.broadcast %4 : vector<1x128xf32> to vector<1024x128xf32>
    %6 = arith.addf %3, %5 : vector<1024x128xf32>
    %7 = math.tanh %6 : vector<1024x128xf32>
    %8 = vector.shape_cast %7 : vector<1024x128xf32> to vector<4x256x128xf32>
    %c0_6 = arith.constant 0 : index
    %c0_7 = arith.constant 0 : index
    %9 = vector.load %arg4[%c0_6, %c0_7] : memref<1x128xf32, #tpu.memory_space<vmem>>, vector<1x128xf32>
    %10 = vector.shape_cast %9 : vector<1x128xf32> to vector<1x1x128xf32>
    %11 = vector.broadcast %10 : vector<1x1x128xf32> to vector<4x256x128xf32>
    %12 = arith.mulf %8, %11 : vector<4x256x128xf32>
    %cst_8 = arith.constant dense<0.000000e+00> : vector<4x256xf32>
    %13 = vector.multi_reduction <add>, %12, %cst_8 [2] : vector<4x256x128xf32> to vector<4x256xf32>
    %14 = vector.shape_cast %13 : vector<4x256xf32> to vector<4x256x1xf32>
    %cst_9 = arith.constant dense<0xFF800000> : vector<256x1xf32>
    %15 = vector.multi_reduction <maximumf>, %14, %cst_9 [0] : vector<4x256x1xf32> to vector<256x1xf32>
    %16 = vector.shape_cast %15 : vector<256x1xf32> to vector<1x256x1xf32>
    %17 = vector.broadcast %16 : vector<1x256x1xf32> to vector<4x256x1xf32>
    %18 = arith.subf %14, %17 : vector<4x256x1xf32>
    %19 = math.exp %18 : vector<4x256x1xf32>
    %cst_10 = arith.constant dense<0.000000e+00> : vector<256x1xf32>
    %20 = vector.multi_reduction <add>, %19, %cst_10 [0] : vector<4x256x1xf32> to vector<256x1xf32>
    %21 = vector.shape_cast %20 : vector<256x1xf32> to vector<1x256x1xf32>
    %22 = tpu.reciprocal %21 {approx = true} : vector<1x256x1xf32> -> vector<1x256x1xf32>
    %23 = vector.broadcast %22 : vector<1x256x1xf32> to vector<4x256x1xf32>
    %24 = arith.mulf %19, %23 : vector<4x256x1xf32>
    %25 = vector.broadcast %24 : vector<4x256x1xf32> to vector<4x256x128xf32>
    %26 = arith.mulf %25, %0 : vector<4x256x128xf32>
    %cst_11 = arith.constant dense<0.000000e+00> : vector<256x128xf32>
    %27 = vector.multi_reduction <add>, %26, %cst_11 [0] : vector<4x256x128xf32> to vector<256x128xf32>
    %c0_12 = arith.constant 0 : index
    %c0_13 = arith.constant 0 : index
    %28 = vector.load %arg5[%c0_12, %c0_13] : memref<256x128xf32, #tpu.memory_space<vmem>>, vector<256x128xf32>
    tpu.vector_store %arg5[%c0_12, %c0_13], %27 {strides = array<i32>} : memref<256x128xf32, #tpu.memory_space<vmem>>, vector<256x128xf32>,
    return
  }
  func.func @transform_0(%arg0: i32) -> (i32, i32, i32) {
    %c0_i32 = arith.constant 0 : i32
    %c0_i32_0 = arith.constant 0 : i32
    %c0_i32_1 = arith.constant 0 : i32
    return %c0_i32, %arg0, %c0_i32_0 : i32, i32, i32
  }
  func.func @transform_1(%arg0: i32) -> (i32, i32) {
    %c0_i32 = arith.constant 0 : i32
    %c0_i32_0 = arith.constant 0 : i32
    %c0_i32_1 = arith.constant 0 : i32
    return %c0_i32, %c0_i32_0 : i32, i32
  }
  func.func @transform_2(%arg0: i32) -> (i32, i32) {
    %c0_i32 = arith.constant 0 : i32
    %c0_i32_0 = arith.constant 0 : i32
    %c0_i32_1 = arith.constant 0 : i32
    return %c0_i32, %c0_i32_0 : i32, i32
  }
  func.func @transform_3(%arg0: i32) -> (i32, i32) {
    %c0_i32 = arith.constant 0 : i32
    %c0_i32_0 = arith.constant 0 : i32
    %c0_i32_1 = arith.constant 0 : i32
    return %c0_i32, %c0_i32_0 : i32, i32
  }
  func.func @transform_4(%arg0: i32) -> (i32, i32) {
    %c0_i32 = arith.constant 0 : i32
    %c0_i32_0 = arith.constant 0 : i32
    return %arg0, %c0_i32 : i32, i32
  }
}

</mosaic_0001>

<bundles_post_ra>
// kernel: tpu_custom_call.1
= control target key start
LH: loop header
LB: loop body
LE: loop exit
PB: predicated region body
PF: predicated region fallthrough
CT: control target
= control target key end

     0   :  { %9 = vsyncpa [#allocation3], 0  ;;  %s6159_s0 = inlined_call_operand.hbm [shape: f32[4,512,128], index: 0, kind: input, shape index: {}]   ;;  %s6160_s1 = inlined_call_operand.hbm [shape: f32[128,128], index: 1, kind: input, shape index: {}]   ;;  %s6161_s2 = inlined_call_operand.vmem [shape: f32[1,128], index: 2, kind: input, shape index: {}]   ;;  %s6162_s3 = inlined_call_operand.vmem [shape: f32[1,128], index: 3, kind: input, shape index: {}]   ;;  %s6163_s4 = inlined_call_operand.hbm [shape: f32[512,128], index: 4, kind: output, shape index: {}]  }
   0x1   :  { %11 = vsyncpa [#allocation3 + $0x1], 0 }
   0x2   :  { %12 = vsyncpa [#allocation6], 0 }
   0x3   :  { %13 = vsyncpa [#allocation4], 0 }
   0x4   :  { %15 = vsyncpa [#allocation4 + $0x1], 0  ;;  %s4072_s15 = smov 0   ;;  %s4074_s16 = smov 0  }
   0x5   :  { %s4076_s17 = smov 0   ;;  %s4078_s18 = smov 0  }
   0x6 LB: > { %s4093_s19 = sadd.s32 4294967295, %s4033_s18   ;;  %s2722_s20 = sadd.s32 4294967294, %s4033_s18   ;;  %s4033_s18 = sphi %s4078_s18, %s6305_s18   ;;  %s4029_s17 = sphi %s4076_s17, %s6304_s17   ;;  %s4025_s16 = sphi %s4074_s16, %s6303_s16   ;;  %s4021_s15 = sphi %s4072_s15, %s6302_s15  }
   0x7   : > { %s4097_s21 = sadd.s32 1, %s4033_s18   ;;  %s28_s22 = sadd.s32 1, %s4029_s17 }
   0x8   : > { %s25_s23 = ssub.s32 %s4033_s18, %s4097_s21  ;;  %p35_p0 = scmp.ne.s32.totalorder %s4029_s17, %s4025_s16 }
   0x9   : > { %p26_p1 = scmp.eq.s32.totalorder %s25_s23, 0  ;;  %p36_p2 = scmp.eq.s32.totalorder %s4033_s18, 0 }
   0xa   : > { %p41_p3 = scmp.ne.s32.totalorder %s4025_s16, %s4021_s15  ;;  %p6164_p4 = scmp.eq.s32.totalorder %s4093_s19, 0 }
   0xb   : > { %s4109_s24 = scalar_select %p26_p1, %s4029_s17, %s28_s22  }
   0xc   : > { %p4111_p5 = por %p36_p2, %p35_p0  ;;  %p4117_p6 = por %p6164_p4, %p41_p3 }
   0xd   : > { %p128_p7 = scmp.eq.s32.totalorder %s4093_s19, 1  ;;  %p134_p8 = scmp.eq.s32.totalorder %s2722_s20, 1 }
   0xe   : > { %s6200_s25 = scalar_select %p4111_p5, 1, 0 }
   0xf   : > { %s6201_s26 = scalar_select %p4117_p6, 1, 0 }
  0x10   : > { %p2723_p9 = scmp.ge.s32.totalorder %s4033_s18, 1  ;;  %p141_p10 = scmp.lt.s32.totalorder %s4033_s18, 3 }
  0x11   : > { %p4124_p11 = por %p128_p7, %p35_p0  ;;  %p4128_p12 = por %p134_p8, %p41_p3 }
  0x12   : > { %p4132_p13 = pnand %p2723_p9, %p141_p10  ;;  %s4035_s30 = smov [#allocation5]  }
  0x13   : > { %s6202_s27 = scalar_select %p4124_p11, 1, 0 }
  0x14   : > { %s6203_s28 = scalar_select %p4128_p12, 1, 0 }
  0x15   : > { %s6204_s29 = scalar_select %p4132_p13, 1, 0 }
  0x16   : > { %p3175_p1 = pneg %p4132_p13  ;;  %s153_s5 = sshll.u32 %s4035_s30, 4  ;;  %s154_s5 = int_to_ptr.vmem [resolvable:$true] %s153_s5 }
  0x17   : > { %s3935_s9 = scalar_lea.hbm %s6160_s1, 2048 }
  0x18   : > { %p4140_p2 = pnand %p3175_p1, %p6164_p4  ;;  %p3936_p0 = scmp.ne.s32.totalorder %s6160_s1, %s3935_s9 }
  0x19   : > { %p3942_p9 = scmp.lt.u32.totalorder %s3935_s9, %s6160_s1 }
  0x1a   : > { %p3937_p3 = pneg %p4140_p2 }
  0x1c   : > { %p3938_p7 = pnand %p3937_p3, %p3936_p0 }
  0x1e   : > { %p3939_p8 = pneg %p3938_p7 }
  0x20   : > { %p3944_p10 = pnand %p3942_p9, %p3939_p8 }
  0x22   : > { %3947 = shalt.err (!%p3944_p10)
}
  0x23   : > { %s3948_s14 = scalar_lea.vmem %s154_s5, 2048  ;;  %p3956_p11 = scmp.lt.s32.totalorder %s154_s5, %s154_s5 }
  0x24   : > { %p3949_p1 = scmp.ne.s32.totalorder %s154_s5, %s3948_s14  ;;  %p3957_p6 = scmp.lt.s32.totalorder %s3948_s14, %s3948_s14 }
  0x26   : > { %p3951_p4 = pnand %p3949_p1, %p3937_p3  ;;  %p3958_p13 = por %p3957_p6, %p3956_p11 }
  0x28   : > { %p3952_p12 = pneg %p3951_p4 }
  0x2a   : > { %p3959_p5 = pnand %p3958_p13, %p3952_p12 }
  0x2c   : > { %3962 = shalt.err (!%p3959_p5)
}
  0x2d   : > { %s4036_s20 = smov 128   ;;  %s4037_s22 = smov 8  }
  0x2e   : > { %3178 = dma.hbm_to_vmem [thread:$0]  (!%p4140_p2), %s6160_s1, 2048, %s154_s5, [#allocation6], %s4036_s20, %s4036_s20, %s4037_s22  }
  0x2f   : > { %p2725_p0 = scmp.ge.s32.totalorder %s4033_s18, 2 }
  0x31   : > { %169 = sbr.rel (%p2725_p0) target bundleno = 71 (0x47), region = 28 }
  0x38   : > { %s173_s7 = sand.u32 1, %s4029_s17   ;;  %s2742_s8 = sshll.u32 %s4033_s18, 12 }
  0x39   : > { %s2726_s6 = sshll.u32 %s173_s7, 10  ;;  %s183_s5 = scalar_lea.hbm %s6159_s0, %s2742_s8 }
  0x3a   : > { %p6206_p4 = scmp.ne.s32.totalorder %s6200_s25, 0  ;;  %s177_s12 = scalar_lea.vmem [#allocation2], %s2726_s6 }
  0x3b   : > { %s196_s13 = sshll.u32 %s177_s12, 4  ;;  %s4038_s20 = smov 8192   ;;  %s197_s13 = int_to_ptr.vmem [resolvable:$true] %s196_s13 }
  0x3c   : > { %s3162_s11 = scalar_select %p6206_p4, [#allocation0], [#allocation10] }
  0x3d   : > { %3163 = sst [smem:[#allocation9]] (%p6206_p4), %s4038_s20  ;;  %s4039_s22 = smov 4096  }
  0x3e   : > { %s188_s14 = sld [smem:[%s3162_s11]]   ;;  %s4040_s23 = smov 32  }
  0x3f   : > { %3164 = sst [smem:[#allocation9 + $0x1]] (%p6206_p4), %s4039_s22  ;;  %s4041_s30 = smov 128  }
  0x40   : > { %3165 = sst [smem:[#allocation9 + $0x2]] (%p6206_p4), %s4040_s23  ;;  %s4042_s6 = smov 8  }
  0x41   : > { %3166 = sst [smem:[#allocation9 + $0x3]] (%p6206_p4), %s4041_s30  ;;  %s174_s10 = scalar_lea.sflag [#allocation3], %s173_s7 }
  0x42   : > { %3167 = sst [smem:[#allocation9 + $0x4]] (%p6206_p4), %s4041_s30  ;;  %s4043_s11 = smov [#allocation8]  }
  0x43   : > { %3168 = sst [smem:[#allocation9 + $0x5]] (%p6206_p4), %s4042_s6 }
  0x44   : > { %s2729_s8 = sshll.u32 %s188_s14, 26 }
  0x45   : > { %s2730_s9 = sadd.s32 134217728, %s2729_s8 }
  0x46   : > { %3169 = dma.general (%p6206_p4), %s183_s5, 16384, %s197_s13, %s174_s10, %s4043_s11, [#allocation9], %s2730_s9, 0  }
  0x47 PF: > { %p6207_p5 = scmp.ne.s32.totalorder %s6204_s29, 0 }
  0x49   : > { %221 = sbr.rel (%p6207_p5) target bundleno = 907 (0x38b), region = 36 }
  0x50   : > { %s4187_s12 = sand.u32 1, %s4025_s16   ;;  %p6208_p6 = scmp.ne.s32.totalorder %s6201_s26, 0 }
  0x51   : > { %s2732_s20 = sshll.u32 %s4187_s12, 10  ;;  %s224_s14 = scalar_lea.sflag [#allocation3], %s4187_s12 }
  0x52   : > { %s4191_s22 = scalar_lea.vmem [#allocation2], %s2732_s20 }
  0x53   : > { %4008 = dma.done.wait (%p6208_p6), %s224_s14, 16384  }
  0x54   : > { %4010 = vsyncadd (%p6208_p6), %s224_s14, 4294950912  ;;  %p6209_p11 = scmp.eq.s32.totalorder %s4093_s19, 0 }
  0x56   : > { %4012 = dma.done.wait (%p6209_p11), [#allocation6], 2048   ;;  %p6210_p12 = pmov %p6209_p11 }
  0x57   : > { %v386_v0 = vld [vmem:[#allocation5] sm:$0xff]  ;;  %v387_v1 = vld [vmem:[#allocation5 + $0x8] sm:$0xff]  ;;  %v388_v2 = vld [vmem:[#allocation5 + $0x10] sm:$0xff]  ;;  %s2734_s8 = sshll.u32 %s4187_s12, 8  ;;  %s2743_s9 = sshll.u32 %s4093_s19, 12 }
  0x58   : > { %4014 = vsyncadd (%p6210_p12), [#allocation6], 4294965248  ;;  %v3112_v3 = vpack.c.bf16 %v387_v1, %v386_v0  ;;  %v389_v4 = vld [vmem:[#allocation5 + $0x18] sm:$0xff]  ;;  %v390_v6 = vld [vmem:[#allocation5 + $0x20] sm:$0xff]  ;;  %s5222_s6 = scalar_lea.vmem [#allocation7], %s2734_s8  ;;  %s6112_s14 = scalar_lea.hbm %s6163_s4, %s2743_s9 }
  0x59   : > { %v3116_v5 = vpack.c.bf16 %v389_v4, %v388_v2  ;;  %v391_v7 = vld [vmem:[#allocation5 + $0x28] sm:$0xff]  ;;  %v258_v9 = vld [vmem:[%s4191_s22] sm:$0xff]  ;;  %v392_v11 = vld [vmem:[#allocation5 + $0x30] sm:$0xff]  ;;  %s2639_s10 = sshll.u32 %s5222_s6, 4  ;;  %s2626_s25 = scalar_lea.sflag [#allocation4], %s4187_s12  ;;  %s6114_s10 = int_to_ptr.vmem [resolvable:$true] %s2639_s10 }
  0x5a   : > { %3113 = vmatprep.subr.bf16.mxu0 %v3112_v3  ;;  %3144 = vmatprep.subr.bf16.mxu1 %v3112_v3  ;;  %v3120_v8 = vpack.c.bf16 %v391_v7, %v390_v6  ;;  %v322_v10 = vld [vmem:[%s4191_s22 + $0x200] sm:$0xff]  ;;  %v393_v12 = vld [vmem:[#allocation5 + $0x38] sm:$0xff]  ;;  %v395_v15 = vld [vmem:[#allocation5 + $0x48] sm:$0xff]  ;;  %s3963_s26 = scalar_lea.vmem %s6114_s10, 4096  ;;  %p6300_p2 = scmp.ne.s32.totalorder %s6202_s27, 0 }
  0x5b   : > { %3115 = vmatpush3.bf16.msra.mxu0 %v3112_v3  ;;  %3152 = vmatpush3.bf16.msra.mxu1 %v3112_v3  ;;  %v3124_v13 = vpack.c.bf16 %v393_v12, %v392_v11  ;;  %v394_v14 = vld [vmem:[#allocation5 + $0x40] sm:$0xff]  ;;  %v396_v17 = vld [vmem:[#allocation5 + $0x50] sm:$0xff]  ;;  %v397_v18 = vld [vmem:[#allocation5 + $0x58] sm:$0xff]  ;;  %p3964_p13 = scmp.ne.s32.totalorder %s6114_s10, %s3963_s26  ;;  %s4044_s19 = smov [#allocation7]  }
  0x5c   : > { %3117 = vmatprep.subr.bf16.mxu0 %v3116_v5  ;;  %3145 = vmatprep.subr.bf16.mxu1 %v3116_v5  ;;  %v3128_v16 = vpack.c.bf16 %v395_v15, %v394_v14  ;;  %v3132_v19 = vpack.c.bf16 %v397_v18, %v396_v17  ;;  %v398_v20 = vld [vmem:[#allocation5 + $0x60] sm:$0xff]  ;;  %v399_v21 = vld [vmem:[#allocation5 + $0x68] sm:$0xff]  ;;  %v400_v23 = vld [vmem:[#allocation5 + $0x70] sm:$0xff] }
  0x5d   : > { %2920 = vmatprep.mubr.f32.mxu0 %v258_v9  ;;  %3016 = vmatprep.mubr.f32.mxu1 %v322_v10  ;;  %v3136_v22 = vpack.c.bf16 %v399_v21, %v398_v20  ;;  %v401_v24 = vld [vmem:[#allocation5 + $0x78] sm:$0xff]  ;;  %v259_v26 = vld [vmem:[%s4191_s22 + $0x8] sm:$0xff]  ;;  %v260_v28 = vld [vmem:[%s4191_s22 + $0x10] sm:$0xff]  ;;  %p3965_p3 = pnand %p3964_p13, %p6300_p2 }
  0x5e   : > { %v3140_v25 = vpack.c.bf16 %v401_v24, %v400_v23  ;;  %v323_v27 = vld [vmem:[%s4191_s22 + $0x208] sm:$0xff]  ;;  %v324_v29 = vld [vmem:[%s4191_s22 + $0x210] sm:$0xff]  ;;  %v261_v30 = vld [vmem:[%s4191_s22 + $0x18] sm:$0xff] }
  0x5f   : > { %3119 = vmatpush3.bf16.msra.mxu0 %v3116_v5  ;;  %3153 = vmatpush3.bf16.msra.mxu1 %v3116_v5  ;;  %v325_v31 = vld [vmem:[%s4191_s22 + $0x218] sm:$0xff]  ;;  %v262_v32 = vld [vmem:[%s4191_s22 + $0x20] sm:$0xff]  ;;  %v263_v34 = vld [vmem:[%s4191_s22 + $0x28] sm:$0xff]  ;;  %p3966_p7 = pneg %p3965_p3 }
  0x60   : > { %3121 = vmatprep.subr.bf16.mxu0 %v3120_v8  ;;  %3146 = vmatprep.subr.bf16.mxu1 %v3120_v8  ;;  %v326_v33 = vld [vmem:[%s4191_s22 + $0x220] sm:$0xff]  ;;  %v327_v35 = vld [vmem:[%s4191_s22 + $0x228] sm:$0xff]  ;;  %v264_v36 = vld [vmem:[%s4191_s22 + $0x30] sm:$0xff] }
  0x61   : > { %v328_v37 = vld [vmem:[%s4191_s22 + $0x230] sm:$0xff]  ;;  %v265_v38 = vld [vmem:[%s4191_s22 + $0x38] sm:$0xff]  ;;  %v266_v40 = vld [vmem:[%s4191_s22 + $0x40] sm:$0xff] }
  0x62   : > { %v329_v39 = vld [vmem:[%s4191_s22 + $0x238] sm:$0xff]  ;;  %v330_v41 = vld [vmem:[%s4191_s22 + $0x240] sm:$0xff]  ;;  %v267_v42 = vld [vmem:[%s4191_s22 + $0x48] sm:$0xff] }
  0x63   : > { %3123 = vmatpush3.bf16.msra.mxu0 %v3120_v8  ;;  %3154 = vmatpush3.bf16.msra.mxu1 %v3120_v8  ;;  %v331_v43 = vld [vmem:[%s4191_s22 + $0x248] sm:$0xff]  ;;  %v268_v44 = vld [vmem:[%s4191_s22 + $0x50] sm:$0xff]  ;;  %v269_v46 = vld [vmem:[%s4191_s22 + $0x58] sm:$0xff] }
  0x64   : > { %3125 = vmatprep.subr.bf16.mxu0 %v3124_v13  ;;  %3147 = vmatprep.subr.bf16.mxu1 %v3124_v13  ;;  %v332_v45 = vld [vmem:[%s4191_s22 + $0x250] sm:$0xff]  ;;  %v333_v47 = vld [vmem:[%s4191_s22 + $0x258] sm:$0xff]  ;;  %v270_v48 = vld [vmem:[%s4191_s22 + $0x60] sm:$0xff] }
  0x65   : > { %v334_v49 = vld [vmem:[%s4191_s22 + $0x260] sm:$0xff]  ;;  %v271_v50 = vld [vmem:[%s4191_s22 + $0x68] sm:$0xff]  ;;  %v272_v52 = vld [vmem:[%s4191_s22 + $0x70] sm:$0xff] }
  0x66   : > { %v335_v51 = vld [vmem:[%s4191_s22 + $0x268] sm:$0xff]  ;;  %v336_v53 = vld [vmem:[%s4191_s22 + $0x270] sm:$0xff]  ;;  %v273_v54 = vld [vmem:[%s4191_s22 + $0x78] sm:$0xff] }
  0x67   : > { %3127 = vmatpush3.bf16.msra.mxu0 %v3124_v13  ;;  %3155 = vmatpush3.bf16.msra.mxu1 %v3124_v13  ;;  %v337_v55 = vld [vmem:[%s4191_s22 + $0x278] sm:$0xff]  ;;  %v274_v56 = vld [vmem:[%s4191_s22 + $0x80] sm:$0xff]  ;;  %v275_v58 = vld [vmem:[%s4191_s22 + $0x88] sm:$0xff] }
  0x68   : > { %3129 = vmatprep.subr.bf16.mxu0 %v3128_v16  ;;  %3148 = vmatprep.subr.bf16.mxu1 %v3128_v16  ;;  %v338_v57 = vld [vmem:[%s4191_s22 + $0x280] sm:$0xff]  ;;  %v339_v59 = vld [vmem:[%s4191_s22 + $0x288] sm:$0xff]  ;;  %v276_v60 = vld [vmem:[%s4191_s22 + $0x90] sm:$0xff] }
  0x69   : > { %v340_v61 = vld [vmem:[%s4191_s22 + $0x290] sm:$0xff]  ;;  %v277_v62 = vld [vmem:[%s4191_s22 + $0x98] sm:$0xff]  ;;  %v278_v0 = vld [vmem:[%s4191_s22 + $0xa0] sm:$0xff] }
  0x6a   : > { %v341_v63 = vld [vmem:[%s4191_s22 + $0x298] sm:$0xff]  ;;  %v342_v1 = vld [vmem:[%s4191_s22 + $0x2a0] sm:$0xff]  ;;  %v279_v2 = vld [vmem:[%s4191_s22 + $0xa8] sm:$0xff] }
  0x6b   : > { %3131 = vmatpush3.bf16.msra.mxu0 %v3128_v16  ;;  %3156 = vmatpush3.bf16.msra.mxu1 %v3128_v16  ;;  %v343_v3 = vld [vmem:[%s4191_s22 + $0x2a8] sm:$0xff]  ;;  %v280_v4 = vld [vmem:[%s4191_s22 + $0xb0] sm:$0xff]  ;;  %v281_v6 = vld [vmem:[%s4191_s22 + $0xb8] sm:$0xff] }
  0x6c   : > { %3133 = vmatprep.subr.bf16.mxu0 %v3132_v19  ;;  %3149 = vmatprep.subr.bf16.mxu1 %v3132_v19  ;;  %v344_v5 = vld [vmem:[%s4191_s22 + $0x2b0] sm:$0xff]  ;;  %v345_v7 = vld [vmem:[%s4191_s22 + $0x2b8] sm:$0xff]  ;;  %v282_v8 = vld [vmem:[%s4191_s22 + $0xc0] sm:$0xff] }
  0x6d   : > { %v346_v9 = vld [vmem:[%s4191_s22 + $0x2c0] sm:$0xff]  ;;  %v283_v10 = vld [vmem:[%s4191_s22 + $0xc8] sm:$0xff]  ;;  %v284_v12 = vld [vmem:[%s4191_s22 + $0xd0] sm:$0xff] }
  0x6e   : > { %v347_v11 = vld [vmem:[%s4191_s22 + $0x2c8] sm:$0xff]  ;;  %v348_v13 = vld [vmem:[%s4191_s22 + $0x2d0] sm:$0xff]  ;;  %v285_v14 = vld [vmem:[%s4191_s22 + $0xd8] sm:$0xff] }
  0x6f   : > { %3135 = vmatpush3.bf16.msra.mxu0 %v3132_v19  ;;  %3157 = vmatpush3.bf16.msra.mxu1 %v3132_v19  ;;  %v349_v15 = vld [vmem:[%s4191_s22 + $0x2d8] sm:$0xff]  ;;  %v286_v16 = vld [vmem:[%s4191_s22 + $0xe0] sm:$0xff]  ;;  %v287_v18 = vld [vmem:[%s4191_s22 + $0xe8] sm:$0xff] }
  0x70   : > { %3137 = vmatprep.subr.bf16.mxu0 %v3136_v22  ;;  %3150 = vmatprep.subr.bf16.mxu1 %v3136_v22  ;;  %v350_v17 = vld [vmem:[%s4191_s22 + $0x2e0] sm:$0xff]  ;;  %v351_v19 = vld [vmem:[%s4191_s22 + $0x2e8] sm:$0xff]  ;;  %v288_v20 = vld [vmem:[%s4191_s22 + $0xf0] sm:$0xff] }
  0x71   : > { %v352_v21 = vld [vmem:[%s4191_s22 + $0x2f0] sm:$0xff]  ;;  %v353_v23 = vld [vmem:[%s4191_s22 + $0x2f8] sm:$0xff]  ;;  %v290_v24 = vld [vmem:[%s4191_s22 + $0x100] sm:$0xff] }
  0x73   : > { %3139 = vmatpush3.bf16.msra.mxu0 %v3136_v22  ;;  %3158 = vmatpush3.bf16.msra.mxu1 %v3136_v22  ;;  %v289_v22 = vld [vmem:[%s4191_s22 + $0xf8] sm:$0xff] }
  0x74   : > { %3141 = vmatprep.subr.bf16.mxu0 %v3140_v25  ;;  %3151 = vmatprep.subr.bf16.mxu1 %v3140_v25 }
  0x77   : > { %3143 = vmatpush3.bf16.msra.mxu0 %v3140_v25  ;;  %3159 = vmatpush3.bf16.msra.mxu1 %v3140_v25  ;;  %v354_v25 = vld [vmem:[%s4191_s22 + $0x300] sm:$0xff] }
  0x7a   : > { %2921 = vmatmul.mubr.f32.vlgmr.msra.gmra.mrb[0].mxu0 %v259_v26  ;;  %3017 = vmatmul.mubr.f32.vlgmr.msra.gmra.mrb[0].mxu1 %v323_v27  ;;  %v291_v26 = vld [vmem:[%s4191_s22 + $0x108] sm:$0xff] }
  0x7b   : > { %2923 = vmatprep.mubr.f32.mxu0 %v260_v28  ;;  %3019 = vmatprep.mubr.f32.mxu1 %v324_v29  ;;  %v355_v27 = vld [vmem:[%s4191_s22 + $0x308] sm:$0xff]  ;;  %v292_v28 = vld [vmem:[%s4191_s22 + $0x110] sm:$0xff] }
  0x7c   : > { %v356_v29 = vld [vmem:[%s4191_s22 + $0x310] sm:$0xff] }
  0x7e   : > { %2924 = vmatmul.mubr.f32.gmra.mrb[2].mxu0 %v261_v30  ;;  %3020 = vmatmul.mubr.f32.gmra.mrb[2].mxu1 %v325_v31  ;;  %v293_v30 = vld [vmem:[%s4191_s22 + $0x118] sm:$0xff] }
  0x7f   : > { %2926 = vmatprep.mubr.f32.mxu0 %v262_v32  ;;  %3022 = vmatprep.mubr.f32.mxu1 %v326_v33  ;;  %v357_v31 = vld [vmem:[%s4191_s22 + $0x318] sm:$0xff]  ;;  %v294_v32 = vld [vmem:[%s4191_s22 + $0x120] sm:$0xff] }
  0x80   : > { %v358_v33 = vld [vmem:[%s4191_s22 + $0x320] sm:$0xff] }
  0x82   : > { %2927 = vmatmul.mubr.f32.gmra.mrb[4].mxu0 %v263_v34  ;;  %3023 = vmatmul.mubr.f32.gmra.mrb[4].mxu1 %v327_v35  ;;  %v295_v34 = vld [vmem:[%s4191_s22 + $0x128] sm:$0xff] }
  0x83   : > { %2929 = vmatprep.mubr.f32.mxu0 %v264_v36  ;;  %3025 = vmatprep.mubr.f32.mxu1 %v328_v37  ;;  %v359_v35 = vld [vmem:[%s4191_s22 + $0x328] sm:$0xff]  ;;  %v296_v36 = vld [vmem:[%s4191_s22 + $0x130] sm:$0xff] }
  0x84   : > { %v360_v37 = vld [vmem:[%s4191_s22 + $0x330] sm:$0xff] }
  0x86   : > { %2930 = vmatmul.mubr.f32.gmra.mrb[6].mxu0 %v265_v38  ;;  %3026 = vmatmul.mubr.f32.gmra.mrb[6].mxu1 %v329_v39  ;;  %v297_v38 = vld [vmem:[%s4191_s22 + $0x138] sm:$0xff] }
  0x87   : > { %2932 = vmatprep.mubr.f32.mxu0 %v266_v40  ;;  %3028 = vmatprep.mubr.f32.mxu1 %v330_v41  ;;  %v361_v39 = vld [vmem:[%s4191_s22 + $0x338] sm:$0xff]  ;;  %v298_v40 = vld [vmem:[%s4191_s22 + $0x140] sm:$0xff] }
  0x88   : > { %v362_v41 = vld [vmem:[%s4191_s22 + $0x340] sm:$0xff] }
  0x8a   : > { %2933 = vmatmul.mubr.f32.gmra.mrb[8].mxu0 %v267_v42  ;;  %3029 = vmatmul.mubr.f32.gmra.mrb[8].mxu1 %v331_v43  ;;  %v299_v42 = vld [vmem:[%s4191_s22 + $0x148] sm:$0xff] }
  0x8b   : > { %2935 = vmatprep.mubr.f32.mxu0 %v268_v44  ;;  %3031 = vmatprep.mubr.f32.mxu1 %v332_v45  ;;  %v363_v43 = vld [vmem:[%s4191_s22 + $0x348] sm:$0xff]  ;;  %v300_v44 = vld [vmem:[%s4191_s22 + $0x150] sm:$0xff] }
  0x8c   : > { %v364_v45 = vld [vmem:[%s4191_s22 + $0x350] sm:$0xff] }
  0x8e   : > { %2936 = vmatmul.mubr.f32.gmra.mrb[10].mxu0 %v269_v46  ;;  %3032 = vmatmul.mubr.f32.gmra.mrb[10].mxu1 %v333_v47  ;;  %v301_v46 = vld [vmem:[%s4191_s22 + $0x158] sm:$0xff] }
  0x8f   : > { %2938 = vmatprep.mubr.f32.mxu0 %v270_v48  ;;  %3034 = vmatprep.mubr.f32.mxu1 %v334_v49  ;;  %v365_v47 = vld [vmem:[%s4191_s22 + $0x358] sm:$0xff]  ;;  %v302_v48 = vld [vmem:[%s4191_s22 + $0x160] sm:$0xff] }
  0x90   : > { %v366_v49 = vld [vmem:[%s4191_s22 + $0x360] sm:$0xff] }
  0x92   : > { %2939 = vmatmul.mubr.f32.gmra.mrb[12].mxu0 %v271_v50  ;;  %3035 = vmatmul.mubr.f32.gmra.mrb[12].mxu1 %v335_v51  ;;  %v303_v50 = vld [vmem:[%s4191_s22 + $0x168] sm:$0xff] }
  0x93   : > { %2941 = vmatprep.mubr.f32.mxu0 %v272_v52  ;;  %3037 = vmatprep.mubr.f32.mxu1 %v336_v53  ;;  %v367_v51 = vld [vmem:[%s4191_s22 + $0x368] sm:$0xff]  ;;  %v304_v52 = vld [vmem:[%s4191_s22 + $0x170] sm:$0xff] }
  0x94   : > { %v368_v53 = vld [vmem:[%s4191_s22 + $0x370] sm:$0xff] }
  0x96   : > { %2942 = vmatmul.mubr.f32.gmra.mrb[14].mxu0 %v273_v54  ;;  %3038 = vmatmul.mubr.f32.gmra.mrb[14].mxu1 %v337_v55  ;;  %v305_v54 = vld [vmem:[%s4191_s22 + $0x178] sm:$0xff] }
  0x97   : > { %2944 = vmatprep.mubr.f32.mxu0 %v274_v56  ;;  %3040 = vmatprep.mubr.f32.mxu1 %v338_v57  ;;  %v369_v55 = vld [vmem:[%s4191_s22 + $0x378] sm:$0xff]  ;;  %v306_v56 = vld [vmem:[%s4191_s22 + $0x180] sm:$0xff] }
  0x98   : > { %v370_v57 = vld [vmem:[%s4191_s22 + $0x380] sm:$0xff] }
  0x9a   : > { %2945 = vmatmul.mubr.f32.gmra.mrb[16].mxu0 %v275_v58  ;;  %3041 = vmatmul.mubr.f32.gmra.mrb[16].mxu1 %v339_v59  ;;  %v307_v58 = vld [vmem:[%s4191_s22 + $0x188] sm:$0xff] }
  0x9b   : > { %2947 = vmatprep.mubr.f32.mxu0 %v276_v60  ;;  %3043 = vmatprep.mubr.f32.mxu1 %v340_v61  ;;  %v371_v59 = vld [vmem:[%s4191_s22 + $0x388] sm:$0xff]  ;;  %v308_v60 = vld [vmem:[%s4191_s22 + $0x190] sm:$0xff] }
  0x9c   : > { %v372_v61 = vld [vmem:[%s4191_s22 + $0x390] sm:$0xff] }
  0x9e   : > { %2948 = vmatmul.mubr.f32.gmra.mrb[18].mxu0 %v277_v62  ;;  %3044 = vmatmul.mubr.f32.gmra.mrb[18].mxu1 %v341_v63  ;;  %v309_v62 = vld [vmem:[%s4191_s22 + $0x198] sm:$0xff] }
  0x9f   : > { %2950 = vmatprep.mubr.f32.mxu0 %v278_v0  ;;  %3046 = vmatprep.mubr.f32.mxu1 %v342_v1  ;;  %v373_v63 = vld [vmem:[%s4191_s22 + $0x398] sm:$0xff]  ;;  %v310_v0 = vld [vmem:[%s4191_s22 + $0x1a0] sm:$0xff] }
  0xa0   : > { %v374_v1 = vld [vmem:[%s4191_s22 + $0x3a0] sm:$0xff] }
  0xa2   : > { %2951 = vmatmul.mubr.f32.gmra.mrb[20].mxu0 %v279_v2  ;;  %3047 = vmatmul.mubr.f32.gmra.mrb[20].mxu1 %v343_v3  ;;  %v311_v2 = vld [vmem:[%s4191_s22 + $0x1a8] sm:$0xff] }
  0xa3   : > { %2953 = vmatprep.mubr.f32.mxu0 %v280_v4  ;;  %3049 = vmatprep.mubr.f32.mxu1 %v344_v5  ;;  %v375_v3 = vld [vmem:[%s4191_s22 + $0x3a8] sm:$0xff]  ;;  %v312_v4 = vld [vmem:[%s4191_s22 + $0x1b0] sm:$0xff] }
  0xa4   : > { %v376_v5 = vld [vmem:[%s4191_s22 + $0x3b0] sm:$0xff] }
  0xa6   : > { %2954 = vmatmul.mubr.f32.gmra.mrb[22].mxu0 %v281_v6  ;;  %3050 = vmatmul.mubr.f32.gmra.mrb[22].mxu1 %v345_v7  ;;  %v313_v6 = vld [vmem:[%s4191_s22 + $0x1b8] sm:$0xff] }
  0xa7   : > { %2956 = vmatprep.mubr.f32.mxu0 %v282_v8  ;;  %3052 = vmatprep.mubr.f32.mxu1 %v346_v9  ;;  %v377_v7 = vld [vmem:[%s4191_s22 + $0x3b8] sm:$0xff]  ;;  %v314_v8 = vld [vmem:[%s4191_s22 + $0x1c0] sm:$0xff] }
  0xa8   : > { %v378_v9 = vld [vmem:[%s4191_s22 + $0x3c0] sm:$0xff] }
  0xaa   : > { %2957 = vmatmul.mubr.f32.gmra.mrb[24].mxu0 %v283_v10  ;;  %3053 = vmatmul.mubr.f32.gmra.mrb[24].mxu1 %v347_v11  ;;  %v315_v10 = vld [vmem:[%s4191_s22 + $0x1c8] sm:$0xff] }
  0xab   : > { %2959 = vmatprep.mubr.f32.mxu0 %v284_v12  ;;  %3055 = vmatprep.mubr.f32.mxu1 %v348_v13  ;;  %v379_v11 = vld [vmem:[%s4191_s22 + $0x3c8] sm:$0xff]  ;;  %v316_v12 = vld [vmem:[%s4191_s22 + $0x1d0] sm:$0xff] }
  0xac   : > { %v380_v13 = vld [vmem:[%s4191_s22 + $0x3d0] sm:$0xff] }
  0xae   : > { %2960 = vmatmul.mubr.f32.gmra.mrb[26].mxu0 %v285_v14  ;;  %3056 = vmatmul.mubr.f32.gmra.mrb[26].mxu1 %v349_v15  ;;  %v317_v14 = vld [vmem:[%s4191_s22 + $0x1d8] sm:$0xff] }
  0xaf   : > { %2962 = vmatprep.mubr.f32.mxu0 %v286_v16  ;;  %3058 = vmatprep.mubr.f32.mxu1 %v350_v17  ;;  %v381_v15 = vld [vmem:[%s4191_s22 + $0x3d8] sm:$0xff]  ;;  %v318_v16 = vld [vmem:[%s4191_s22 + $0x1e0] sm:$0xff] }
  0xb0   : > { %v382_v17 = vld [vmem:[%s4191_s22 + $0x3e0] sm:$0xff] }
  0xb2   : > { %2963 = vmatmul.mubr.f32.gmra.mrb[28].mxu0 %v287_v18  ;;  %3059 = vmatmul.mubr.f32.gmra.mrb[28].mxu1 %v351_v19  ;;  %v319_v18 = vld [vmem:[%s4191_s22 + $0x1e8] sm:$0xff] }
  0xb3   : > { %2965 = vmatprep.mubr.f32.mxu0 %v288_v20  ;;  %3061 = vmatprep.mubr.f32.mxu1 %v352_v21  ;;  %v383_v19 = vld [vmem:[%s4191_s22 + $0x3e8] sm:$0xff]  ;;  %v320_v20 = vld [vmem:[%s4191_s22 + $0x1f0] sm:$0xff] }
  0xb4   : > { %v384_v21 = vld [vmem:[%s4191_s22 + $0x3f0] sm:$0xff] }
  0xb6   : > { %2966 = vmatmul.mubr.f32.gmra.mrb[30].mxu0 %v289_v22  ;;  %3062 = vmatmul.mubr.f32.gmra.mrb[30].mxu1 %v353_v23  ;;  %v321_v22 = vld [vmem:[%s4191_s22 + $0x1f8] sm:$0xff] }
  0xb7   : > { %2968 = vmatprep.mubr.f32.mxu0 %v290_v24  ;;  %3064 = vmatprep.mubr.f32.mxu1 %v354_v25  ;;  %v385_v23 = vld [vmem:[%s4191_s22 + $0x3f8] sm:$0xff]  ;;  %v4332_v24 = vld [vmem:[%s6161_s2] ss:$0 sm:$0xff] }
  0xba   : > { %2969 = vmatmul.mubr.f32.gmra.mrb[32].mxu0 %v291_v26  ;;  %3065 = vmatmul.mubr.f32.gmra.mrb[32].mxu1 %v355_v27 }
  0xbb   : > { %2971 = vmatprep.mubr.f32.mxu0 %v292_v28  ;;  %3067 = vmatprep.mubr.f32.mxu1 %v356_v29 }
  0xbe   : > { %2972 = vmatmul.mubr.f32.gmra.mrb[34].mxu0 %v293_v30  ;;  %3068 = vmatmul.mubr.f32.gmra.mrb[34].mxu1 %v357_v31 }
  0xbf   : > { %2974 = vmatprep.mubr.f32.mxu0 %v294_v32  ;;  %3070 = vmatprep.mubr.f32.mxu1 %v358_v33 }
  0xc2   : > { %2975 = vmatmul.mubr.f32.gmra.mrb[36].mxu0 %v295_v34  ;;  %3071 = vmatmul.mubr.f32.gmra.mrb[36].mxu1 %v359_v35 }
  0xc3   : > { %2977 = vmatprep.mubr.f32.mxu0 %v296_v36  ;;  %3073 = vmatprep.mubr.f32.mxu1 %v360_v37 }
  0xc6   : > { %2978 = vmatmul.mubr.f32.gmra.mrb[38].mxu0 %v297_v38  ;;  %3074 = vmatmul.mubr.f32.gmra.mrb[38].mxu1 %v361_v39 }
  0xc7   : > { %2980 = vmatprep.mubr.f32.mxu0 %v298_v40  ;;  %3076 = vmatprep.mubr.f32.mxu1 %v362_v41 }
  0xca   : > { %2981 = vmatmul.mubr.f32.gmra.mrb[40].mxu0 %v299_v42  ;;  %3077 = vmatmul.mubr.f32.gmra.mrb[40].mxu1 %v363_v43 }
  0xcb   : > { %2983 = vmatprep.mubr.f32.mxu0 %v300_v44  ;;  %3079 = vmatprep.mubr.f32.mxu1 %v364_v45 }
  0xce   : > { %2984 = vmatmul.mubr.f32.gmra.mrb[42].mxu0 %v301_v46  ;;  %3080 = vmatmul.mubr.f32.gmra.mrb[42].mxu1 %v365_v47  ;;  %v4346_v46 = vld [vmem:[%s6162_s3] ss:$0 sm:$0xff] }
  0xcf   : > { %2986 = vmatprep.mubr.f32.mxu0 %v302_v48  ;;  %3082 = vmatprep.mubr.f32.mxu1 %v366_v49 }
  0xd2   : > { %2987 = vmatmul.mubr.f32.gmra.mrb[44].mxu0 %v303_v50  ;;  %3083 = vmatmul.mubr.f32.gmra.mrb[44].mxu1 %v367_v51 }
  0xd3   : > { %2989 = vmatprep.mubr.f32.mxu0 %v304_v52  ;;  %3085 = vmatprep.mubr.f32.mxu1 %v368_v53 }
  0xd6   : > { %2990 = vmatmul.mubr.f32.gmra.mrb[46].mxu0 %v305_v54  ;;  %3086 = vmatmul.mubr.f32.gmra.mrb[46].mxu1 %v369_v55 }
  0xd7   : > { %2992 = vmatprep.mubr.f32.mxu0 %v306_v56  ;;  %3088 = vmatprep.mubr.f32.mxu1 %v370_v57 }
  0xda   : > { %2993 = vmatmul.mubr.f32.gmra.mrb[48].mxu0 %v307_v58  ;;  %3089 = vmatmul.mubr.f32.gmra.mrb[48].mxu1 %v371_v59 }
  0xdb   : > { %2995 = vmatprep.mubr.f32.mxu0 %v308_v60  ;;  %3091 = vmatprep.mubr.f32.mxu1 %v372_v61 }
  0xde   : > { %2996 = vmatmul.mubr.f32.gmra.mrb[50].mxu0 %v309_v62  ;;  %3092 = vmatmul.mubr.f32.gmra.mrb[50].mxu1 %v373_v63 }
  0xdf   : > { %2998 = vmatprep.mubr.f32.mxu0 %v310_v0  ;;  %3094 = vmatprep.mubr.f32.mxu1 %v374_v1 }
  0xe2   : > { %2999 = vmatmul.mubr.f32.gmra.mrb[52].mxu0 %v311_v2  ;;  %3095 = vmatmul.mubr.f32.gmra.mrb[52].mxu1 %v375_v3 }
  0xe3   : > { %3001 = vmatprep.mubr.f32.mxu0 %v312_v4  ;;  %3097 = vmatprep.mubr.f32.mxu1 %v376_v5 }
  0xe6   : > { %3002 = vmatmul.mubr.f32.gmra.mrb[54].mxu0 %v313_v6  ;;  %3098 = vmatmul.mubr.f32.gmra.mrb[54].mxu1 %v377_v7 }
  0xe7   : > { %3004 = vmatprep.mubr.f32.mxu0 %v314_v8  ;;  %3100 = vmatprep.mubr.f32.mxu1 %v378_v9 }
  0xea   : > { %3005 = vmatmul.mubr.f32.gmra.mrb[56].mxu0 %v315_v10  ;;  %3101 = vmatmul.mubr.f32.gmra.mrb[56].mxu1 %v379_v11 }
  0xeb   : > { %3007 = vmatprep.mubr.f32.mxu0 %v316_v12  ;;  %3103 = vmatprep.mubr.f32.mxu1 %v380_v13 }
  0xee   : > { %3008 = vmatmul.mubr.f32.gmra.mrb[58].mxu0 %v317_v14  ;;  %3104 = vmatmul.mubr.f32.gmra.mrb[58].mxu1 %v381_v15 }
  0xef   : > { %3010 = vmatprep.mubr.f32.mxu0 %v318_v16  ;;  %3106 = vmatprep.mubr.f32.mxu1 %v382_v17 }
  0xf2   : > { %3011 = vmatmul.mubr.f32.gmra.mrb[60].mxu0 %v319_v18  ;;  %3107 = vmatmul.mubr.f32.gmra.mrb[60].mxu1 %v383_v19 }
  0xf3   : > { %3013 = vmatprep.mubr.f32.mxu0 %v320_v20  ;;  %3109 = vmatprep.mubr.f32.mxu1 %v384_v21 }
  0xf6   : > { %3014 = vmatmul.mubr.f32.gmra.mrb[62].mxu0 %v321_v22  ;;  %3110 = vmatmul.mubr.f32.gmra.mrb[62].mxu1 %v385_v23 }
 0x14d   : > { %v2922_v25 = vpop.f32.mrb[0].mxu0  ;;  %v3018_v26 = vpop.f32.mrb[0].mxu1 }
 0x14e   : > { %v481_v27 = vadd.f32 %v2922_v25, %v4332_v24  ;;  %v801_v28 = vadd.f32 %v3018_v26, %v4332_v24  ;;  %v475_v29 = vpop.f32.mrb[1].mxu0  ;;  %v795_v30 = vpop.f32.mrb[1].mxu1 }
 0x14f   : > { %v476_v31 = vadd.f32 %v4332_v24, %v475_v29  ;;  %v796_v32 = vadd.f32 %v4332_v24, %v795_v30 }
 0x150   : > { %3229 = vtanh.f32 %v481_v27 }
 0x151   : > { %3231 = vtanh.f32 %v801_v28  ;;  %v2925_v33 = vpop.f32.mrb[2].mxu0  ;;  %v3021_v34 = vpop.f32.mrb[2].mxu1 }
 0x152   : > { %3233 = vtanh.f32 %v476_v31  ;;  %v491_v35 = vadd.f32 %v2925_v33, %v4332_v24  ;;  %v485_v36 = vpop.f32.mrb[3].mxu0  ;;  %v811_v37 = vadd.f32 %v3021_v34, %v4332_v24  ;;  %v805_v38 = vpop.f32.mrb[3].mxu1 }
 0x153   : > { %v806_v41 = vadd.f32 %v4332_v24, %v805_v38  ;;  %v486_v44 = vadd.f32 %v4332_v24, %v485_v36 }
 0x154   : > { %3235 = vtanh.f32 %v491_v35 }
 0x155   : > { %3237 = vtanh.f32 %v796_v32  ;;  %v2928_v39 = vpop.f32.mrb[4].mxu0  ;;  %v3024_v40 = vpop.f32.mrb[4].mxu1 }
 0x156   : > { %3239 = vtanh.f32 %v811_v37  ;;  %v495_v42 = vpop.f32.mrb[5].mxu0  ;;  %v815_v43 = vpop.f32.mrb[5].mxu1  ;;  %v501_v47 = vadd.f32 %v2928_v39, %v4332_v24  ;;  %v821_v58 = vadd.f32 %v3024_v40, %v4332_v24 }
 0x157   : > { %v496_v45 = vadd.f32 %v4332_v24, %v495_v42  ;;  %3241 = vtanh.f32 %v806_v41  ;;  %v816_v57 = vadd.f32 %v4332_v24, %v815_v43 }
 0x158   : > { %3243 = vtanh.f32 %v486_v44 }
 0x159   : > { %v2931_v48 = vpop.f32.mrb[6].mxu0  ;;  %v3027_v49 = vpop.f32.mrb[6].mxu1  ;;  %3245 = vtanh.f32 %v496_v45 }
 0x15a   : > { %v3230_v50 = vpop.eup %3229  ;;  %v505_v51 = vpop.f32.mrb[7].mxu0  ;;  %3247 = vtanh.f32 %v501_v47  ;;  %v511_v5 = vadd.f32 %v2931_v48, %v4332_v24  ;;  %v831_v15 = vadd.f32 %v3027_v49, %v4332_v24 }
 0x15b   : > { %v825_v52 = vpop.f32.mrb[7].mxu1  ;;  %v3232_v53 = vpop.eup %3231  ;;  %v1250_v54 = vmul.f32 %v3230_v50, %v4346_v46  ;;  %3249 = vtanh.f32 %v816_v57  ;;  %v506_v4 = vadd.f32 %v4332_v24, %v505_v51 }
 0x15c   : > { %v3234_v55 = vpop.eup %3233  ;;  %v1314_v56 = vmul.f32 %v3232_v53, %v4346_v46  ;;  %3251 = vtanh.f32 %v821_v58  ;;  %v826_v13 = vadd.f32 %v4332_v24, %v825_v52 }
 0x15d   : > { %1379 = vadd.xlane.f32.xlu0 %v1250_v54  ;;  %v2934_v59 = vpop.f32.mrb[8].mxu0  ;;  %v3030_v60 = vpop.f32.mrb[8].mxu1  ;;  %v1249_v2 = vmul.f32 %v3234_v55, %v4346_v46  ;;  %3253 = vtanh.f32 %v506_v4 }
 0x15e   : > { %v3236_v61 = vpop.eup %3235  ;;  %1507 = vadd.xlane.f32.xlu1 %v1314_v56  ;;  %v515_v62 = vpop.f32.mrb[9].mxu0  ;;  %3255 = vtanh.f32 %v511_v5  ;;  %v521_v26 = vadd.f32 %v2934_v59, %v4332_v24  ;;  %v841_v36 = vadd.f32 %v3030_v60, %v4332_v24 }
 0x15f   : > { %v835_v63 = vpop.f32.mrb[9].mxu1  ;;  %v3238_v0 = vpop.eup %3237  ;;  %v1252_v1 = vmul.f32 %v3236_v61, %v4346_v46  ;;  %3257 = vtanh.f32 %v826_v13  ;;  %v516_v25 = vadd.f32 %v4332_v24, %v515_v62 }
 0x160   : > { %v3240_v3 = vpop.eup %3239  ;;  %v1313_v11 = vmul.f32 %v3238_v0, %v4346_v46  ;;  %3259 = vtanh.f32 %v831_v15  ;;  %v836_v35 = vadd.f32 %v4332_v24, %v835_v63 }
 0x161   : > { %1377 = vadd.xlane.f32.xlu0 %v1249_v2  ;;  %v2937_v6 = vpop.f32.mrb[10].mxu0  ;;  %v4357_v7 = vpop.f32.mrb[10].mxu1  ;;  %v1316_v8 = vmul.f32 %v3240_v3, %v4346_v46  ;;  %3261 = vtanh.f32 %v516_v25 }
 0x162   : > { %1383 = vadd.xlane.f32.xlu1 %v1252_v1  ;;  %v525_v9 = vpop.f32.mrb[11].mxu0  ;;  %v845_v10 = vpop.f32.mrb[11].mxu1  ;;  %3263 = vtanh.f32 %v521_v26  ;;  %v531_v47 = vadd.f32 %v2937_v6, %v4332_v24  ;;  %v851_v57 = vadd.f32 %v4357_v7, %v4332_v24 }
 0x163   : > { %v3242_v12 = vpop.eup %3241  ;;  %3265 = vtanh.f32 %v836_v35  ;;  %v526_v45 = vadd.f32 %v4332_v24, %v525_v9  ;;  %v846_v56 = vadd.f32 %v4332_v24, %v845_v10 }
 0x164   : > { %v3244_v14 = vpop.eup %3243  ;;  %v1315_v22 = vmul.f32 %v3242_v12, %v4346_v46  ;;  %3267 = vtanh.f32 %v841_v36 }
 0x165   : > { %1505 = vadd.xlane.f32.xlu0 %v1313_v11  ;;  %v4363_v16 = vpop.f32.mrb[12].mxu0  ;;  %v4365_v17 = vpop.f32.mrb[12].mxu1  ;;  %v1251_v23 = vmul.f32 %v3244_v14, %v4346_v46  ;;  %3269 = vtanh.f32 %v526_v45 }
 0x166   : > { %v3246_v18 = vpop.eup %3245  ;;  %1511 = vadd.xlane.f32.xlu1 %v1316_v8  ;;  %v535_v19 = vpop.f32.mrb[13].mxu0  ;;  %3271 = vtanh.f32 %v531_v47  ;;  %v541_v3 = vadd.f32 %v4363_v16, %v4332_v24  ;;  %v861_v13 = vadd.f32 %v4365_v17, %v4332_v24 }
 0x167   : > { %v4367_v20 = vpop.f32.mrb[13].mxu1  ;;  %v3248_v21 = vpop.eup %3247  ;;  %v1253_v27 = vmul.f32 %v3246_v18, %v4346_v46  ;;  %3273 = vtanh.f32 %v846_v56  ;;  %v536_v2 = vadd.f32 %v4332_v24, %v535_v19 }
 0x168   : > { %v3250_v30 = vpop.eup %3249  ;;  %v1254_v31 = vmul.f32 %v3248_v21, %v4346_v46  ;;  %3275 = vtanh.f32 %v851_v57  ;;  %v856_v12 = vadd.f32 %v4332_v24, %v4367_v20 }
 0x169   : > { %1509 = vadd.xlane.f32.xlu0 %v1315_v22  ;;  %v4374_v28 = vpop.f32.mrb[14].mxu0  ;;  %v4376_v29 = vpop.f32.mrb[14].mxu1  ;;  %v1317_v37 = vmul.f32 %v3250_v30, %v4346_v46  ;;  %3277 = vtanh.f32 %v536_v2 }
 0x16a   : > { %1381 = vadd.xlane.f32.xlu1 %v1251_v23  ;;  %v4379_v32 = vpop.f32.mrb[15].mxu0  ;;  %v4381_v33 = vpop.f32.mrb[15].mxu1  ;;  %3279 = vtanh.f32 %v541_v3  ;;  %v551_v17 = vadd.f32 %v4374_v28, %v4332_v24  ;;  %v871_v28 = vadd.f32 %v4376_v29, %v4332_v24 }
 0x16b   : > { %v3252_v34 = vpop.eup %3251  ;;  %3281 = vtanh.f32 %v856_v12  ;;  %v546_v23 = vadd.f32 %v4332_v24, %v4379_v32  ;;  %v866_v36 = vadd.f32 %v4332_v24, %v4381_v33 }
 0x16c   : > { %v3254_v40 = vpop.eup %3253  ;;  %v1318_v41 = vmul.f32 %v3252_v34, %v4346_v46  ;;  %3283 = vtanh.f32 %v861_v13 }
 0x16d   : > { %1385 = vadd.xlane.f32.xlu0 %v1253_v27  ;;  %v4386_v38 = vpop.f32.mrb[16].mxu0  ;;  %v4388_v39 = vpop.f32.mrb[16].mxu1  ;;  %v1255_v48 = vmul.f32 %v3254_v40, %v4346_v46  ;;  %3285 = vtanh.f32 %v546_v23 }
 0x16e   : > { %1387 = vadd.xlane.f32.xlu1 %v1254_v31  ;;  %v4391_v42 = vpop.f32.mrb[17].mxu0  ;;  %v4393_v43 = vpop.f32.mrb[17].mxu1  ;;  %v561_v29 = vadd.f32 %v4386_v38, %v4332_v24  ;;  %v881_v38 = vadd.f32 %v4388_v39, %v4332_v24 }
 0x16f   : > { %v3256_v44 = vpop.eup %3255  ;;  %3287 = vtanh.f32 %v551_v17 }
 0x170   : > { %v3258_v51 = vpop.eup %3257  ;;  %v1256_v52 = vmul.f32 %v3256_v44, %v4346_v46  ;;  %3289 = vtanh.f32 %v866_v36 }
 0x171   : > { %1513 = vadd.xlane.f32.xlu0 %v1317_v37  ;;  %v4398_v49 = vpop.f32.mrb[18].mxu0  ;;  %v4400_v50 = vpop.f32.mrb[18].mxu1  ;;  %v1319_v58 = vmul.f32 %v3258_v51, %v4346_v46  ;;  %v556_v51 = vadd.f32 %v4332_v24, %v4391_v42 }
 0x172   : > { %1515 = vadd.xlane.f32.xlu1 %v1318_v41  ;;  %v4403_v53 = vpop.f32.mrb[19].mxu0  ;;  %v4405_v54 = vpop.f32.mrb[19].mxu1  ;;  %v571_v39 = vadd.f32 %v4398_v49, %v4332_v24  ;;  %v891_v49 = vadd.f32 %v4400_v50, %v4332_v24 }
 0x173   : > { %v3260_v55 = vpop.eup %3259  ;;  %3291 = vtanh.f32 %v871_v28  ;;  %v566_v13 = vadd.f32 %v4332_v24, %v4403_v53 }
 0x174   : > { %v3262_v61 = vpop.eup %3261  ;;  %v1320_v62 = vmul.f32 %v3260_v55, %v4346_v46  ;;  %3293 = vtanh.f32 %v556_v51 }
 0x175   : > { %1389 = vadd.xlane.f32.xlu0 %v1255_v48  ;;  %v4411_v59 = vpop.f32.mrb[20].mxu0  ;;  %v4413_v60 = vpop.f32.mrb[20].mxu1  ;;  %v1257_v4 = vmul.f32 %v3262_v61, %v4346_v46 }
 0x176   : > { %1391 = vadd.xlane.f32.xlu1 %v1256_v52  ;;  %v4416_v63 = vpop.f32.mrb[21].mxu0  ;;  %v4418_v0 = vpop.f32.mrb[21].mxu1  ;;  %v581_v50 = vadd.f32 %v4411_v59, %v4332_v24  ;;  %v901_v59 = vadd.f32 %v4413_v60, %v4332_v24 }
 0x177   : > { %v3264_v1 = vpop.eup %3263  ;;  %3295 = vtanh.f32 %v561_v29 }
 0x178   : > { %v3266_v7 = vpop.eup %3265  ;;  %v1258_v8 = vmul.f32 %v3264_v1, %v4346_v46  ;;  %v876_v1 = vadd.f32 %v4332_v24, %v4393_v43 }
 0x179   : > { %1517 = vadd.xlane.f32.xlu0 %v1319_v58  ;;  %v4424_v5 = vpop.f32.mrb[22].mxu0  ;;  %v4426_v6 = vpop.f32.mrb[22].mxu1  ;;  %v1321_v14 = vmul.f32 %v3266_v7, %v4346_v46 }
 0x17a   : > { %1519 = vadd.xlane.f32.xlu1 %v1320_v62  ;;  %v4429_v9 = vpop.f32.mrb[23].mxu0  ;;  %v4431_v10 = vpop.f32.mrb[23].mxu1  ;;  %3297 = vtanh.f32 %v876_v1  ;;  %v591_v60 = vadd.f32 %v4424_v5, %v4332_v24  ;;  %v911_v5 = vadd.f32 %v4426_v6, %v4332_v24 }
 0x17b   : > { %v3268_v11 = vpop.eup %3267  ;;  %3299 = vtanh.f32 %v881_v38  ;;  %v896_v38 = vadd.f32 %v4332_v24, %v4418_v0 }
 0x17c   : > { %v3270_v18 = vpop.eup %3269  ;;  %v1322_v19 = vmul.f32 %v3268_v11, %v4346_v46  ;;  %3301 = vtanh.f32 %v566_v13 }
 0x17d   : > { %1393 = vadd.xlane.f32.xlu0 %v1257_v4  ;;  %v4438_v15 = vpop.f32.mrb[24].mxu0  ;;  %v4440_v16 = vpop.f32.mrb[24].mxu1  ;;  %v1259_v25 = vmul.f32 %v3270_v18, %v4346_v46 }
 0x17e   : > { %1395 = vadd.xlane.f32.xlu1 %v1258_v8  ;;  %v4443_v21 = vpop.f32.mrb[25].mxu0  ;;  %v4445_v22 = vpop.f32.mrb[25].mxu1  ;;  %v601_v6 = vadd.f32 %v4438_v15, %v4332_v24  ;;  %v921_v15 = vadd.f32 %v4440_v16, %v4332_v24 }
 0x17f   : > { %v3272_v20 = vpop.eup %3271  ;;  %3303 = vtanh.f32 %v571_v39 }
 0x180   : > { %v3274_v30 = vpop.eup %3273  ;;  %v1260_v31 = vmul.f32 %v3272_v20, %v4346_v46 }
 0x181   : > { %1521 = vadd.xlane.f32.xlu0 %v1321_v14  ;;  %v4452_v26 = vpop.f32.mrb[26].mxu0  ;;  %v4454_v27 = vpop.f32.mrb[26].mxu1  ;;  %v1323_v37 = vmul.f32 %v3274_v30, %v4346_v46  ;;  %v886_v30 = vadd.f32 %v4332_v24, %v4405_v54 }
 0x182   : > { %1523 = vadd.xlane.f32.xlu1 %v1322_v19  ;;  %v4457_v34 = vpop.f32.mrb[27].mxu0  ;;  %v4459_v35 = vpop.f32.mrb[27].mxu1  ;;  %v611_v16 = vadd.f32 %v4452_v26, %v4332_v24  ;;  %v931_v26 = vadd.f32 %v4454_v27, %v4332_v24 }
 0x183   : > { %v3276_v32 = vpop.eup %3275  ;;  %3305 = vtanh.f32 %v886_v30 }
 0x184   : > { %v3278_v44 = vpop.eup %3277  ;;  %v1324_v45 = vmul.f32 %v3276_v32, %v4346_v46  ;;  %3307 = vtanh.f32 %v891_v49 }
 0x185   : > { %1397 = vadd.xlane.f32.xlu0 %v1259_v25  ;;  %v4466_v40 = vpop.f32.mrb[28].mxu0  ;;  %v4468_v41 = vpop.f32.mrb[28].mxu1  ;;  %v1261_v52 = vmul.f32 %v3278_v44, %v4346_v46 }
 0x186   : > { %1399 = vadd.xlane.f32.xlu1 %v1260_v31  ;;  %v4471_v47 = vpop.f32.mrb[29].mxu0  ;;  %v4473_v48 = vpop.f32.mrb[29].mxu1  ;;  %v621_v27 = vadd.f32 %v4466_v40, %v4332_v24  ;;  %v941_v40 = vadd.f32 %v4468_v41, %v4332_v24 }
 0x187   : > { %v3280_v33 = vpop.eup %3279 }
 0x188   : > { %v3282_v57 = vpop.eup %3281  ;;  %v1262_v58 = vmul.f32 %v3280_v33, %v4346_v46  ;;  %v576_v33 = vadd.f32 %v4332_v24, %v4416_v63 }
 0x189   : > { %1525 = vadd.xlane.f32.xlu0 %v1323_v37  ;;  %v4480_v55 = vpop.f32.mrb[30].mxu0  ;;  %v4482_v56 = vpop.f32.mrb[30].mxu1  ;;  %v1325_v2 = vmul.f32 %v3282_v57, %v4346_v46 }
 0x18a   : > { %1527 = vadd.xlane.f32.xlu1 %v1324_v45  ;;  %v4485_v61 = vpop.f32.mrb[31].mxu0  ;;  %v4487_v62 = vpop.f32.mrb[31].mxu1  ;;  %3309 = vtanh.f32 %v576_v33  ;;  %v631_v41 = vadd.f32 %v4480_v55, %v4332_v24  ;;  %v951_v55 = vadd.f32 %v4482_v56, %v4332_v24 }
 0x18b   : > { %v3284_v42 = vpop.eup %3283  ;;  %3311 = vtanh.f32 %v581_v50 }
 0x18c   : > { %v3286_v7 = vpop.eup %3285  ;;  %v1326_v8 = vmul.f32 %v3284_v42, %v4346_v46  ;;  %3313 = vtanh.f32 %v896_v38 }
 0x18d   : > { %1401 = vadd.xlane.f32.xlu0 %v1261_v52  ;;  %v4494_v3 = vpop.f32.mrb[32].mxu0  ;;  %v4496_v4 = vpop.f32.mrb[32].mxu1  ;;  %v1263_v14 = vmul.f32 %v3286_v7, %v4346_v46  ;;  %3315 = vtanh.f32 %v901_v59  ;;  %v596_v59 = vadd.f32 %v4332_v24, %v4443_v21 }
 0x18e   : > { %1403 = vadd.xlane.f32.xlu1 %v1262_v58  ;;  %v4499_v11 = vpop.f32.mrb[33].mxu0  ;;  %v4501_v12 = vpop.f32.mrb[33].mxu1  ;;  %v641_v56 = vadd.f32 %v4494_v3, %v4332_v24  ;;  %v961_v3 = vadd.f32 %v4496_v4, %v4332_v24 }
 0x18f   : > { %v3288_v43 = vpop.eup %3287 }
 0x190   : > { %v3290_v20 = vpop.eup %3289  ;;  %v1264_v23 = vmul.f32 %v3288_v43, %v4346_v46 }
 0x191   : > { %1529 = vadd.xlane.f32.xlu0 %v1325_v2  ;;  %v4508_v18 = vpop.f32.mrb[34].mxu0  ;;  %v4510_v19 = vpop.f32.mrb[34].mxu1  ;;  %v1327_v31 = vmul.f32 %v3290_v20, %v4346_v46  ;;  %v586_v20 = vadd.f32 %v4332_v24, %v4429_v9 }
 0x192   : > { %1531 = vadd.xlane.f32.xlu1 %v1326_v8  ;;  %v4513_v17 = vpop.f32.mrb[35].mxu0  ;;  %v4515_v25 = vpop.f32.mrb[35].mxu1 }
 0x193   : > { %v3292_v53 = vpop.eup %3291  ;;  %3317 = vtanh.f32 %v586_v20 }
 0x194   : > { %v3294_v28 = vpop.eup %3293  ;;  %v1328_v37 = vmul.f32 %v3292_v53, %v4346_v46  ;;  %3319 = vtanh.f32 %v591_v60 }
 0x195   : > { %1405 = vadd.xlane.f32.xlu0 %v1263_v14  ;;  %v4522_v32 = vpop.f32.mrb[36].mxu0  ;;  %v4524_v36 = vpop.f32.mrb[36].mxu1  ;;  %v1265_v51 = vmul.f32 %v3294_v28, %v4346_v46 }
 0x196   : > { %1407 = vadd.xlane.f32.xlu1 %v1264_v23  ;;  %v4527_v44 = vpop.f32.mrb[37].mxu0  ;;  %v4529_v45 = vpop.f32.mrb[37].mxu1 }
 0x197   : > { %v3296_v54 = vpop.eup %3295 }
 0x198   : > { %v3298_v57 = vpop.eup %3297  ;;  %v1266_v58 = vmul.f32 %v3296_v54, %v4346_v46  ;;  %v906_v54 = vadd.f32 %v4332_v24, %v4431_v10 }
 0x199   : > { %1533 = vadd.xlane.f32.xlu0 %v1327_v31  ;;  %v4536_v29 = vpop.f32.mrb[38].mxu0  ;;  %v4538_v52 = vpop.f32.mrb[38].mxu1  ;;  %v1329_v2 = vmul.f32 %v3298_v57, %v4346_v46 }
 0x19a   : > { %1535 = vadd.xlane.f32.xlu1 %v1328_v37  ;;  %v4541_v42 = vpop.f32.mrb[39].mxu0  ;;  %v4543_v1 = vpop.f32.mrb[39].mxu1  ;;  %3321 = vtanh.f32 %v906_v54 }
 0x19b   : > { %v3300_v63 = vpop.eup %3299  ;;  %3323 = vtanh.f32 %v911_v5 }
 0x19c   : > { %v3302_v43 = vpop.eup %3301  ;;  %v1330_v13 = vmul.f32 %v3300_v63, %v4346_v46  ;;  %3325 = vtanh.f32 %v596_v59 }
 0x19d   : > { %1409 = vadd.xlane.f32.xlu0 %v1265_v51  ;;  %v4550_v7 = vpop.f32.mrb[40].mxu0  ;;  %v4552_v8 = vpop.f32.mrb[40].mxu1  ;;  %v1267_v23 = vmul.f32 %v3302_v43, %v4346_v46  ;;  %3327 = vtanh.f32 %v601_v6 }
 0x19e   : > { %1411 = vadd.xlane.f32.xlu1 %v1266_v58  ;;  %v4555_v39 = vpop.f32.mrb[41].mxu0  ;;  %v4557_v14 = vpop.f32.mrb[41].mxu1 }
 0x19f   : > { %v3304_v0 = vpop.eup %3303 }
 0x1a0   : > { %v3306_v49 = vpop.eup %3305  ;;  %v1268_v31 = vmul.f32 %v3304_v0, %v4346_v46 }
 0x1a1   : > { %1537 = vadd.xlane.f32.xlu0 %v1329_v2  ;;  %v4564_v53 = vpop.f32.mrb[42].mxu0  ;;  %v4566_v30 = vpop.f32.mrb[42].mxu1  ;;  %v1331_v33 = vmul.f32 %v3306_v49, %v4346_v46  ;;  %v916_v49 = vadd.f32 %v4332_v24, %v4445_v22 }
 0x1a2   : > { %1539 = vadd.xlane.f32.xlu1 %v1330_v13  ;;  %v4569_v28 = vpop.f32.mrb[43].mxu0  ;;  %v4571_v37 = vpop.f32.mrb[43].mxu1 }
 0x1a3   : > { %v3308_v9 = vpop.eup %3307  ;;  %3329 = vtanh.f32 %v916_v49 }
 0x1a4   : > { %v3310_v57 = vpop.eup %3309  ;;  %v1332_v58 = vmul.f32 %v3308_v9, %v4346_v46  ;;  %3331 = vtanh.f32 %v921_v15  ;;  %v926_v15 = vadd.f32 %v4332_v24, %v4459_v35 }
 0x1a5   : > { %1413 = vadd.xlane.f32.xlu0 %v1267_v23  ;;  %v4578_v50 = vpop.f32.mrb[44].mxu0  ;;  %v4580_v51 = vpop.f32.mrb[44].mxu1  ;;  %v1269_v2 = vmul.f32 %v3310_v57, %v4346_v46 }
 0x1a6   : > { %1415 = vadd.xlane.f32.xlu1 %v1268_v31  ;;  %v4583_v63 = vpop.f32.mrb[45].mxu0  ;;  %v4585_v38 = vpop.f32.mrb[45].mxu1 }
 0x1a7   : > { %v3312_v10 = vpop.eup %3311 }
 0x1a8   : > { %v3314_v0 = vpop.eup %3313  ;;  %v1270_v20 = vmul.f32 %v3312_v10, %v4346_v46  ;;  %v606_v10 = vadd.f32 %v4332_v24, %v4457_v34 }
 0x1a9   : > { %1541 = vadd.xlane.f32.xlu0 %v1331_v33  ;;  %v4592_v43 = vpop.f32.mrb[46].mxu0  ;;  %v4594_v13 = vpop.f32.mrb[46].mxu1  ;;  %v1333_v31 = vmul.f32 %v3314_v0, %v4346_v46 }
 0x1aa   : > { %1543 = vadd.xlane.f32.xlu1 %v1332_v58  ;;  %v4597_v60 = vpop.f32.mrb[47].mxu0  ;;  %v4599_v23 = vpop.f32.mrb[47].mxu1  ;;  %3333 = vtanh.f32 %v606_v10 }
 0x1ab   : > { %v3316_v21 = vpop.eup %3315  ;;  %3335 = vtanh.f32 %v611_v16  ;;  %v616_v16 = vadd.f32 %v4332_v24, %v4471_v47 }
 0x1ac   : > { %v3318_v5 = vpop.eup %3317  ;;  %v1334_v33 = vmul.f32 %v3316_v21, %v4346_v46  ;;  %3337 = vtanh.f32 %v926_v15 }
 0x1ad   : > { %1417 = vadd.xlane.f32.xlu0 %v1269_v2  ;;  %v4606_v9 = vpop.f32.mrb[48].mxu0  ;;  %v4608_v54 = vpop.f32.mrb[48].mxu1  ;;  %v1271_v59 = vmul.f32 %v3318_v5, %v4346_v46  ;;  %3339 = vtanh.f32 %v931_v26  ;;  %v936_v26 = vadd.f32 %v4332_v24, %v4473_v48 }
 0x1ae   : > { %1419 = vadd.xlane.f32.xlu1 %v1270_v20  ;;  %v4611_v57 = vpop.f32.mrb[49].mxu0  ;;  %v4613_v58 = vpop.f32.mrb[49].mxu1  ;;  %3341 = vtanh.f32 %v616_v16 }
 0x1af   : > { %v3320_v22 = vpop.eup %3319  ;;  %3343 = vtanh.f32 %v621_v27  ;;  %v626_v27 = vadd.f32 %v4332_v24, %v4485_v61 }
 0x1b0   : > { %v3322_v0 = vpop.eup %3321  ;;  %v1272_v20 = vmul.f32 %v3320_v22, %v4346_v46  ;;  %3345 = vtanh.f32 %v936_v26 }
 0x1b1   : > { %1545 = vadd.xlane.f32.xlu0 %v1333_v31  ;;  %v4620_v6 = vpop.f32.mrb[50].mxu0  ;;  %v4622_v2 = vpop.f32.mrb[50].mxu1  ;;  %v1335_v31 = vmul.f32 %v3322_v0, %v4346_v46  ;;  %3347 = vtanh.f32 %v941_v40  ;;  %v946_v40 = vadd.f32 %v4332_v24, %v4487_v62 }
 0x1b2   : > { %6211 = vst [vmem:[#allocation14_spill] sm:$0xff] %v4622_v2  ;;  %1547 = vadd.xlane.f32.xlu1 %v1334_v33  ;;  %v4625_v21 = vpop.f32.mrb[51].mxu0  ;;  %v4627_v49 = vpop.f32.mrb[51].mxu1  ;;  %3349 = vtanh.f32 %v626_v27 }
 0x1b3   : > { %6212 = vst [vmem:[#allocation15_spill] sm:$0xff] %v4627_v49  ;;  %v3324_v34 = vpop.eup %3323  ;;  %3351 = vtanh.f32 %v631_v41  ;;  %v636_v41 = vadd.f32 %v4332_v24, %v4499_v11 }
 0x1b4   : > { %v3326_v22 = vpop.eup %3325  ;;  %v1336_v2 = vmul.f32 %v3324_v34, %v4346_v46  ;;  %3353 = vtanh.f32 %v946_v40 }
 0x1b5   : > { %1421 = vadd.xlane.f32.xlu0 %v1271_v59  ;;  %v4634_v5 = vpop.f32.mrb[52].mxu0  ;;  %v4636_v33 = vpop.f32.mrb[52].mxu1  ;;  %v1273_v59 = vmul.f32 %v3326_v22, %v4346_v46  ;;  %3355 = vtanh.f32 %v951_v55  ;;  %v956_v55 = vadd.f32 %v4332_v24, %v4501_v12  ;;  %v651_v12 = vadd.f32 %v4508_v18, %v4332_v24 }
 0x1b6   : > { %6213 = vst [vmem:[#allocation16_spill] sm:$0xff] %v4636_v33  ;;  %1423 = vadd.xlane.f32.xlu1 %v1272_v20  ;;  %v4639_v49 = vpop.f32.mrb[53].mxu0  ;;  %v4641_v10 = vpop.f32.mrb[53].mxu1  ;;  %3357 = vtanh.f32 %v636_v41 }
 0x1b7   : > { %6214 = vst [vmem:[#allocation17_spill] sm:$0xff] %v4641_v10  ;;  %v3328_v35 = vpop.eup %3327  ;;  %3359 = vtanh.f32 %v641_v56 }
 0x1b8   : > { %v3330_v34 = vpop.eup %3329  ;;  %v1274_v33 = vmul.f32 %v3328_v35, %v4346_v46  ;;  %3361 = vtanh.f32 %v956_v55 }
 0x1b9   : > { %1549 = vadd.xlane.f32.xlu0 %v1335_v31  ;;  %v4648_v0 = vpop.f32.mrb[54].mxu0  ;;  %v4650_v20 = vpop.f32.mrb[54].mxu1  ;;  %v1337_v31 = vmul.f32 %v3330_v34, %v4346_v46 }
 0x1ba   : > { %6215 = vst [vmem:[#allocation18_spill] sm:$0xff] %v4650_v20  ;;  %1551 = vadd.xlane.f32.xlu1 %v1336_v2  ;;  %v4653_v10 = vpop.f32.mrb[55].mxu0  ;;  %v4655_v15 = vpop.f32.mrb[55].mxu1 }
 0x1bb   : > { %6216 = vst [vmem:[#allocation19_spill] sm:$0xff] %v4655_v15  ;;  %v3332_v47 = vpop.eup %3331  ;;  %3363 = vtanh.f32 %v961_v3  ;;  %v656_v3 = vadd.f32 %v4332_v24, %v4527_v44  ;;  %v981_v44 = vadd.f32 %v4524_v36, %v4332_v24 }
 0x1bc   : > { %v3334_v35 = vpop.eup %3333  ;;  %v1338_v20 = vmul.f32 %v3332_v47, %v4346_v46 }
 0x1bd   : > { %1425 = vadd.xlane.f32.xlu0 %v1273_v59  ;;  %v4662_v22 = vpop.f32.mrb[56].mxu0  ;;  %v4664_v2 = vpop.f32.mrb[56].mxu1  ;;  %v1275_v59 = vmul.f32 %v3334_v35, %v4346_v46 }
 0x1be   : > { %6217 = vst [vmem:[#allocation20_spill] sm:$0xff] %v4664_v2  ;;  %1427 = vadd.xlane.f32.xlu1 %v1274_v33  ;;  %v4667_v15 = vpop.f32.mrb[57].mxu0  ;;  %v4669_v16 = vpop.f32.mrb[57].mxu1 }
 0x1bf   : > { %6218 = vst [vmem:[#allocation21_spill] sm:$0xff] %v4669_v16  ;;  %v3336_v48 = vpop.eup %3335 }
 0x1c0   : > { %v3338_v47 = vpop.eup %3337  ;;  %v1276_v2 = vmul.f32 %v3336_v48, %v4346_v46 }
 0x1c1   : > { %1553 = vadd.xlane.f32.xlu0 %v1337_v31  ;;  %v4676_v34 = vpop.f32.mrb[58].mxu0  ;;  %v4678_v33 = vpop.f32.mrb[58].mxu1  ;;  %v1339_v31 = vmul.f32 %v3338_v47, %v4346_v46 }
 0x1c2   : > { %6219 = vst [vmem:[#allocation22_spill] sm:$0xff] %v4678_v33  ;;  %1555 = vadd.xlane.f32.xlu1 %v1338_v20  ;;  %v4681_v16 = vpop.f32.mrb[59].mxu0  ;;  %v4683_v26 = vpop.f32.mrb[59].mxu1 }
 0x1c3   : > { %6220 = vst [vmem:[#allocation23_spill] sm:$0xff] %v4683_v26  ;;  %v3340_v61 = vpop.eup %3339 }
 0x1c4   : > { %v3342_v48 = vpop.eup %3341  ;;  %v1340_v33 = vmul.f32 %v3340_v61, %v4346_v46 }
 0x1c5   : > { %1429 = vadd.xlane.f32.xlu0 %v1275_v59  ;;  %v4690_v35 = vpop.f32.mrb[60].mxu0  ;;  %v4692_v20 = vpop.f32.mrb[60].mxu1  ;;  %v1277_v59 = vmul.f32 %v3342_v48, %v4346_v46 }
 0x1c6   : > { %6221 = vst [vmem:[#allocation24_spill] sm:$0xff] %v4692_v20  ;;  %1431 = vadd.xlane.f32.xlu1 %v1276_v2  ;;  %v4695_v26 = vpop.f32.mrb[61].mxu0  ;;  %v4697_v27 = vpop.f32.mrb[61].mxu1 }
 0x1c7   : > { %6222 = vst [vmem:[#allocation25_spill] sm:$0xff] %v4697_v27  ;;  %v3344_v62 = vpop.eup %3343 }
 0x1c8   : > { %v3346_v61 = vpop.eup %3345  ;;  %v1278_v20 = vmul.f32 %v3344_v62, %v4346_v46 }
 0x1c9   : > { %1557 = vadd.xlane.f32.xlu0 %v1339_v31  ;;  %v4704_v47 = vpop.f32.mrb[62].mxu0  ;;  %v4706_v2 = vpop.f32.mrb[62].mxu1  ;;  %v1341_v31 = vmul.f32 %v3346_v61, %v4346_v46 }
 0x1ca   : > { %6223 = vst [vmem:[#allocation26_spill] sm:$0xff] %v4706_v2  ;;  %1559 = vadd.xlane.f32.xlu1 %v1340_v33  ;;  %v4709_v27 = vpop.f32.mrb[63].mxu0  ;;  %v4711_v40 = vpop.f32.mrb[63].mxu1  ;;  %v646_v2 = vadd.f32 %v4332_v24, %v4513_v17  ;;  %v971_v17 = vadd.f32 %v4510_v19, %v4332_v24 }
 0x1cb   : > { %v3348_v11 = vpop.eup %3347 }
 0x1cc   : > { %v3350_v48 = vpop.eup %3349  ;;  %v1342_v33 = vmul.f32 %v3348_v11, %v4346_v46  ;;  %3365 = vtanh.f32 %v646_v2 }
 0x1cd   : > { %1433 = vadd.xlane.f32.xlu0 %v1277_v59  ;;  %v3352_v62 = vpop.eup %3351  ;;  %v1279_v41 = vmul.f32 %v3350_v48, %v4346_v46  ;;  %3367 = vtanh.f32 %v651_v12 }
 0x1ce   : > { %1435 = vadd.xlane.f32.xlu1 %v1278_v20  ;;  %v3354_v56 = vpop.eup %3353  ;;  %v1280_v4 = vmul.f32 %v3352_v62, %v4346_v46  ;;  %v966_v20 = vadd.f32 %v4332_v24, %v4515_v25  ;;  %v661_v25 = vadd.f32 %v4522_v32, %v4332_v24 }
 0x1cf   : > { %v3356_v59 = vpop.eup %3355  ;;  %v1343_v61 = vmul.f32 %v3354_v56, %v4346_v46  ;;  %v666_v56 = vadd.f32 %v4332_v24, %v4541_v42  ;;  %v991_v42 = vadd.f32 %v4538_v52, %v4332_v24 }
 0x1d0   : > { %v3358_v11 = vpop.eup %3357  ;;  %v1344_v18 = vmul.f32 %v3356_v59, %v4346_v46  ;;  %3369 = vtanh.f32 %v966_v20 }
 0x1d1   : > { %1561 = vadd.xlane.f32.xlu0 %v1341_v31  ;;  %v3360_v55 = vpop.eup %3359  ;;  %3371 = vtanh.f32 %v971_v17  ;;  %v1281_v2 = vmul.f32 %v3358_v11, %v4346_v46  ;;  %v986_v17 = vadd.f32 %v4332_v24, %v4543_v1  ;;  %v681_v1 = vadd.f32 %v4550_v7, %v4332_v24 }
 0x1d2   : > { %1563 = vadd.xlane.f32.xlu1 %v1342_v33  ;;  %v3362_v31 = vpop.eup %3361  ;;  %v1282_v19 = vmul.f32 %v3360_v55, %v4346_v46  ;;  %3373 = vtanh.f32 %v656_v3  ;;  %v976_v33 = vadd.f32 %v4332_v24, %v4529_v45  ;;  %v671_v45 = vadd.f32 %v4536_v29, %v4332_v24 }
 0x1d3   : > { %v3364_v48 = vpop.eup %3363  ;;  %3375 = vtanh.f32 %v661_v25  ;;  %v1345_v62 = vmul.f32 %v3362_v31, %v4346_v46  ;;  %v676_v55 = vadd.f32 %v4332_v24, %v4555_v39  ;;  %v4768_v39 = vld [vmem:[%s6161_s2] ss:$0 sm:$0xff] }
 0x1d4   : > { %v1346_v32 = vmul.f32 %v3364_v48, %v4346_v46  ;;  %3377 = vtanh.f32 %v976_v33  ;;  %v996_v24 = vadd.f32 %v4768_v39, %v4557_v14  ;;  %v1001_v7 = vadd.f32 %v4768_v39, %v4552_v8 }
 0x1d5   : > { %1437 = vadd.xlane.f32.xlu0 %v1279_v41  ;;  %3379 = vtanh.f32 %v981_v44  ;;  %v686_v14 = vadd.f32 %v4768_v39, %v4569_v28  ;;  %v691_v8 = vadd.f32 %v4768_v39, %v4564_v53  ;;  %v1006_v28 = vadd.f32 %v4768_v39, %v4571_v37 }
 0x1d6   : > { %1439 = vadd.xlane.f32.xlu1 %v1280_v4  ;;  %v3366_v12 = vpop.eup %3365  ;;  %3381 = vtanh.f32 %v666_v56  ;;  %v1011_v53 = vadd.f32 %v4768_v39, %v4566_v30  ;;  %v696_v30 = vadd.f32 %v4768_v39, %v4583_v63  ;;  %v1016_v63 = vadd.f32 %v4768_v39, %v4585_v38 }
 0x1d7   : > { %v3368_v41 = vpop.eup %3367  ;;  %v1283_v4 = vmul.f32 %v3366_v12, %v4346_v46  ;;  %3383 = vtanh.f32 %v671_v45  ;;  %v706_v38 = vadd.f32 %v4768_v39, %v4597_v60  ;;  %v1026_v60 = vadd.f32 %v4768_v39, %v4599_v23 }
 0x1d8   : > { %v1284_v36 = vmul.f32 %v3368_v41, %v4346_v46  ;;  %3385 = vtanh.f32 %v986_v17  ;;  %v716_v23 = vadd.f32 %v4768_v39, %v4611_v57  ;;  %v1036_v57 = vadd.f32 %v4768_v39, %v4613_v58 }
 0x1d9   : > { %1565 = vadd.xlane.f32.xlu0 %v1343_v61  ;;  %3387 = vtanh.f32 %v991_v42  ;;  %v726_v58 = vadd.f32 %v4768_v39, %v4625_v21 }
 0x1da   : > { %1567 = vadd.xlane.f32.xlu1 %v1344_v18  ;;  %v3370_v59 = vpop.eup %3369  ;;  %3389 = vtanh.f32 %v676_v55 }
 0x1db   : > { %v3372_v20 = vpop.eup %3371  ;;  %v1347_v61 = vmul.f32 %v3370_v59, %v4346_v46  ;;  %3391 = vtanh.f32 %v681_v1 }
 0x1dc   : > { %v3374_v11 = vpop.eup %3373  ;;  %v1348_v29 = vmul.f32 %v3372_v20, %v4346_v46  ;;  %3393 = vtanh.f32 %v996_v24  ;;  %v4797_v20 = vld [vmem:[%s6162_s3] ss:$0 sm:$0xff] }
 0x1dd   : > { %1441 = vadd.xlane.f32.xlu0 %v1281_v2  ;;  %v3376_v18 = vpop.eup %3375  ;;  %v1285_v3 = vmul.f32 %v3374_v11, %v4346_v46  ;;  %3395 = vtanh.f32 %v1001_v7 }
 0x1de   : > { %1443 = vadd.xlane.f32.xlu1 %v1282_v19  ;;  %v3378_v25 = vpop.eup %3377  ;;  %v1286_v2 = vmul.f32 %v3376_v18, %v4346_v46  ;;  %3397 = vtanh.f32 %v686_v14 }
 0x1df   : > { %v3380_v31 = vpop.eup %3379  ;;  %v1349_v48 = vmul.f32 %v3378_v25, %v4346_v46  ;;  %3399 = vtanh.f32 %v691_v8 }
 0x1e0   : > { %v3382_v33 = vpop.eup %3381  ;;  %3401 = vtanh.f32 %v1006_v28 }
 0x1e1   : > { %1569 = vadd.xlane.f32.xlu0 %v1345_v62  ;;  %v1350_v62 = vmul.f32 %v3380_v31, %v4346_v46  ;;  %v3384_v12 = vpop.eup %3383  ;;  %v1287_v41 = vmul.f32 %v3382_v33, %v4346_v46  ;;  %3403 = vtanh.f32 %v1011_v53 }
 0x1e2   : > { %1571 = vadd.xlane.f32.xlu1 %v1346_v32  ;;  %v3386_v56 = vpop.eup %3385  ;;  %3405 = vtanh.f32 %v696_v30 }
 0x1e3   : > { %v3388_v59 = vpop.eup %3387  ;;  %v1351_v17 = vmul.f32 %v4797_v20, %v3386_v56 }
 0x1e5   : > { %1445 = vadd.xlane.f32.xlu0 %v1283_v4  ;;  %v1288_v4 = vmul.f32 %v3384_v12, %v4346_v46  ;;  %v3390_v46 = vpop.eup %3389 }
 0x1e6   : > { %1447 = vadd.xlane.f32.xlu1 %v1284_v36  ;;  %v3392_v11 = vpop.eup %3391  ;;  %v1289_v18 = vmul.f32 %v4797_v20, %v3390_v46 }
 0x1e7   : > { %v3394_v55 = vpop.eup %3393 }
 0x1e8   : > { %v3396_v25 = vpop.eup %3395  ;;  %v1353_v31 = vmul.f32 %v4797_v20, %v3394_v55 }
 0x1e9   : > { %1573 = vadd.xlane.f32.xlu0 %v1347_v61  ;;  %v1352_v61 = vmul.f32 %v4797_v20, %v3388_v59  ;;  %v3398_v24 = vpop.eup %3397 }
 0x1ea   : > { %1575 = vadd.xlane.f32.xlu1 %v1348_v29  ;;  %v4760_v52 = vpop.xlane.xlu0 %1379  ;;  %v701_v29 = vadd.f32 %v4768_v39, %v4578_v50  ;;  %v1021_v50 = vadd.f32 %v4768_v39, %v4580_v51  ;;  %v3400_v33 = vpop.eup %3399  ;;  %v711_v51 = vadd.f32 %v4768_v39, %v4592_v43  ;;  %v1291_v12 = vmul.f32 %v4797_v20, %v3398_v24 }
 0x1eb   : > { %v4763_v19 = vpop.xlane.xlu1 %1507  ;;  %v3402_v14 = vpop.eup %3401  ;;  %v1031_v43 = vadd.f32 %v4768_v39, %v4594_v13  ;;  %v721_v13 = vadd.f32 %v4768_v39, %v4606_v9  ;;  %v1041_v9 = vadd.f32 %v4768_v39, %v4608_v54  ;;  %v731_v54 = vadd.f32 %v4768_v39, %v4620_v6 }
 0x1ec   : > { %3407 = vtanh.f32 %v701_v29  ;;  %v3404_v56 = vpop.eup %3403  ;;  %v1355_v59 = vmul.f32 %v4797_v20, %v3402_v14 }
 0x1ed   : > { %1449 = vadd.xlane.f32.xlu0 %v1285_v3  ;;  %v1290_v3 = vmul.f32 %v4797_v20, %v3392_v11  ;;  %3409 = vtanh.f32 %v1016_v63  ;;  %v3406_v28 = vpop.eup %3405 }
 0x1ee   : > { %1451 = vadd.xlane.f32.xlu1 %v1286_v2  ;;  %v4775_v44 = vpop.xlane.xlu0 %1377  ;;  %3411 = vtanh.f32 %v1021_v50  ;;  %v1293_v11 = vmul.f32 %v4797_v20, %v3406_v28 }
 0x1ef   : > { %v4778_v32 = vpop.xlane.xlu1 %1383  ;;  %3413 = vtanh.f32 %v706_v38 }
 0x1f0   : > { %3415 = vtanh.f32 %v711_v51 }
 0x1f1   : > { %1577 = vadd.xlane.f32.xlu0 %v1349_v48  ;;  %v1354_v48 = vmul.f32 %v4797_v20, %v3396_v25  ;;  %3417 = vtanh.f32 %v1026_v60  ;;  %v6225_v60 = vld [vmem:[#allocation14_spill] sm:$0xff] }
 0x1f2   : > { %1579 = vadd.xlane.f32.xlu1 %v1350_v62  ;;  %v4785_v45 = vpop.xlane.xlu0 %1505  ;;  %3419 = vtanh.f32 %v1031_v43  ;;  %v1051_v6 = vadd.f32 %v4768_v39, %v6225_v60 }
 0x1f3   : > { %v4788_v36 = vpop.xlane.xlu1 %1511  ;;  %3421 = vtanh.f32 %v716_v23 }
 0x1f4   : > { %3423 = vtanh.f32 %v721_v13  ;;  %v736_v13 = vadd.f32 %v4768_v39, %v4639_v49 }
 0x1f5   : > { %1453 = vadd.xlane.f32.xlu0 %v1287_v41  ;;  %v1292_v41 = vmul.f32 %v4797_v20, %v3400_v33  ;;  %3425 = vtanh.f32 %v1036_v57 }
 0x1f6   : > { %1455 = vadd.xlane.f32.xlu1 %v1288_v4  ;;  %v4800_v42 = vpop.xlane.xlu0 %1509  ;;  %v3408_v46 = vpop.eup %3407  ;;  %3427 = vtanh.f32 %v1041_v9 }
 0x1f7   : > { %v4803_v37 = vpop.xlane.xlu1 %1381  ;;  %v3410_v30 = vpop.eup %3409  ;;  %3429 = vtanh.f32 %v726_v58 }
 0x1f8   : > { %v3412_v55 = vpop.eup %3411  ;;  %v1357_v25 = vmul.f32 %v4797_v20, %v3410_v30  ;;  %3431 = vtanh.f32 %v731_v54 }
 0x1f9   : > { %1581 = vadd.xlane.f32.xlu0 %v1351_v17  ;;  %v1356_v17 = vmul.f32 %v4797_v20, %v3404_v56  ;;  %v3414_v63 = vpop.eup %3413  ;;  %v6224_v56 = vld [vmem:[#allocation15_spill] sm:$0xff] }
 0x1fa   : > { %1583 = vadd.xlane.f32.xlu1 %v1352_v61  ;;  %v4810_v1 = vpop.xlane.xlu0 %1385  ;;  %v3416_v24 = vpop.eup %3415  ;;  %v1295_v33 = vmul.f32 %v4797_v20, %v3414_v63  ;;  %v1046_v21 = vadd.f32 %v4768_v39, %v6224_v56  ;;  %v6226_v63 = vld [vmem:[#allocation17_spill] sm:$0xff]  ;;  %v751_v56 = vadd.f32 %v4768_v39, %v4648_v0 }
 0x1fb   : > { %v4813_v2 = vpop.xlane.xlu1 %1387  ;;  %v3418_v38 = vpop.eup %3417  ;;  %v1056_v49 = vadd.f32 %v4768_v39, %v6226_v63 }
 0x1fc   : > { %v3420_v14 = vpop.eup %3419  ;;  %v1359_v43 = vmul.f32 %v4797_v20, %v3418_v38  ;;  %3433 = vtanh.f32 %v1046_v21 }
 0x1fd   : > { %1457 = vadd.xlane.f32.xlu0 %v1289_v18  ;;  %v1294_v18 = vmul.f32 %v4797_v20, %v3408_v46  ;;  %3435 = vtanh.f32 %v1051_v6 }
 0x1fe   : > { %1459 = vadd.xlane.f32.xlu1 %v1290_v3  ;;  %v4820_v7 = vpop.xlane.xlu0 %1513  ;;  %3437 = vtanh.f32 %v736_v13  ;;  %v6229_v13 = vld [vmem:[#allocation18_spill] sm:$0xff] }
 0x1ff   : > { %v4823_v62 = vpop.xlane.xlu1 %1515  ;;  %v1071_v0 = vadd.f32 %v4768_v39, %v6229_v13 }
 0x201   : > { %1585 = vadd.xlane.f32.xlu0 %v1353_v31  ;;  %v1358_v31 = vmul.f32 %v4797_v20, %v3412_v55 }
 0x202   : > { %1587 = vadd.xlane.f32.xlu1 %v1354_v48  ;;  %v4830_v8 = vpop.xlane.xlu0 %1389 }
 0x203   : > { %v4833_v4 = vpop.xlane.xlu1 %1391 }
 0x205   : > { %1461 = vadd.xlane.f32.xlu0 %v1291_v12  ;;  %v1296_v12 = vmul.f32 %v4797_v20, %v3416_v24 }
 0x206   : > { %1463 = vadd.xlane.f32.xlu1 %v1292_v41  ;;  %v4840_v53 = vpop.xlane.xlu0 %1517 }
 0x207   : > { %v4843_v61 = vpop.xlane.xlu1 %1519 }
 0x209   : > { %1589 = vadd.xlane.f32.xlu0 %v1355_v59  ;;  %v3422_v59 = vpop.eup %3421 }
 0x20a   : > { %1591 = vadd.xlane.f32.xlu1 %v1356_v17  ;;  %v4850_v29 = vpop.xlane.xlu0 %1393  ;;  %v1360_v17 = vmul.f32 %v4797_v20, %v3420_v14  ;;  %v3424_v46 = vpop.eup %3423  ;;  %v1297_v30 = vmul.f32 %v4797_v20, %v3422_v59  ;;  %v746_v14 = vadd.f32 %v4768_v39, %v4653_v10 }
 0x20b   : > { %v4853_v3 = vpop.xlane.xlu1 %1395  ;;  %v1298_v57 = vmul.f32 %v4797_v20, %v3424_v46  ;;  %v6228_v46 = vld [vmem:[#allocation19_spill] sm:$0xff] }
 0x20c   : > { %v1066_v10 = vadd.f32 %v4768_v39, %v6228_v46 }
 0x20d   : > { %1465 = vadd.xlane.f32.xlu0 %v1293_v11  ;;  %v741_v11 = vadd.f32 %v4768_v39, %v4634_v5 }
 0x20e   : > { %1467 = vadd.xlane.f32.xlu1 %v1294_v18  ;;  %v4860_v50 = vpop.xlane.xlu0 %1521  ;;  %v3426_v18 = vpop.eup %3425 }
 0x20f   : > { %v4863_v48 = vpop.xlane.xlu1 %1523  ;;  %v3428_v9 = vpop.eup %3427  ;;  %3439 = vtanh.f32 %v741_v11  ;;  %v1361_v24 = vmul.f32 %v4797_v20, %v3426_v18 }
 0x210   : > { %v3430_v58 = vpop.eup %3429  ;;  %3441 = vtanh.f32 %v1056_v49  ;;  %v756_v49 = vadd.f32 %v4768_v39, %v4667_v15 }
 0x211   : > { %1593 = vadd.xlane.f32.xlu0 %v1357_v25  ;;  %v3432_v38 = vpop.eup %3431  ;;  %v1299_v21 = vmul.f32 %v4797_v20, %v3430_v58 }
 0x212   : > { %1595 = vadd.xlane.f32.xlu1 %v1358_v31  ;;  %v4870_v51 = vpop.xlane.xlu0 %1397  ;;  %v6227_v31 = vld [vmem:[#allocation16_spill] sm:$0xff]  ;;  %v3434_v60 = vpop.eup %3433 }
 0x213   : > { %v4873_v41 = vpop.xlane.xlu1 %1399  ;;  %v1061_v5 = vadd.f32 %v4768_v39, %v6227_v31  ;;  %v3436_v59 = vpop.eup %3435  ;;  %v1363_v11 = vmul.f32 %v4797_v20, %v3434_v60  ;;  %v761_v31 = vadd.f32 %v4768_v39, %v4662_v22 }
 0x215   : > { %1469 = vadd.xlane.f32.xlu0 %v1295_v33  ;;  %v1362_v33 = vmul.f32 %v4797_v20, %v3428_v9  ;;  %3443 = vtanh.f32 %v1061_v5 }
 0x216   : > { %1471 = vadd.xlane.f32.xlu1 %v1296_v12  ;;  %v4880_v28 = vpop.xlane.xlu0 %1525  ;;  %3445 = vtanh.f32 %v746_v14 }
 0x217   : > { %v4883_v23 = vpop.xlane.xlu1 %1527  ;;  %3447 = vtanh.f32 %v751_v56  ;;  %v6231_v56 = vld [vmem:[#allocation21_spill] sm:$0xff] }
 0x218   : > { %3449 = vtanh.f32 %v1066_v10  ;;  %v1076_v15 = vadd.f32 %v4768_v39, %v6231_v56 }
 0x219   : > { %1597 = vadd.xlane.f32.xlu0 %v1359_v43  ;;  %v1300_v43 = vmul.f32 %v4797_v20, %v3432_v38  ;;  %3451 = vtanh.f32 %v1071_v0  ;;  %v766_v0 = vadd.f32 %v4768_v39, %v4681_v16 }
 0x21a   : > { %1599 = vadd.xlane.f32.xlu1 %v1360_v17  ;;  %v4890_v55 = vpop.xlane.xlu0 %1401  ;;  %3453 = vtanh.f32 %v756_v49 }
 0x21b   : > { %v4893_v25 = vpop.xlane.xlu1 %1403  ;;  %3455 = vtanh.f32 %v761_v31 }
 0x21c   : > { %3457 = vtanh.f32 %v1076_v15 }
 0x21d   : > { %1473 = vadd.xlane.f32.xlu0 %v1297_v30  ;;  %v3438_v30 = vpop.eup %3437 }
 0x21e   : > { %1475 = vadd.xlane.f32.xlu1 %v1298_v57  ;;  %v4900_v54 = vpop.xlane.xlu0 %1529  ;;  %v1364_v57 = vmul.f32 %v4797_v20, %v3436_v59  ;;  %v3440_v9 = vpop.eup %3439  ;;  %v1301_v5 = vmul.f32 %v4797_v20, %v3438_v30 }
 0x21f   : > { %v4903_v12 = vpop.xlane.xlu1 %1531 }
 0x221   : > { %1601 = vadd.xlane.f32.xlu0 %v1361_v24  ;;  %v3442_v24 = vpop.eup %3441 }
 0x222   : > { %1603 = vadd.xlane.f32.xlu1 %v1362_v33  ;;  %v4910_v6 = vpop.xlane.xlu0 %1405  ;;  %v1302_v33 = vmul.f32 %v4797_v20, %v3440_v9  ;;  %v3444_v38 = vpop.eup %3443  ;;  %v1365_v60 = vmul.f32 %v4797_v20, %v3442_v24  ;;  %v6237_v24 = vld [vmem:[#allocation23_spill] sm:$0xff] }
 0x223   : > { %v4913_v17 = vpop.xlane.xlu1 %1407  ;;  %v1366_v46 = vmul.f32 %v4797_v20, %v3444_v38  ;;  %v1086_v16 = vadd.f32 %v4768_v39, %v6237_v24  ;;  %v6244_v24 = vld [vmem:[#allocation24_spill] sm:$0xff] }
 0x225   : > { %1477 = vadd.xlane.f32.xlu0 %v1299_v21  ;;  %v6232_v21 = vld [vmem:[#allocation20_spill] sm:$0xff] }
 0x226   : > { %1479 = vadd.xlane.f32.xlu1 %v1300_v43  ;;  %v4920_v18 = vpop.xlane.xlu0 %1533  ;;  %v1081_v22 = vadd.f32 %v4768_v39, %v6232_v21  ;;  %v3446_v43 = vpop.eup %3445 }
 0x227   : > { %v4923_v63 = vpop.xlane.xlu1 %1535  ;;  %v3448_v10 = vpop.eup %3447  ;;  %v1303_v30 = vmul.f32 %v4797_v20, %v3446_v43  ;;  %v776_v43 = vadd.f32 %v4768_v39, %v4695_v26 }
 0x228   : > { %3459 = vtanh.f32 %v1081_v22  ;;  %v1304_v49 = vmul.f32 %v4797_v20, %v3448_v10 }
 0x229   : > { %1605 = vadd.xlane.f32.xlu0 %v1363_v11  ;;  %v771_v11 = vadd.f32 %v4768_v39, %v4676_v34  ;;  %3461 = vtanh.f32 %v766_v0 }
 0x22a   : > { %1607 = vadd.xlane.f32.xlu1 %v1364_v57  ;;  %v4930_v58 = vpop.xlane.xlu0 %1409  ;;  %v3450_v57 = vpop.eup %3449 }
 0x22b   : > { %6230 = vst [vmem:[#allocation15_spill] sm:$0xff] %v4930_v58  ;;  %v4933_v14 = vpop.xlane.xlu1 %1411  ;;  %v3452_v31 = vpop.eup %3451  ;;  %3463 = vtanh.f32 %v771_v11  ;;  %v1367_v38 = vmul.f32 %v4797_v20, %v3450_v57 }
 0x22c   : > { %v3454_v56 = vpop.eup %3453  ;;  %v1368_v21 = vmul.f32 %v4797_v20, %v3452_v31  ;;  %3465 = vtanh.f32 %v1086_v16  ;;  %v6243_v31 = vld [vmem:[#allocation25_spill] sm:$0xff] }
 0x22d   : > { %1481 = vadd.xlane.f32.xlu0 %v1301_v5  ;;  %v3456_v22 = vpop.eup %3455  ;;  %v1305_v10 = vmul.f32 %v4797_v20, %v3454_v56  ;;  %v1096_v26 = vadd.f32 %v4768_v39, %v6243_v31 }
 0x22e   : > { %1483 = vadd.xlane.f32.xlu1 %v1302_v33  ;;  %v4940_v59 = vpop.xlane.xlu0 %1537  ;;  %v6238_v33 = vld [vmem:[#allocation22_spill] sm:$0xff]  ;;  %v3458_v0 = vpop.eup %3457 }
 0x22f   : > { %6233 = vst [vmem:[#allocation14_spill] sm:$0xff] %v4940_v59  ;;  %v4943_v13 = vpop.xlane.xlu1 %1539  ;;  %v1091_v34 = vadd.f32 %v4768_v39, %v6238_v33  ;;  %v1369_v16 = vmul.f32 %v4797_v20, %v3458_v0 }
 0x230   : > { %6234 = vst [vmem:[#allocation17_spill] sm:$0xff] %v4943_v13 }
 0x231   : > { %1609 = vadd.xlane.f32.xlu0 %v1365_v60  ;;  %3467 = vtanh.f32 %v1091_v34 }
 0x232   : > { %1611 = vadd.xlane.f32.xlu1 %v1366_v46  ;;  %v4950_v9 = vpop.xlane.xlu0 %1413  ;;  %v781_v46 = vadd.f32 %v4768_v39, %v4690_v35  ;;  %v3460_v57 = vpop.eup %3459  ;;  %3469 = vtanh.f32 %v776_v43  ;;  %v1101_v35 = vadd.f32 %v4768_v39, %v6244_v24  ;;  %v791_v43 = vadd.f32 %v4768_v39, %v4704_v47 }
 0x233   : > { %6235 = vst [vmem:[#allocation16_spill] sm:$0xff] %v4950_v9  ;;  %v4953_v5 = vpop.xlane.xlu1 %1415  ;;  %v3462_v33 = vpop.eup %3461 }
 0x234   : > { %6236 = vst [vmem:[#allocation19_spill] sm:$0xff] %v4953_v5  ;;  %3471 = vtanh.f32 %v781_v46  ;;  %v1307_v46 = vmul.f32 %v4797_v20, %v3462_v33 }
 0x235   : > { %1485 = vadd.xlane.f32.xlu0 %v1303_v30  ;;  %v1306_v30 = vmul.f32 %v4797_v20, %v3456_v22  ;;  %v3464_v56 = vpop.eup %3463  ;;  %3473 = vtanh.f32 %v1096_v26  ;;  %v786_v22 = vadd.f32 %v4768_v39, %v4709_v27  ;;  %v1106_v27 = vadd.f32 %v4768_v39, %v4711_v40  ;;  %v6249_v26 = vld [vmem:[#allocation26_spill] sm:$0xff] }
 0x236   : > { %1487 = vadd.xlane.f32.xlu1 %v1304_v49  ;;  %v4960_v15 = vpop.xlane.xlu0 %1541  ;;  %3475 = vtanh.f32 %v1101_v35  ;;  %v1111_v47 = vadd.f32 %v4768_v39, %v6249_v26 }
 0x237   : > { %6239 = vst [vmem:[#allocation18_spill] sm:$0xff] %v4960_v15  ;;  %v4963_v60 = vpop.xlane.xlu1 %1543  ;;  %3477 = vtanh.f32 %v786_v22 }
 0x238   : > { %6240 = vst [vmem:[#allocation21_spill] sm:$0xff] %v4963_v60  ;;  %3479 = vtanh.f32 %v791_v43 }
 0x239   : > { %1613 = vadd.xlane.f32.xlu0 %v1367_v38  ;;  %v1370_v38 = vmul.f32 %v4797_v20, %v3460_v57  ;;  %3481 = vtanh.f32 %v1106_v27 }
 0x23a   : > { %1615 = vadd.xlane.f32.xlu1 %v1368_v21  ;;  %v4970_v11 = vpop.xlane.xlu0 %1417  ;;  %3483 = vtanh.f32 %v1111_v47 }
 0x23b   : > { %6241 = vst [vmem:[#allocation20_spill] sm:$0xff] %v4970_v11  ;;  %v4973_v49 = vpop.xlane.xlu1 %1419 }
 0x23c   : > { %6242 = vst [vmem:[#allocation23_spill] sm:$0xff] %v4973_v49 }
 0x23d   : > { %1489 = vadd.xlane.f32.xlu0 %v1305_v10  ;;  %v3466_v10 = vpop.eup %3465 }
 0x23e   : > { %1491 = vadd.xlane.f32.xlu1 %v1306_v30  ;;  %v4980_v34 = vpop.xlane.xlu0 %1545  ;;  %v1308_v30 = vmul.f32 %v4797_v20, %v3464_v56  ;;  %v3468_v57 = vpop.eup %3467  ;;  %v1371_v24 = vmul.f32 %v4797_v20, %v3466_v10 }
 0x23f   : > { %6245 = vst [vmem:[#allocation22_spill] sm:$0xff] %v4980_v34  ;;  %v4983_v21 = vpop.xlane.xlu1 %1547  ;;  %v3470_v35 = vpop.eup %3469  ;;  %v1372_v33 = vmul.f32 %v4797_v20, %v3468_v57 }
 0x240   : > { %6246 = vst [vmem:[#allocation25_spill] sm:$0xff] %v4983_v21  ;;  %v1309_v40 = vmul.f32 %v4797_v20, %v3470_v35 }
 0x241   : > { %1617 = vadd.xlane.f32.xlu0 %v1369_v16 }
 0x242   : > { %1619 = vadd.xlane.f32.xlu1 %v1370_v38  ;;  %v4990_v0 = vpop.xlane.xlu0 %1421  ;;  %v3472_v38 = vpop.eup %3471 }
 0x243   : > { %6247 = vst [vmem:[#allocation24_spill] sm:$0xff] %v4990_v0  ;;  %v4993_v31 = vpop.xlane.xlu1 %1423  ;;  %v3474_v22 = vpop.eup %3473  ;;  %v1310_v39 = vmul.f32 %v4797_v20, %v3472_v38 }
 0x244   : > { %6248 = vst [vmem:[#allocation27_spill] sm:$0xff] %v4993_v31 }
 0x245   : > { %1493 = vadd.xlane.f32.xlu0 %v1307_v46  ;;  %v3476_v46 = vpop.eup %3475 }
 0x246   : > { %1495 = vadd.xlane.f32.xlu1 %v1308_v30  ;;  %v5000_v16 = vpop.xlane.xlu0 %1549  ;;  %v1373_v30 = vmul.f32 %v4797_v20, %v3474_v22  ;;  %v3478_v57 = vpop.eup %3477  ;;  %v1374_v27 = vmul.f32 %v4797_v20, %v3476_v46 }
 0x247   : > { %6250 = vst [vmem:[#allocation26_spill] sm:$0xff] %v5000_v16  ;;  %v5003_v56 = vpop.xlane.xlu1 %1551  ;;  %v3480_v47 = vpop.eup %3479  ;;  %v1311_v35 = vmul.f32 %v4797_v20, %v3478_v57 }
 0x248   : > { %6251 = vst [vmem:[#allocation28_spill] sm:$0xff] %v5003_v56 }
 0x249   : > { %1621 = vadd.xlane.f32.xlu0 %v1371_v24 }
 0x24a   : > { %1623 = vadd.xlane.f32.xlu1 %v1372_v33  ;;  %v5006_v43 = vpop.xlane.xlu0 %1425  ;;  %v3482_v33 = vpop.eup %3481 }
 0x24b   : > { %6252 = vst [vmem:[#allocation29_spill] sm:$0xff] %v5006_v43  ;;  %v5009_v10 = vpop.xlane.xlu1 %1427  ;;  %v3484_v43 = vpop.eup %3483 }
 0x24c   : > { %6253 = vst [vmem:[#allocation30_spill] sm:$0xff] %v5009_v10 }
 0x24d   : > { %1497 = vadd.xlane.f32.xlu0 %v1309_v40  ;;  %v1312_v40 = vmul.f32 %v4797_v20, %v3480_v47 }
 0x24e   : > { %1499 = vadd.xlane.f32.xlu1 %v1310_v39  ;;  %v5012_v26 = vpop.xlane.xlu0 %1553  ;;  %v1375_v39 = vmul.f32 %v4797_v20, %v3482_v33 }
 0x24f   : > { %6254 = vst [vmem:[#allocation31_spill] sm:$0xff] %v5012_v26  ;;  %v5015_v24 = vpop.xlane.xlu1 %1555  ;;  %v1376_v26 = vmul.f32 %v4797_v20, %v3484_v43 }
 0x250   : > { %6255 = vst [vmem:[#allocation32_spill] sm:$0xff] %v5015_v24 }
 0x251   : > { %1625 = vadd.xlane.f32.xlu0 %v1373_v30 }
 0x252   : > { %1627 = vadd.xlane.f32.xlu1 %v1374_v27  ;;  %v5018_v38 = vpop.xlane.xlu0 %1429 }
 0x253   : > { %6256 = vst [vmem:[#allocation33_spill] sm:$0xff] %v5018_v38  ;;  %v5021_v22 = vpop.xlane.xlu1 %1431 }
 0x254   : > { %6257 = vst [vmem:[#allocation34_spill] sm:$0xff] %v5021_v22 }
 0x255   : > { %1501 = vadd.xlane.f32.xlu0 %v1311_v35 }
 0x256   : > { %1503 = vadd.xlane.f32.xlu1 %v1312_v40  ;;  %v5024_v46 = vpop.xlane.xlu0 %1557 }
 0x257   : > { %6258 = vst [vmem:[#allocation35_spill] sm:$0xff] %v5024_v46  ;;  %v5027_v30 = vpop.xlane.xlu1 %1559 }
 0x258   : > { %6259 = vst [vmem:[#allocation36_spill] sm:$0xff] %v5027_v30 }
 0x259   : > { %1629 = vadd.xlane.f32.xlu0 %v1375_v39 }
 0x25a   : > { %1631 = vadd.xlane.f32.xlu1 %v1376_v26  ;;  %v5029_v57 = vpop.xlane.xlu0 %1433 }
 0x25b   : > { %6260 = vst [vmem:[#allocation37_spill] sm:$0xff] %v5029_v57  ;;  %v5031_v27 = vpop.xlane.xlu1 %1435 }
 0x25c   : > { %6261 = vst [vmem:[#allocation38_spill] sm:$0xff] %v5031_v27 }
 0x25e   : > { %v5033_v47 = vpop.xlane.xlu0 %1561 }
 0x25f   : > { %6262 = vst [vmem:[#allocation39_spill] sm:$0xff] %v5033_v47  ;;  %v5035_v38 = vpop.xlane.xlu1 %1563 }
 0x260   : > { %6263 = vst [vmem:[#allocation40_spill] sm:$0xff] %v5035_v38 }
 0x262   : > { %v5037_v35 = vpop.xlane.xlu0 %1437 }
 0x263   : > { %6264 = vst [vmem:[#allocation41_spill] sm:$0xff] %v5037_v35  ;;  %v5039_v33 = vpop.xlane.xlu1 %1439 }
 0x264   : > { %6265 = vst [vmem:[#allocation42_spill] sm:$0xff] %v5039_v33 }
 0x266   : > { %v5041_v40 = vpop.xlane.xlu0 %1565 }
 0x267   : > { %6266 = vst [vmem:[#allocation43_spill] sm:$0xff] %v5041_v40  ;;  %v5043_v46 = vpop.xlane.xlu1 %1567 }
 0x268   : > { %6267 = vst [vmem:[#allocation44_spill] sm:$0xff] %v5043_v46 }
 0x26a   : > { %v1442_v20 = vpop.xlane.xlu0 %1441 }
 0x26b   : > { %v1444_v43 = vpop.xlane.xlu1 %1443  ;;  %v1633_v26 = vmax.f32 %v4775_v44, %v1442_v20 }
 0x26c   : > { %v1636_v39 = vmax.f32 %v4760_v52, %v1444_v43 }
 0x26d   : > { %v1634_v57 = vmax.f32 %v1633_v26, %v4785_v45 }
 0x26e   : > { %v1637_v47 = vmax.f32 %v1636_v39, %v4763_v19  ;;  %v1570_v30 = vpop.xlane.xlu0 %1569 }
 0x26f   : > { %v1572_v38 = vpop.xlane.xlu1 %1571  ;;  %v1635_v27 = vmax.f32 %v1634_v57, %v1570_v30 }
 0x270   : > { %v1638_v35 = vmax.f32 %v1637_v47, %v1572_v38 }
 0x271   : > { %v1729_v33 = vsub.f32 %v4775_v44, %v1635_v27  ;;  %v1761_v22 = vsub.f32 %v1442_v20, %v1635_v27  ;;  %v1793_v56 = vsub.f32 %v4785_v45, %v1635_v27  ;;  %v1825_v0 = vsub.f32 %v1570_v30, %v1635_v27 }
 0x272   : > { %v1730_v40 = vsub.f32 %v4760_v52, %v1638_v35  ;;  %v1762_v46 = vsub.f32 %v1444_v43, %v1638_v35  ;;  %v1794_v24 = vsub.f32 %v4763_v19, %v1638_v35  ;;  %v1826_v16 = vsub.f32 %v1572_v38, %v1638_v35  ;;  %v1446_v10 = vpop.xlane.xlu0 %1445 }
 0x273   : > { %v1857_v26 = vmul.f32 1.442695, %v1729_v33  ;;  %v1448_v34 = vpop.xlane.xlu1 %1447  ;;  %v1639_v39 = vmax.f32 %v4803_v37, %v1446_v10  ;;  %v1921_v19 = vmul.f32 1.442695, %v1761_v22  ;;  %v1985_v45 = vmul.f32 1.442695, %v1793_v56 }
 0x274   : > { %v1859_v31 = vmul.f32 1.442695, %v1730_v40  ;;  %v1923_v57 = vmul.f32 1.442695, %v1762_v46  ;;  %v1987_v47 = vmul.f32 1.442695, %v1794_v24  ;;  %v1642_v44 = vmax.f32 %v4778_v32, %v1448_v34 }
 0x275   : > { %v2051_v20 = vmul.f32 1.442695, %v1826_v16  ;;  %3485 = vpow2.f32 %v1857_v26  ;;  %v1640_v52 = vmax.f32 %v1639_v39, %v4800_v42  ;;  %v2049_v33 = vmul.f32 1.442695, %v1825_v0 }
 0x276   : > { %3487 = vpow2.f32 %v1859_v31  ;;  %v1643_v38 = vmax.f32 %v1642_v44, %v4788_v36  ;;  %v1574_v35 = vpop.xlane.xlu0 %1573 }
 0x277   : > { %3489 = vpow2.f32 %v1923_v57  ;;  %v1576_v30 = vpop.xlane.xlu1 %1575  ;;  %v1641_v27 = vmax.f32 %v1640_v52, %v1574_v35 }
 0x278   : > { %3491 = vpow2.f32 %v1987_v47  ;;  %v1644_v40 = vmax.f32 %v1643_v38, %v1576_v30 }
 0x279   : > { %3493 = vpow2.f32 %v2051_v20  ;;  %v1731_v24 = vsub.f32 %v4803_v37, %v1641_v27  ;;  %v1763_v46 = vsub.f32 %v1446_v10, %v1641_v27  ;;  %v1795_v16 = vsub.f32 %v4800_v42, %v1641_v27 }
 0x27a   : > { %3495 = vpow2.f32 %v1921_v19  ;;  %v1732_v31 = vsub.f32 %v4778_v32, %v1644_v40  ;;  %v1764_v22 = vsub.f32 %v1448_v34, %v1644_v40  ;;  %v1796_v43 = vsub.f32 %v4788_v36, %v1644_v40  ;;  %v5061_v26 = vpop.xlane.xlu0 %1449 }
 0x27b   : > { %3497 = vpow2.f32 %v1985_v45  ;;  %v1828_v56 = vsub.f32 %v1576_v30, %v1644_v40  ;;  %v1827_v39 = vsub.f32 %v1574_v35, %v1641_v27  ;;  %v1861_v57 = vmul.f32 1.442695, %v1731_v24  ;;  %v1452_v0 = vpop.xlane.xlu1 %1451 }
 0x27c   : > { %3499 = vpow2.f32 %v2049_v33  ;;  %v1863_v47 = vmul.f32 1.442695, %v1732_v31  ;;  %v1927_v44 = vmul.f32 1.442695, %v1764_v22  ;;  %v1991_v37 = vmul.f32 1.442695, %v1796_v43 }
 0x27d   : > { %v2055_v10 = vmul.f32 1.442695, %v1828_v56  ;;  %3501 = vpow2.f32 %v1861_v57  ;;  %v1925_v42 = vmul.f32 1.442695, %v1763_v46  ;;  %v1648_v32 = vmax.f32 %v4813_v2, %v1452_v0 }
 0x27e   : > { %3503 = vpow2.f32 %v1863_v47  ;;  %v1645_v36 = vmax.f32 %v4810_v1, %v5061_v26  ;;  %v1578_v34 = vpop.xlane.xlu0 %1577  ;;  %v1989_v52 = vmul.f32 1.442695, %v1795_v16  ;;  %v2053_v35 = vmul.f32 1.442695, %v1827_v39 }
 0x27f   : > { %v5066_v20 = vpop.eup %3485  ;;  %3505 = vpow2.f32 %v1927_v44  ;;  %v1580_v19 = vpop.xlane.xlu1 %1579  ;;  %v1649_v45 = vmax.f32 %v1648_v32, %v4823_v62 }
 0x280   : > { %v5068_v38 = vpop.eup %3487  ;;  %3507 = vpow2.f32 %v1991_v37  ;;  %v1646_v30 = vmax.f32 %v1645_v36, %v4820_v7 }
 0x281   : > { %v5072_v27 = vpop.eup %3489  ;;  %3509 = vpow2.f32 %v2055_v10  ;;  %v1650_v24 = vmax.f32 %v1649_v45, %v1580_v19 }
 0x282   : > { %v5074_v33 = vpop.eup %3491  ;;  %v2116_v40 = vadd.f32 %v5072_v27, %v5068_v38  ;;  %3511 = vpow2.f32 %v1925_v42  ;;  %v1647_v46 = vmax.f32 %v1646_v30, %v1578_v34  ;;  %v5078_v16 = vpop.xlane.xlu0 %1453 }
 0x283   : > { %v5080_v31 = vpop.eup %3493  ;;  %3513 = vpow2.f32 %v1989_v52  ;;  %v5082_v22 = vpop.xlane.xlu1 %1455  ;;  %v1651_v43 = vmax.f32 %v4830_v8, %v5078_v16  ;;  %v1734_v57 = vsub.f32 %v4813_v2, %v1650_v24  ;;  %v1766_v47 = vsub.f32 %v1452_v0, %v1650_v24 }
 0x284   : > { %v5086_v56 = vpop.eup %3495  ;;  %v2117_v39 = vadd.f32 %v5074_v33, %v2116_v40  ;;  %3515 = vpow2.f32 %v2053_v35  ;;  %v1798_v10 = vsub.f32 %v4823_v62, %v1650_v24  ;;  %v1830_v42 = vsub.f32 %v1580_v19, %v1650_v24 }
 0x285   : > { %v5090_v44 = vpop.eup %3497  ;;  %v2113_v37 = vadd.f32 %v5086_v56, %v5066_v20  ;;  %v1733_v32 = vsub.f32 %v4810_v1, %v1647_v46  ;;  %v1867_v45 = vmul.f32 1.442695, %v1734_v57  ;;  %v1931_v30 = vmul.f32 1.442695, %v1766_v47 }
 0x286   : > { %v5096_v36 = vpop.eup %3499  ;;  %v2118_v52 = vadd.f32 %v5080_v31, %v2117_v39  ;;  %v1765_v35 = vsub.f32 %v5061_v26, %v1647_v46  ;;  %v5100_v2 = vpop.xlane.xlu0 %1581  ;;  %v1995_v21 = vmul.f32 1.442695, %v1798_v10  ;;  %v1797_v62 = vsub.f32 %v4820_v7, %v1647_v46 }
 0x287   : > { %v5102_v0 = vpop.eup %3501  ;;  %v2114_v40 = vadd.f32 %v5090_v44, %v2113_v37  ;;  %v1584_v19 = vpop.xlane.xlu1 %1583  ;;  %v2059_v1 = vmul.f32 1.442695, %v1830_v42  ;;  %v1829_v11 = vsub.f32 %v1578_v34, %v1647_v46  ;;  %v1865_v39 = vmul.f32 1.442695, %v1733_v32 }
 0x288   : > { %v5106_v24 = vpop.eup %3503  ;;  %3517 = vrcp.f32 %v2118_v52  ;;  %v1929_v47 = vmul.f32 1.442695, %v1765_v35  ;;  %v1654_v49 = vmax.f32 %v4833_v4, %v5082_v22  ;;  %v1993_v10 = vmul.f32 1.442695, %v1797_v62 }
 0x289   : > { %v5108_v57 = vpop.eup %3505  ;;  %v2115_v26 = vadd.f32 %v5096_v36, %v2114_v40  ;;  %3519 = vpow2.f32 %v1867_v45  ;;  %v1652_v42 = vmax.f32 %v1651_v43, %v4840_v53  ;;  %v2057_v32 = vmul.f32 1.442695, %v1829_v11 }
 0x28a   : > { %v5113_v37 = vpop.eup %3507  ;;  %v2122_v7 = vadd.f32 %v5108_v57, %v5106_v24  ;;  %3521 = vpow2.f32 %v1931_v30  ;;  %v5118_v34 = vpop.xlane.xlu0 %1457  ;;  %v1655_v52 = vmax.f32 %v1654_v49, %v4843_v61 }
 0x28b   : > { %v5120_v46 = vpop.eup %3509  ;;  %3523 = vrcp.f32 %v2115_v26  ;;  %v5123_v45 = vpop.xlane.xlu1 %1459  ;;  %v1657_v35 = vmax.f32 %v4850_v29, %v5118_v34  ;;  %v1653_v43 = vmax.f32 %v1652_v42, %v5100_v2 }
 0x28c   : > { %v5127_v40 = vpop.eup %3511  ;;  %v2123_v30 = vadd.f32 %v5113_v37, %v2122_v7  ;;  %3525 = vpow2.f32 %v1995_v21  ;;  %v1656_v49 = vmax.f32 %v1655_v52, %v1584_v19 }
 0x28d   : > { %v5133_v15 = vpop.eup %3513  ;;  %v2119_v11 = vadd.f32 %v5127_v40, %v5102_v0  ;;  %3527 = vpow2.f32 %v2059_v1  ;;  %v5138_v26 = vmax.f32 %v1657_v35, %v4860_v50  ;;  %v1735_v21 = vsub.f32 %v4830_v8, %v1653_v43 }
 0x28e   : > { %v5140_v60 = vpop.eup %3515  ;;  %v2124_v7 = vadd.f32 %v5120_v46, %v2123_v30  ;;  %3529 = vpow2.f32 %v1865_v39  ;;  %v1767_v42 = vsub.f32 %v5078_v16, %v1653_v43  ;;  %v1736_v59 = vsub.f32 %v4833_v4, %v1656_v49 }
 0x28f   : > { %v2120_v62 = vadd.f32 %v5133_v15, %v2119_v11  ;;  %3531 = vpow2.f32 %v1929_v47  ;;  %v1768_v1 = vsub.f32 %v5082_v22, %v1656_v49  ;;  %v1800_v52 = vsub.f32 %v4843_v61, %v1656_v49  ;;  %v5154_v22 = vpop.xlane.xlu1 %1587 }
 0x290   : > { %3533 = vrcp.f32 %v2124_v7  ;;  %v1832_v35 = vsub.f32 %v1584_v19, %v1656_v49  ;;  %v1799_v9 = vsub.f32 %v4840_v53, %v1653_v43  ;;  %v1871_v39 = vmul.f32 1.442695, %v1736_v59  ;;  %v3807_v49 = vld [vmem:[%s4191_s22 + $0x8] sm:$0xff] }
 0x291   : > { %v2121_v30 = vadd.f32 %v5140_v60, %v2120_v62  ;;  %3535 = vpow2.f32 %v1993_v10  ;;  %v1935_v8 = vmul.f32 1.442695, %v1768_v1  ;;  %v1999_v16 = vmul.f32 1.442695, %v1800_v52  ;;  %v3808_v7 = vld [vmem:[%s4191_s22 + $0x108] sm:$0xff] }
 0x292   : > { %v3518_v5 = vpop.eup %3517  ;;  %3537 = vpow2.f32 %v2057_v32  ;;  %v5151_v47 = vmul.f32 1.442695, %v1832_v35  ;;  %v1831_v4 = vsub.f32 %v5100_v2, %v1653_v43  ;;  %v5164_v62 = vmul.f32 1.442695, %v1735_v21 }
 0x293   : > { %v5156_v61 = vpop.eup %3519  ;;  %v2242_v53 = vmul.f32 %v3518_v5, %v5068_v38  ;;  %v2274_v59 = vmul.f32 %v3518_v5, %v5072_v27  ;;  %v2306_v19 = vmul.f32 %v3518_v5, %v5074_v33  ;;  %v2338_v10 = vmul.f32 %v3518_v5, %v5080_v31  ;;  %v3809_v27 = vld [vmem:[%s4191_s22 + $0x208] sm:$0xff]  ;;  %v5195_v13 = vpop.xlane.xlu1 %1463 }
 0x294   : > { %v5162_v32 = vpop.eup %3521  ;;  %3539 = vrcp.f32 %v2121_v30  ;;  %v5166_v2 = vmul.f32 1.442695, %v1767_v42  ;;  %v5168_v43 = vmul.f32 1.442695, %v1799_v9  ;;  %v3810_v33 = vld [vmem:[%s4191_s22 + $0x308] sm:$0xff] }
 0x295   : > { %v3524_v11 = vpop.eup %3523  ;;  %v2370_v38 = vmul.f32 %v3807_v49, %v2242_v53  ;;  %v2402_v1 = vmul.f32 %v3808_v7, %v2274_v59  ;;  %v2434_v52 = vmul.f32 %v3809_v27, %v2306_v19  ;;  %v2466_v5 = vmul.f32 %v3810_v33, %v2338_v10  ;;  %v5187_v10 = vpop.xlane.xlu0 %1585  ;;  %v3813_v27 = vld [vmem:[%s4191_s22 + $0x200] sm:$0xff] }
 0x296   : > { %v5174_v31 = vpop.eup %3525  ;;  %v2241_v21 = vmul.f32 %v3524_v11, %v5066_v20  ;;  %v2273_v9 = vmul.f32 %v3524_v11, %v5086_v56  ;;  %v2305_v42 = vmul.f32 %v3524_v11, %v5090_v44  ;;  %v2337_v35 = vmul.f32 %v3524_v11, %v5096_v36  ;;  %v3811_v56 = vld [vmem:[%s4191_s22] sm:$0xff] }
 0x297   : > { %v5180_v30 = vpop.eup %3527  ;;  %v2500_v53 = vadd.f32 %v2402_v1, %v2370_v38  ;;  %v2128_v59 = vadd.f32 %v5162_v32, %v5156_v61  ;;  %3541 = vpow2.f32 %v1871_v39  ;;  %v5185_v19 = vmul.f32 1.442695, %v1831_v4  ;;  %v3812_v44 = vld [vmem:[%s4191_s22 + $0x100] sm:$0xff] }
 0x298   : > { %v5189_v20 = vpop.eup %3529  ;;  %v2369_v49 = vmul.f32 %v3811_v56, %v2241_v21  ;;  %v2401_v7 = vmul.f32 %v3812_v44, %v2273_v9  ;;  %v2433_v36 = vmul.f32 %v3813_v27, %v2305_v42  ;;  %v3814_v11 = vld [vmem:[%s4191_s22 + $0x300] sm:$0xff]  ;;  %3543 = vpow2.f32 %v1935_v8  ;;  %v3817_v27 = vld [vmem:[%s4191_s22 + $0x218] sm:$0xff] }
 0x299   : > { %v2465_v33 = vmul.f32 %v3814_v11, %v2337_v35  ;;  %v5197_v38 = vpop.eup %3531  ;;  %v2501_v1 = vadd.f32 %v2500_v53, %v2434_v52  ;;  %v2129_v39 = vadd.f32 %v5174_v31, %v2128_v59  ;;  %v6268_v4 = vmax.f32 %v4853_v3, %v5123_v45 }
 0x29a   : > { %v3534_v21 = vpop.eup %3533  ;;  %v2497_v9 = vadd.f32 %v2401_v7, %v2369_v49  ;;  %v2125_v42 = vadd.f32 %v5197_v38, %v5189_v20  ;;  %3545 = vpow2.f32 %v1999_v16  ;;  %v5208_v52 = vmax.f32 %v5138_v26, %v5187_v10 }
 0x29b   : > { %v1661_v58 = vmax.f32 %v6268_v4, %v4863_v48  ;;  %v5210_v35 = vpop.eup %3535  ;;  %v2502_v8 = vadd.f32 %v2501_v1, %v2466_v5  ;;  %v2244_v53 = vmul.f32 %v3534_v21, %v5106_v24  ;;  %v2276_v59 = vmul.f32 %v3534_v21, %v5108_v57  ;;  %v3815_v24 = vld [vmem:[%s4191_s22 + $0x18] sm:$0xff] }
 0x29c   : > { %v2308_v56 = vmul.f32 %v3534_v21, %v5113_v37  ;;  %v5215_v49 = vpop.eup %3537  ;;  %v2498_v44 = vadd.f32 %v2497_v9, %v2433_v36  ;;  %v2340_v16 = vmul.f32 %v3534_v21, %v5120_v46  ;;  %v2130_v7 = vadd.f32 %v5180_v30, %v2129_v39  ;;  %v3816_v57 = vld [vmem:[%s4191_s22 + $0x118] sm:$0xff]  ;;  %v5231_v21 = vpop.xlane.xlu1 %1591 }
 0x29d   : > { %v2126_v26 = vadd.f32 %v5210_v35, %v2125_v42  ;;  %2594 = vst [vmem:[%s5222_s6 + $0x8] sm:$0xff] %v2502_v8  ;;  %v2372_v5 = vmul.f32 %v3815_v24, %v2244_v53  ;;  %v2404_v37 = vmul.f32 %v3816_v57, %v2276_v59  ;;  %3547 = vpow2.f32 %v5151_v47  ;;  %v3818_v1 = vld [vmem:[%s4191_s22 + $0x318] sm:$0xff]  ;;  %v3821_v24 = vld [vmem:[%s4191_s22 + $0x210] sm:$0xff]  ;;  %v5250_v57 = vpop.xlane.xlu0 %1461 }
 0x29e   : > { %v2436_v11 = vmul.f32 %v3817_v27, %v2308_v56  ;;  %v3540_v36 = vpop.eup %3539  ;;  %v2499_v46 = vadd.f32 %v2498_v44, %v2465_v33  ;;  %v2468_v39 = vmul.f32 %v3818_v1, %v2340_v16  ;;  %3549 = vrcp.f32 %v2130_v7  ;;  %v3819_v16 = vld [vmem:[%s4191_s22 + $0x10] sm:$0xff] }
 0x29f   : > { %v2127_v4 = vadd.f32 %v5215_v49, %v2126_v26  ;;  %v2506_v9 = vadd.f32 %v2404_v37, %v2372_v5  ;;  %v2243_v42 = vmul.f32 %v3540_v36, %v5102_v0  ;;  %v2275_v8 = vmul.f32 %v3540_v36, %v5127_v40  ;;  %v3820_v0 = vld [vmem:[%s4191_s22 + $0x110] sm:$0xff] }
 0x2a0   : > { %v2307_v47 = vmul.f32 %v3540_v36, %v5133_v15  ;;  %2593 = vst [vmem:[%s5222_s6] sm:$0xff] %v2499_v46  ;;  %v2339_v33 = vmul.f32 %v3540_v36, %v5140_v60  ;;  %v1662_v53 = vmax.f32 %v1661_v58, %v5154_v22  ;;  %v1737_v59 = vsub.f32 %v4850_v29, %v5208_v52  ;;  %v3822_v5 = vld [vmem:[%s4191_s22 + $0x310] sm:$0xff] }
 0x2a1   : > { %3551 = vrcp.f32 %v2127_v4  ;;  %v5241_v56 = vpop.eup %3541  ;;  %v2507_v44 = vadd.f32 %v2506_v9, %v2436_v11  ;;  %v2371_v7 = vmul.f32 %v3819_v16, %v2243_v42  ;;  %v2403_v26 = vmul.f32 %v3820_v0, %v2275_v8 }
 0x2a2   : > { %v2435_v40 = vmul.f32 %v3821_v24, %v2307_v47  ;;  %v2467_v15 = vmul.f32 %v3822_v5, %v2339_v33  ;;  %3553 = vpow2.f32 %v5164_v62  ;;  %v1738_v60 = vsub.f32 %v4853_v3, %v1662_v53  ;;  %v5252_v29 = vpop.eup %3543  ;;  %v5262_v62 = vpop.xlane.xlu1 %1467  ;;  %v3823_v24 = vld [vmem:[%s4191_s22 + $0x28] sm:$0xff] }
 0x2a3   : > { %v1770_v58 = vsub.f32 %v5123_v45, %v1662_v53  ;;  %v2508_v37 = vadd.f32 %v2507_v44, %v2468_v39  ;;  %v2503_v27 = vadd.f32 %v2403_v26, %v2371_v7  ;;  %3555 = vpow2.f32 %v5166_v2  ;;  %v5276_v44 = vpop.xlane.xlu0 %1589  ;;  %v3824_v5 = vld [vmem:[%s4191_s22 + $0x128] sm:$0xff] }
 0x2a4   : > { %v1802_v11 = vsub.f32 %v4863_v48, %v1662_v53  ;;  %v5256_v36 = vpop.eup %3545  ;;  %v2134_v46 = vadd.f32 %v5252_v29, %v5241_v56  ;;  %3557 = vpow2.f32 %v5168_v43  ;;  %v1834_v3 = vsub.f32 %v5154_v22, %v1662_v53 }
 0x2a5   : > { %v1875_v45 = vmul.f32 1.442695, %v1738_v60  ;;  %2596 = vst [vmem:[%s5222_s6 + $0x18] sm:$0xff] %v2508_v37  ;;  %v2504_v1 = vadd.f32 %v2503_v27, %v2435_v40  ;;  %3559 = vpow2.f32 %v5185_v19  ;;  %v1939_v39 = vmul.f32 1.442695, %v1770_v58 }
 0x2a6   : > { %v2003_v2 = vmul.f32 1.442695, %v1802_v11  ;;  %v2135_v48 = vadd.f32 %v5256_v36, %v2134_v46  ;;  %v2067_v4 = vmul.f32 1.442695, %v1834_v3  ;;  %v1769_v9 = vsub.f32 %v5118_v34, %v5208_v52  ;;  %v5285_v26 = vpop.xlane.xlu1 %1595 }
 0x2a7   : > { %3561 = vpow2.f32 %v1875_v45  ;;  %v5269_v43 = vpop.eup %3547  ;;  %v2505_v22 = vadd.f32 %v2504_v1, %v2467_v15  ;;  %v1801_v42 = vsub.f32 %v4860_v50, %v5208_v52  ;;  %v1833_v19 = vsub.f32 %v5187_v10, %v5208_v52  ;;  %v3825_v15 = vld [vmem:[%s4191_s22 + $0x228] sm:$0xff] }
 0x2a8   : > { %3563 = vpow2.f32 %v1939_v39  ;;  %v3550_v8 = vpop.eup %3549  ;;  %v2136_v47 = vadd.f32 %v5269_v43, %v2135_v48  ;;  %v1873_v33 = vmul.f32 1.442695, %v1737_v59  ;;  %v1937_v53 = vmul.f32 1.442695, %v1769_v9  ;;  %v3828_v48 = vld [vmem:[%s4191_s22 + $0x120] sm:$0xff] }
 0x2a9   : > { %3565 = vpow2.f32 %v2003_v2  ;;  %2595 = vst [vmem:[%s5222_s6 + $0x10] sm:$0xff] %v2505_v22  ;;  %v2246_v34 = vmul.f32 %v3550_v8, %v5156_v61  ;;  %v2278_v50 = vmul.f32 %v3550_v8, %v5162_v32  ;;  %v2310_v16 = vmul.f32 %v3550_v8, %v5174_v31  ;;  %v3826_v31 = vld [vmem:[%s4191_s22 + $0x328] sm:$0xff]  ;;  %v3827_v2 = vld [vmem:[%s4191_s22 + $0x20] sm:$0xff] }
 0x2aa   : > { %v2342_v10 = vmul.f32 %v3550_v8, %v5180_v30  ;;  %3567 = vrcp.f32 %v2136_v47  ;;  %v2001_v7 = vmul.f32 1.442695, %v1801_v42  ;;  %v2065_v0 = vmul.f32 1.442695, %v1833_v19 }
 0x2ab   : > { %v3552_v52 = vpop.eup %3551  ;;  %v1666_v59 = vmax.f32 %v4873_v41, %v5195_v13  ;;  %v2374_v40 = vmul.f32 %v3823_v24, %v2246_v34  ;;  %v2406_v61 = vmul.f32 %v3824_v5, %v2278_v50  ;;  %v2438_v32 = vmul.f32 %v3825_v15, %v2310_v16 }
 0x2ac   : > { %v2470_v60 = vmul.f32 %v3826_v31, %v2342_v10  ;;  %v5291_v30 = vpop.eup %3553  ;;  %v2245_v58 = vmul.f32 %v3552_v52, %v5189_v20  ;;  %v2277_v37 = vmul.f32 %v3552_v52, %v5197_v38  ;;  %v2309_v27 = vmul.f32 %v3552_v52, %v5210_v35  ;;  %v3829_v38 = vld [vmem:[%s4191_s22 + $0x220] sm:$0xff] }
 0x2ad   : > { %v2341_v11 = vmul.f32 %v3552_v52, %v5215_v49  ;;  %v5297_v46 = vpop.eup %3555  ;;  %v2512_v3 = vadd.f32 %v2406_v61, %v2374_v40  ;;  %3569 = vpow2.f32 %v2067_v4  ;;  %v1663_v45 = vmax.f32 %v4870_v51, %v5250_v57  ;;  %v3830_v35 = vld [vmem:[%s4191_s22 + $0x320] sm:$0xff]  ;;  %v5308_v49 = vpop.xlane.xlu0 %1465 }
 0x2ae   : > { %v1667_v1 = vmax.f32 %v1666_v59, %v4883_v23  ;;  %v5302_v39 = vpop.eup %3557  ;;  %v2373_v20 = vmul.f32 %v3827_v2, %v2245_v58  ;;  %v2405_v9 = vmul.f32 %v3828_v48, %v2277_v37  ;;  %v2437_v22 = vmul.f32 %v3829_v38, %v2309_v27  ;;  %v5320_v52 = vpop.xlane.xlu1 %1471 }
 0x2af   : > { %v2469_v42 = vmul.f32 %v3830_v35, %v2341_v11  ;;  %v5310_v19 = vpop.eup %3559  ;;  %v2513_v4 = vadd.f32 %v2512_v3, %v2438_v32  ;;  %v2131_v8 = vadd.f32 %v5297_v46, %v5291_v30  ;;  %3571 = vpow2.f32 %v1873_v33 }
 0x2b0   : > { %v1668_v47 = vmax.f32 %v1667_v1, %v5231_v21  ;;  %v2509_v50 = vadd.f32 %v2405_v9, %v2373_v20  ;;  %3573 = vpow2.f32 %v1937_v53  ;;  %v1664_v16 = vmax.f32 %v1663_v45, %v4880_v28  ;;  %v3831_v9 = vld [vmem:[%s4191_s22 + $0x38] sm:$0xff] }
 0x2b1   : > { %v5315_v34 = vpop.eup %3561  ;;  %v1672_v10 = vmax.f32 %v4893_v25, %v5262_v62  ;;  %v2514_v24 = vadd.f32 %v2513_v4, %v2470_v60  ;;  %v2132_v40 = vadd.f32 %v5302_v39, %v2131_v8  ;;  %3575 = vpow2.f32 %v2001_v7  ;;  %v5337_v11 = vpop.xlane.xlu0 %1593 }
 0x2b2   : > { %v5322_v59 = vpop.eup %3563  ;;  %v1740_v33 = vsub.f32 %v4873_v41, %v1668_v47  ;;  %v2510_v61 = vadd.f32 %v2509_v50, %v2437_v22  ;;  %3577 = vpow2.f32 %v2065_v0  ;;  %v1772_v15 = vsub.f32 %v5195_v13, %v1668_v47  ;;  %v5345_v20 = vpop.xlane.xlu1 %1599 }
 0x2b3   : > { %v5326_v5 = vpop.eup %3565  ;;  %v2140_v53 = vadd.f32 %v5322_v59, %v5315_v34  ;;  %2598 = vst [vmem:[%s5222_s6 + $0x28] sm:$0xff] %v2514_v24  ;;  %v2133_v32 = vadd.f32 %v5310_v19, %v2132_v40  ;;  %v1804_v31 = vsub.f32 %v4883_v23, %v1668_v47  ;;  %v1836_v60 = vsub.f32 %v5231_v21, %v1668_v47 }
 0x2b4   : > { %v1879_v7 = vmul.f32 1.442695, %v1740_v33  ;;  %v3568_v58 = vpop.eup %3567  ;;  %v2511_v41 = vadd.f32 %v2510_v61, %v2469_v42  ;;  %v1943_v27 = vmul.f32 1.442695, %v1772_v15  ;;  %v1665_v0 = vmax.f32 %v1664_v16, %v5276_v44  ;;  %v3834_v42 = vld [vmem:[%s4191_s22 + $0x338] sm:$0xff] }
 0x2b5   : > { %v2141_v37 = vadd.f32 %v5326_v5, %v2140_v53  ;;  %v2248_v13 = vmul.f32 %v3568_v58, %v5241_v56  ;;  %v2280_v3 = vmul.f32 %v3568_v58, %v5252_v29  ;;  %v2312_v23 = vmul.f32 %v3568_v58, %v5256_v36  ;;  %v3832_v56 = vld [vmem:[%s4191_s22 + $0x138] sm:$0xff]  ;;  %v5363_v53 = vpop.xlane.xlu0 %1469 }
 0x2b6   : > { %v2344_v21 = vmul.f32 %v3568_v58, %v5269_v43  ;;  %2597 = vst [vmem:[%s5222_s6 + $0x20] sm:$0xff] %v2511_v41  ;;  %3579 = vrcp.f32 %v2133_v32  ;;  %v2007_v45 = vmul.f32 1.442695, %v1804_v31  ;;  %v2071_v1 = vmul.f32 1.442695, %v1836_v60  ;;  %v3833_v29 = vld [vmem:[%s4191_s22 + $0x238] sm:$0xff]  ;;  %v5378_v58 = vpop.xlane.xlu1 %1475 }
 0x2b7   : > { %v1739_v2 = vsub.f32 %v4870_v51, %v1665_v0  ;;  %v5347_v48 = vpop.eup %3569  ;;  %v2376_v38 = vmul.f32 %v3831_v9, %v2248_v13  ;;  %v2408_v22 = vmul.f32 %v3832_v56, %v2280_v3  ;;  %v2440_v35 = vmul.f32 %v3833_v29, %v2312_v23 }
 0x2b8   : > { %v2472_v36 = vmul.f32 %v3834_v42, %v2344_v21  ;;  %v2142_v43 = vadd.f32 %v5347_v48, %v2141_v37  ;;  %3581 = vpow2.f32 %v1879_v7  ;;  %v1771_v4 = vsub.f32 %v5250_v57, %v1665_v0 }
 0x2b9   : > { %v1803_v8 = vsub.f32 %v4880_v28, %v1665_v0  ;;  %v5356_v51 = vpop.eup %3571  ;;  %v2518_v47 = vadd.f32 %v2408_v22, %v2376_v38  ;;  %3583 = vpow2.f32 %v1943_v27  ;;  %v1835_v50 = vsub.f32 %v5276_v44, %v1665_v0 }
 0x2ba   : > { %v1877_v16 = vmul.f32 1.442695, %v1739_v2  ;;  %v5359_v24 = vpop.eup %3573  ;;  %3585 = vrcp.f32 %v2142_v43  ;;  %v1941_v40 = vmul.f32 1.442695, %v1771_v4  ;;  %v1669_v61 = vmax.f32 %v4890_v55, %v5308_v49  ;;  %v3835_v43 = vld [vmem:[%s4191_s22 + $0x30] sm:$0xff] }
 0x2bb   : > { %v2005_v33 = vmul.f32 1.442695, %v1803_v8  ;;  %v5365_v57 = vpop.eup %3575  ;;  %v2519_v28 = vadd.f32 %v2518_v47, %v2440_v35  ;;  %v2137_v15 = vadd.f32 %v5359_v24, %v5356_v51  ;;  %3587 = vpow2.f32 %v2007_v45  ;;  %v3836_v4 = vld [vmem:[%s4191_s22 + $0x130] sm:$0xff] }
 0x2bc   : > { %v2069_v44 = vmul.f32 1.442695, %v1835_v50  ;;  %v5369_v32 = vpop.eup %3577  ;;  %3589 = vpow2.f32 %v2071_v1  ;;  %v1673_v31 = vmax.f32 %v1672_v10, %v4903_v12  ;;  %v1670_v60 = vmax.f32 %v1669_v61, %v4900_v54  ;;  %v3837_v8 = vld [vmem:[%s4191_s22 + $0x230] sm:$0xff] }
 0x2bd   : > { %v1678_v7 = vmax.f32 %v4913_v17, %v5320_v52  ;;  %v2520_v41 = vadd.f32 %v2519_v28, %v2472_v36  ;;  %v2138_v37 = vadd.f32 %v5365_v57, %v2137_v15  ;;  %3591 = vpow2.f32 %v1877_v16 }
 0x2be   : > { %v1675_v27 = vmax.f32 %v4910_v6, %v5363_v53  ;;  %3593 = vpow2.f32 %v1941_v40  ;;  %v1674_v0 = vmax.f32 %v1673_v31, %v5285_v26  ;;  %v5385_v13 = vmax.f32 %v1670_v60, %v5337_v11 }
 0x2bf   : > { %v5388_v10 = vmax.f32 %v1678_v7, %v4923_v63  ;;  %2600 = vst [vmem:[%s5222_s6 + $0x38] sm:$0xff] %v2520_v41  ;;  %v2139_v3 = vadd.f32 %v5369_v32, %v2138_v37  ;;  %3595 = vpow2.f32 %v2005_v33  ;;  %v1684_v21 = vmax.f32 %v4933_v14, %v5378_v58 }
 0x2c0   : > { %v5393_v23 = vmax.f32 %v1675_v27, %v4920_v18  ;;  %v3580_v45 = vpop.eup %3579  ;;  %3597 = vpow2.f32 %v2069_v44  ;;  %v1742_v1 = vsub.f32 %v4893_v25, %v1674_v0  ;;  %v1774_v2 = vsub.f32 %v5262_v62, %v1674_v0  ;;  %v5420_v44 = vpop.xlane.xlu0 %1597  ;;  %v3839_v27 = vld [vmem:[%s4191_s22 + $0x48] sm:$0xff] }
 0x2c1   : > { %v1806_v9 = vsub.f32 %v4903_v12, %v1674_v0  ;;  %v2247_v38 = vmul.f32 %v3580_v45, %v5291_v30  ;;  %v2279_v56 = vmul.f32 %v3580_v45, %v5297_v46  ;;  %v2311_v22 = vmul.f32 %v3580_v45, %v5302_v39  ;;  %v3838_v46 = vld [vmem:[%s4191_s22 + $0x330] sm:$0xff] }
 0x2c2   : > { %v2343_v29 = vmul.f32 %v3580_v45, %v5310_v19  ;;  %v5404_v35 = vpop.eup %3581  ;;  %3599 = vrcp.f32 %v2139_v3  ;;  %v1838_v42 = vsub.f32 %v5285_v26, %v1674_v0  ;;  %v1883_v25 = vmul.f32 1.442695, %v1742_v1  ;;  %v3840_v0 = vld [vmem:[%s4191_s22 + $0x148] sm:$0xff] }
 0x2c3   : > { %v1947_v36 = vmul.f32 1.442695, %v1774_v2  ;;  %v5407_v62 = vpop.eup %3583  ;;  %v2375_v12 = vmul.f32 %v3835_v43, %v2247_v38  ;;  %v2407_v30 = vmul.f32 %v3836_v4, %v2279_v56  ;;  %v2439_v47 = vmul.f32 %v3837_v8, %v2311_v22  ;;  %v3841_v3 = vld [vmem:[%s4191_s22 + $0x248] sm:$0xff] }
 0x2c4   : > { %v2471_v50 = vmul.f32 %v3838_v46, %v2343_v29  ;;  %v3586_v39 = vpop.eup %3585  ;;  %v2146_v19 = vadd.f32 %v5407_v62, %v5404_v35  ;;  %3601 = vpow2.f32 %v1883_v25  ;;  %v2011_v16 = vmul.f32 1.442695, %v1806_v9  ;;  %v3842_v2 = vld [vmem:[%s4191_s22 + $0x348] sm:$0xff]  ;;  %v5453_v8 = vpop.xlane.xlu0 %1473 }
 0x2c5   : > { %v2075_v26 = vmul.f32 1.442695, %v1838_v42  ;;  %v5415_v40 = vpop.eup %3587  ;;  %v2515_v33 = vadd.f32 %v2407_v30, %v2375_v12  ;;  %v2250_v61 = vmul.f32 %v3586_v39, %v5315_v34  ;;  %v2282_v28 = vmul.f32 %v3586_v39, %v5322_v59 }
 0x2c6   : > { %v2314_v15 = vmul.f32 %v3586_v39, %v5326_v5  ;;  %v5422_v31 = vpop.eup %3589  ;;  %v2346_v60 = vmul.f32 %v3586_v39, %v5347_v48  ;;  %v2147_v7 = vadd.f32 %v5415_v40, %v2146_v19  ;;  %3603 = vpow2.f32 %v1947_v36 }
 0x2c7   : > { %v1741_v41 = vsub.f32 %v4890_v55, %v5385_v13  ;;  %v5428_v37 = vpop.eup %3591  ;;  %v2516_v34 = vadd.f32 %v2515_v33, %v2439_v47  ;;  %v2378_v59 = vmul.f32 %v3839_v27, %v2250_v61  ;;  %v2410_v5 = vmul.f32 %v3840_v0, %v2282_v28  ;;  %v3844_v28 = vld [vmem:[%s4191_s22 + $0x140] sm:$0xff] }
 0x2c8   : > { %v2442_v45 = vmul.f32 %v3841_v3, %v2314_v15  ;;  %v5433_v1 = vpop.eup %3593  ;;  %v2474_v48 = vmul.f32 %v3842_v2, %v2346_v60  ;;  %v2148_v9 = vadd.f32 %v5422_v31, %v2147_v7  ;;  %3605 = vpow2.f32 %v2011_v16  ;;  %v5481_v0 = vpop.xlane.xlu0 %1601 }
 0x2c9   : > { %v1773_v55 = vsub.f32 %v5308_v49, %v5385_v13  ;;  %v5439_v38 = vpop.eup %3595  ;;  %v2517_v56 = vadd.f32 %v2516_v34, %v2471_v50  ;;  %v2524_v22 = vadd.f32 %v2410_v5, %v2378_v59  ;;  %v2143_v29 = vadd.f32 %v5433_v1, %v5428_v37  ;;  %v5479_v59 = vpop.xlane.xlu1 %1603 }
 0x2ca   : > { %3607 = vpow2.f32 %v2075_v26  ;;  %v5443_v42 = vpop.eup %3597  ;;  %v1805_v25 = vsub.f32 %v4900_v54, %v5385_v13  ;;  %v1837_v36 = vsub.f32 %v5337_v11, %v5385_v13  ;;  %v1881_v43 = vmul.f32 1.442695, %v1741_v41 }
 0x2cb   : > { %3609 = vrcp.f32 %v2148_v9  ;;  %2599 = vst [vmem:[%s5222_s6 + $0x30] sm:$0xff] %v2517_v56  ;;  %v2525_v49 = vadd.f32 %v2524_v22, %v2442_v45  ;;  %v2144_v12 = vadd.f32 %v5439_v38, %v2143_v29  ;;  %v1945_v4 = vmul.f32 1.442695, %v1773_v55 }
 0x2cc   : > { %v1680_v30 = vmax.f32 %v5388_v10, %v5345_v20  ;;  %v3600_v47 = vpop.eup %3599  ;;  %3611 = vpow2.f32 %v1881_v43  ;;  %v2009_v54 = vmul.f32 1.442695, %v1805_v25  ;;  %v2073_v46 = vmul.f32 1.442695, %v1837_v36 }
 0x2cd   : > { %v5457_v11 = vmax.f32 %v5393_v23, %v5420_v44  ;;  %v2526_v13 = vadd.f32 %v2525_v49, %v2474_v48  ;;  %v2249_v50 = vmul.f32 %v3600_v47, %v5356_v51  ;;  %v2281_v39 = vmul.f32 %v3600_v47, %v5359_v24  ;;  %v3843_v23 = vld [vmem:[%s4191_s22 + $0x40] sm:$0xff] }
 0x2ce   : > { %v2313_v10 = vmul.f32 %v3600_v47, %v5365_v57  ;;  %v5462_v19 = vpop.eup %3601  ;;  %v2345_v16 = vmul.f32 %v3600_v47, %v5369_v32  ;;  %v2145_v26 = vadd.f32 %v5443_v42, %v2144_v12  ;;  %3613 = vpow2.f32 %v1945_v4  ;;  %v3845_v51 = vld [vmem:[%s4191_s22 + $0x240] sm:$0xff]  ;;  %v3848_v47 = vld [vmem:[%s4191_s22 + $0x158] sm:$0xff] }
 0x2cf   : > { %v1744_v33 = vsub.f32 %v4913_v17, %v1680_v30  ;;  %2602 = vst [vmem:[%s5222_s6 + $0x48] sm:$0xff] %v2526_v13  ;;  %v2377_v61 = vmul.f32 %v3843_v23, %v2249_v50  ;;  %v2409_v15 = vmul.f32 %v3844_v28, %v2281_v39  ;;  %3615 = vpow2.f32 %v2009_v54  ;;  %v3846_v57 = vld [vmem:[%s4191_s22 + $0x340] sm:$0xff]  ;;  %v3850_v13 = vld [vmem:[%s4191_s22 + $0x358] sm:$0xff] }
 0x2d0   : > { %v2441_v60 = vmul.f32 %v3845_v51, %v2313_v10  ;;  %v5471_v24 = vpop.eup %3603  ;;  %v2473_v7 = vmul.f32 %v3846_v57, %v2345_v16  ;;  %3617 = vrcp.f32 %v2145_v26  ;;  %v1776_v32 = vsub.f32 %v5320_v52, %v1680_v30  ;;  %v6270_v28 = vld [vmem:[#allocation17_spill] sm:$0xff]  ;;  %v6271_v51 = vld [vmem:[#allocation19_spill] sm:$0xff]  ;;  %v6272_v57 = vld [vmem:[#allocation16_spill] sm:$0xff] }
 0x2d1   : > { %v1808_v41 = vsub.f32 %v4923_v63, %v1680_v30  ;;  %v2521_v34 = vadd.f32 %v2409_v15, %v2377_v61  ;;  %v2152_v17 = vadd.f32 %v5471_v24, %v5462_v19  ;;  %3619 = vpow2.f32 %v2073_v46  ;;  %v3849_v46 = vld [vmem:[%s4191_s22 + $0x258] sm:$0xff] }
 0x2d2   : > { %v1840_v27 = vsub.f32 %v5345_v20, %v1680_v30  ;;  %v5483_v5 = vpop.eup %3605  ;;  %v1887_v3 = vmul.f32 1.442695, %v1744_v33  ;;  %v1951_v45 = vmul.f32 1.442695, %v1776_v32  ;;  %v1743_v52 = vsub.f32 %v4910_v6, %v5457_v11  ;;  %v6269_v33 = vld [vmem:[#allocation15_spill] sm:$0xff] }
 0x2d3   : > { %v2015_v2 = vmul.f32 1.442695, %v1808_v41  ;;  %v2522_v48 = vadd.f32 %v2521_v34, %v2441_v60  ;;  %v2153_v9 = vadd.f32 %v5483_v5, %v2152_v17  ;;  %v1775_v20 = vsub.f32 %v5363_v53, %v5457_v11 }
 0x2d4   : > { %v5487_v63 = vpop.eup %3607  ;;  %v2079_v55 = vmul.f32 1.442695, %v1840_v27  ;;  %3621 = vpow2.f32 %v1887_v3  ;;  %v1807_v22 = vsub.f32 %v4920_v18, %v5457_v11  ;;  %v1839_v6 = vsub.f32 %v5420_v44, %v5457_v11  ;;  %v3847_v44 = vld [vmem:[%s4191_s22 + $0x58] sm:$0xff] }
 0x2d5   : > { %v3610_v56 = vpop.eup %3609  ;;  %v1885_v29 = vmul.f32 1.442695, %v1743_v52  ;;  %v2523_v25 = vadd.f32 %v2522_v48, %v2473_v7  ;;  %v2154_v4 = vadd.f32 %v5487_v63, %v2153_v9  ;;  %3623 = vpow2.f32 %v1951_v45  ;;  %v3851_v52 = vld [vmem:[%s4191_s22 + $0x50] sm:$0xff] }
 0x2d6   : > { %v2252_v36 = vmul.f32 %v3610_v56, %v5404_v35  ;;  %v2284_v43 = vmul.f32 %v3610_v56, %v5407_v62  ;;  %v2316_v49 = vmul.f32 %v3610_v56, %v5415_v40  ;;  %v5499_v53 = vpop.eup %3611  ;;  %v2348_v12 = vmul.f32 %v3610_v56, %v5422_v31  ;;  %v5507_v62 = vpop.xlane.xlu1 %1479  ;;  %v3852_v9 = vld [vmem:[%s4191_s22 + $0x150] sm:$0xff] }
 0x2d7   : > { %v1949_v18 = vmul.f32 1.442695, %v1775_v20  ;;  %2601 = vst [vmem:[%s5222_s6 + $0x40] sm:$0xff] %v2523_v25  ;;  %3625 = vpow2.f32 %v2015_v2  ;;  %v5509_v40 = vpop.xlane.xlu0 %1477  ;;  %v2013_v50 = vmul.f32 1.442695, %v1807_v22  ;;  %v1681_v23 = vmax.f32 %v6269_v33, %v5453_v8  ;;  %v3853_v20 = vld [vmem:[%s4191_s22 + $0x250] sm:$0xff] }
 0x2d8   : > { %v2380_v30 = vmul.f32 %v3847_v44, %v2252_v36  ;;  %v2412_v54 = vmul.f32 %v3848_v47, %v2284_v43  ;;  %v2444_v35 = vmul.f32 %v3849_v46, %v2316_v49  ;;  %v5511_v11 = vpop.eup %3613  ;;  %v2476_v31 = vmul.f32 %v3850_v13, %v2348_v12  ;;  %v6274_v13 = vld [vmem:[#allocation21_spill] sm:$0xff] }
 0x2d9   : > { %3627 = vrcp.f32 %v2154_v4  ;;  %v2077_v39 = vmul.f32 1.442695, %v1839_v6  ;;  %v5514_v10 = vpop.eup %3615  ;;  %v2149_v26 = vadd.f32 %v5511_v11, %v5499_v53  ;;  %v1685_v15 = vmax.f32 %v1684_v21, %v6270_v28  ;;  %v6273_v4 = vld [vmem:[#allocation14_spill] sm:$0xff] }
 0x2da   : > { %v2530_v16 = vadd.f32 %v2412_v54, %v2380_v30  ;;  %3629 = vpow2.f32 %v2079_v55  ;;  %v3618_v61 = vpop.eup %3617  ;;  %v1690_v60 = vmax.f32 %v6271_v51, %v5507_v62  ;;  %v1687_v7 = vmax.f32 %v6272_v57, %v5509_v40  ;;  %v5539_v56 = vpop.xlane.xlu1 %1607 }
 0x2db   : > { %3631 = vpow2.f32 %v1885_v29  ;;  %v5528_v32 = vpop.eup %3619  ;;  %v2251_v34 = vmul.f32 %v3618_v61, %v5428_v37  ;;  %v2283_v17 = vmul.f32 %v3618_v61, %v5433_v1  ;;  %v2315_v27 = vmul.f32 %v3618_v61, %v5439_v38  ;;  %v3854_v38 = vld [vmem:[%s4191_s22 + $0x350] sm:$0xff] }
 0x2dc   : > { %v2531_v41 = vadd.f32 %v2530_v16, %v2444_v35  ;;  %v2347_v3 = vmul.f32 %v3618_v61, %v5443_v42  ;;  %v2150_v21 = vadd.f32 %v5514_v10, %v2149_v26  ;;  %3633 = vpow2.f32 %v1949_v18 }
 0x2dd   : > { %v1686_v45 = vmax.f32 %v1685_v15, %v5479_v59  ;;  %v2379_v48 = vmul.f32 %v3851_v52, %v2251_v34  ;;  %v2411_v55 = vmul.f32 %v3852_v9, %v2283_v17  ;;  %v2443_v37 = vmul.f32 %v3853_v20, %v2315_v27  ;;  %v5584_v9 = vpop.xlane.xlu0 %1605 }
 0x2de   : > { %v2532_v2 = vadd.f32 %v2531_v41, %v2476_v31  ;;  %v5541_v1 = vpop.eup %3621  ;;  %v2475_v22 = vmul.f32 %v3854_v38, %v2347_v3  ;;  %v2151_v42 = vadd.f32 %v5528_v32, %v2150_v21  ;;  %3635 = vpow2.f32 %v2013_v50  ;;  %v3855_v41 = vld [vmem:[%s4191_s22 + $0x68] sm:$0xff] }
 0x2df   : > { %v1746_v6 = vsub.f32 %v4933_v14, %v1686_v45  ;;  %v2527_v29 = vadd.f32 %v2411_v55, %v2379_v48  ;;  %3637 = vpow2.f32 %v2077_v39  ;;  %v1778_v25 = vsub.f32 %v5378_v58, %v1686_v45  ;;  %v5549_v43 = vpop.eup %3623  ;;  %v3858_v3 = vld [vmem:[%s4191_s22 + $0x368] sm:$0xff] }
 0x2e0   : > { %2604 = vst [vmem:[%s5222_s6 + $0x58] sm:$0xff] %v2532_v2  ;;  %v1810_v36 = vsub.f32 %v6270_v28, %v1686_v45  ;;  %3639 = vrcp.f32 %v2151_v42  ;;  %v1842_v49 = vsub.f32 %v5479_v59, %v1686_v45  ;;  %v1682_v18 = vmax.f32 %v1681_v23, %v6273_v4  ;;  %v5564_v23 = vpop.xlane.xlu1 %1483 }
 0x2e1   : > { %v1891_v12 = vmul.f32 1.442695, %v1746_v6  ;;  %v5553_v44 = vpop.eup %3625  ;;  %v2528_v30 = vadd.f32 %v2527_v29, %v2443_v37  ;;  %v2158_v14 = vadd.f32 %v5549_v43, %v5541_v1  ;;  %v1955_v47 = vmul.f32 1.442695, %v1778_v25 }
 0x2e2   : > { %v2019_v54 = vmul.f32 1.442695, %v1810_v36  ;;  %v2083_v58 = vmul.f32 1.442695, %v1842_v49  ;;  %v1683_v35 = vmax.f32 %v1682_v18, %v5481_v0  ;;  %v1691_v59 = vmax.f32 %v1690_v60, %v6274_v13 }
 0x2e3   : > { %v3628_v46 = vpop.eup %3627  ;;  %3641 = vpow2.f32 %v1891_v12  ;;  %v2529_v50 = vadd.f32 %v2528_v30, %v2475_v22  ;;  %v2159_v15 = vadd.f32 %v5553_v44, %v2158_v14 }
 0x2e4   : > { %v5559_v31 = vpop.eup %3629  ;;  %v2254_v39 = vmul.f32 %v3628_v46, %v5462_v19  ;;  %v2286_v16 = vmul.f32 %v3628_v46, %v5471_v24  ;;  %v2318_v26 = vmul.f32 %v3628_v46, %v5483_v5  ;;  %v2350_v28 = vmul.f32 %v3628_v46, %v5487_v63  ;;  %v3856_v19 = vld [vmem:[%s4191_s22 + $0x168] sm:$0xff]  ;;  %v5592_v25 = vpop.xlane.xlu1 %1611 }
 0x2e5   : > { %v5566_v61 = vpop.eup %3631  ;;  %3643 = vpow2.f32 %v1955_v47  ;;  %v1745_v60 = vsub.f32 %v6269_v33, %v1683_v35  ;;  %2603 = vst [vmem:[%s5222_s6 + $0x50] sm:$0xff] %v2529_v50  ;;  %v3857_v24 = vld [vmem:[%s4191_s22 + $0x268] sm:$0xff]  ;;  %v2160_v45 = vadd.f32 %v5559_v31, %v2159_v15  ;;  %v1777_v63 = vsub.f32 %v5453_v8, %v1683_v35  ;;  %v3862_v50 = vld [vmem:[%s4191_s22 + $0x360] sm:$0xff] }
 0x2e6   : > { %v2382_v34 = vmul.f32 %v3855_v41, %v2254_v39  ;;  %v2414_v17 = vmul.f32 %v3856_v19, %v2286_v16  ;;  %v2446_v27 = vmul.f32 %v3857_v24, %v2318_v26  ;;  %3645 = vpow2.f32 %v2019_v54  ;;  %v5575_v5 = vpop.eup %3633  ;;  %v6275_v19 = vld [vmem:[#allocation18_spill] sm:$0xff]  ;;  %v6276_v24 = vld [vmem:[#allocation23_spill] sm:$0xff] }
 0x2e7   : > { %v2478_v21 = vmul.f32 %v3858_v3, %v2350_v28  ;;  %3647 = vpow2.f32 %v2083_v58  ;;  %v2155_v33 = vadd.f32 %v5575_v5, %v5566_v61  ;;  %v1809_v52 = vsub.f32 %v6273_v4, %v1683_v35 }
 0x2e8   : > { %v2536_v2 = vadd.f32 %v2414_v17, %v2382_v34  ;;  %v1841_v48 = vsub.f32 %v5481_v0, %v1683_v35  ;;  %v5586_v55 = vpop.eup %3635  ;;  %3649 = vrcp.f32 %v2160_v45  ;;  %v1889_v20 = vmul.f32 1.442695, %v1745_v60  ;;  %v3860_v35 = vld [vmem:[%s4191_s22 + $0x160] sm:$0xff]  ;;  %v5618_v60 = vpop.xlane.xlu1 %1487  ;;  %v6277_v45 = vld [vmem:[#allocation20_spill] sm:$0xff] }
 0x2e9   : > { %v1953_v37 = vmul.f32 1.442695, %v1777_v63  ;;  %v1692_v38 = vmax.f32 %v1691_v59, %v5539_v56  ;;  %v5589_v22 = vpop.eup %3637  ;;  %v2156_v42 = vadd.f32 %v5586_v55, %v2155_v33  ;;  %v2017_v6 = vmul.f32 1.442695, %v1809_v52  ;;  %v6278_v52 = vld [vmem:[#allocation25_spill] sm:$0xff] }
 0x2ea   : > { %v2537_v8 = vadd.f32 %v2536_v2, %v2446_v27  ;;  %v2081_v29 = vmul.f32 1.442695, %v1841_v48  ;;  %v3640_v0 = vpop.eup %3639  ;;  %3651 = vpow2.f32 %v1889_v20  ;;  %v1688_v17 = vmax.f32 %v1687_v7, %v6275_v19  ;;  %v6279_v7 = vld [vmem:[#allocation27_spill] sm:$0xff] }
 0x2eb   : > { %v1748_v36 = vsub.f32 %v6271_v51, %v1692_v38  ;;  %v1780_v49 = vsub.f32 %v5507_v62, %v1692_v38  ;;  %v1812_v12 = vsub.f32 %v6274_v13, %v1692_v38  ;;  %v2253_v18 = vmul.f32 %v3640_v0, %v5499_v53  ;;  %v3859_v51 = vld [vmem:[%s4191_s22 + $0x60] sm:$0xff] }
 0x2ec   : > { %v2538_v4 = vadd.f32 %v2537_v8, %v2478_v21  ;;  %v2285_v30 = vmul.f32 %v3640_v0, %v5511_v11  ;;  %v2317_v14 = vmul.f32 %v3640_v0, %v5514_v10  ;;  %v2349_v54 = vmul.f32 %v3640_v0, %v5528_v32  ;;  %v3861_v53 = vld [vmem:[%s4191_s22 + $0x260] sm:$0xff]  ;;  %v5609_v11 = vpop.xlane.xlu0 %1481 }
 0x2ed   : > { %v5600_v47 = vpop.eup %3641  ;;  %v2157_v46 = vadd.f32 %v5589_v22, %v2156_v42  ;;  %3653 = vpow2.f32 %v1953_v37  ;;  %v1844_v62 = vsub.f32 %v5539_v56, %v1692_v38  ;;  %v2381_v58 = vmul.f32 %v3859_v51, %v2253_v18 }
 0x2ee   : > { %2606 = vst [vmem:[%s5222_s6 + $0x68] sm:$0xff] %v2538_v4  ;;  %v2413_v13 = vmul.f32 %v3860_v35, %v2285_v30  ;;  %v2445_v59 = vmul.f32 %v3861_v53, %v2317_v14  ;;  %3655 = vpow2.f32 %v2017_v6  ;;  %v2477_v39 = vmul.f32 %v3862_v50, %v2349_v54  ;;  %v3866_v54 = vld [vmem:[%s4191_s22 + $0x378] sm:$0xff]  ;;  %v5659_v53 = vpop.xlane.xlu1 %1615 }
 0x2ef   : > { %v5611_v10 = vpop.eup %3643  ;;  %3657 = vrcp.f32 %v2157_v46  ;;  %v1895_v32 = vmul.f32 1.442695, %v1748_v36  ;;  %v1959_v16 = vmul.f32 1.442695, %v1780_v49  ;;  %v2023_v15 = vmul.f32 1.442695, %v1812_v12 }
 0x2f0   : > { %v5614_v26 = vpop.eup %3645  ;;  %v2533_v56 = vadd.f32 %v2413_v13, %v2381_v58  ;;  %v2164_v28 = vadd.f32 %v5611_v10, %v5600_v47  ;;  %3659 = vpow2.f32 %v2081_v29  ;;  %v2087_v34 = vmul.f32 1.442695, %v1844_v62  ;;  %v5638_v6 = vpop.xlane.xlu0 %1609  ;;  %v3863_v12 = vld [vmem:[%s4191_s22 + $0x78] sm:$0xff] }
 0x2f1   : > { %v5620_v41 = vpop.eup %3647  ;;  %3661 = vpow2.f32 %v1895_v32  ;;  %v1696_v27 = vmax.f32 %v6276_v24, %v5564_v23  ;;  %v1693_v63 = vmax.f32 %v6277_v45, %v5609_v11  ;;  %v1689_v33 = vmax.f32 %v1688_v17, %v5584_v9  ;;  %v6280_v32 = vld [vmem:[#allocation22_spill] sm:$0xff] }
 0x2f2   : > { %v2534_v3 = vadd.f32 %v2533_v56, %v2445_v59  ;;  %v2165_v21 = vadd.f32 %v5614_v26, %v2164_v28  ;;  %3663 = vpow2.f32 %v1959_v16  ;;  %v3650_v2 = vpop.eup %3649  ;;  %v1702_v20 = vmax.f32 %v6279_v7, %v5618_v60 }
 0x2f3   : > { %3665 = vpow2.f32 %v2023_v15  ;;  %v1697_v48 = vmax.f32 %v1696_v27, %v6278_v52  ;;  %v2256_v38 = vmul.f32 %v3650_v2, %v5541_v1  ;;  %v2288_v8 = vmul.f32 %v3650_v2, %v5549_v43  ;;  %v3864_v1 = vld [vmem:[%s4191_s22 + $0x178] sm:$0xff] }
 0x2f4   : > { %v2535_v37 = vadd.f32 %v2534_v3, %v2477_v39  ;;  %v2320_v42 = vmul.f32 %v3650_v2, %v5553_v44  ;;  %v5640_v29 = vpop.eup %3651  ;;  %v2352_v0 = vmul.f32 %v3650_v2, %v5559_v31  ;;  %v2166_v36 = vadd.f32 %v5620_v41, %v2165_v21  ;;  %v3865_v43 = vld [vmem:[%s4191_s22 + $0x278] sm:$0xff]  ;;  %v3867_v2 = vld [vmem:[%s4191_s22 + $0x70] sm:$0xff] }
 0x2f5   : > { %3667 = vpow2.f32 %v2087_v34  ;;  %v1747_v49 = vsub.f32 %v6272_v57, %v1689_v33  ;;  %v2384_v4 = vmul.f32 %v3863_v12, %v2256_v38  ;;  %v2416_v18 = vmul.f32 %v3864_v1, %v2288_v8  ;;  %v3870_v8 = vld [vmem:[%s4191_s22 + $0x370] sm:$0xff]  ;;  %v5689_v12 = vpop.xlane.xlu1 %1491 }
 0x2f6   : > { %2605 = vst [vmem:[%s5222_s6 + $0x60] sm:$0xff] %v2535_v37  ;;  %v2448_v30 = vmul.f32 %v3865_v43, %v2320_v42  ;;  %v1779_v44 = vsub.f32 %v5509_v40, %v1689_v33  ;;  %v2480_v46 = vmul.f32 %v3866_v54, %v2352_v0  ;;  %3669 = vrcp.f32 %v2166_v36 }
 0x2f7   : > { %v5650_v14 = vpop.eup %3653  ;;  %v1811_v31 = vsub.f32 %v6275_v19, %v1689_v33  ;;  %v1843_v62 = vsub.f32 %v5584_v9, %v1689_v33  ;;  %v2542_v57 = vadd.f32 %v2416_v18, %v2384_v4  ;;  %v1893_v35 = vmul.f32 1.442695, %v1747_v49  ;;  %v5668_v19 = vpop.xlane.xlu0 %1485  ;;  %v3868_v33 = vld [vmem:[%s4191_s22 + $0x170] sm:$0xff] }
 0x2f8   : > { %v5655_v51 = vpop.eup %3655  ;;  %v2161_v58 = vadd.f32 %v5650_v14, %v5640_v29  ;;  %v1957_v13 = vmul.f32 1.442695, %v1779_v44  ;;  %v1698_v39 = vmax.f32 %v1697_v48, %v5592_v25  ;;  %v1694_v16 = vmax.f32 %v1693_v63, %v6280_v32  ;;  %v3869_v48 = vld [vmem:[%s4191_s22 + $0x270] sm:$0xff] }
 0x2f9   : > { %v3658_v40 = vpop.eup %3657  ;;  %v2021_v59 = vmul.f32 1.442695, %v1811_v31  ;;  %v2085_v50 = vmul.f32 1.442695, %v1843_v62  ;;  %v2543_v56 = vadd.f32 %v2542_v57, %v2448_v30  ;;  %3671 = vpow2.f32 %v1893_v35 }
 0x2fa   : > { %v5663_v9 = vpop.eup %3659  ;;  %v2255_v28 = vmul.f32 %v3658_v40, %v5566_v61  ;;  %v2287_v15 = vmul.f32 %v3658_v40, %v5575_v5  ;;  %v2319_v34 = vmul.f32 %v3658_v40, %v5586_v55  ;;  %v2351_v27 = vmul.f32 %v3658_v40, %v5589_v22 }
 0x2fb   : > { %v5670_v17 = vpop.eup %3661  ;;  %v2162_v3 = vadd.f32 %v5655_v51, %v2161_v58  ;;  %v1750_v21 = vsub.f32 %v6276_v24, %v1698_v39  ;;  %v2544_v61 = vadd.f32 %v2543_v56, %v2480_v46  ;;  %3673 = vpow2.f32 %v1957_v13  ;;  %v5695_v46 = vpop.xlane.xlu0 %1613  ;;  %v3872_v56 = vld [vmem:[%s4191_s22 + $0x188] sm:$0xff] }
 0x2fc   : > { %v5675_v63 = vpop.eup %3663  ;;  %v2383_v5 = vmul.f32 %v3867_v2, %v2255_v28  ;;  %v2415_v55 = vmul.f32 %v3868_v33, %v2287_v15  ;;  %v2447_v37 = vmul.f32 %v3869_v48, %v2319_v34  ;;  %v2479_v42 = vmul.f32 %v3870_v8, %v2351_v27  ;;  %v3873_v28 = vld [vmem:[%s4191_s22 + $0x288] sm:$0xff]  ;;  %v6281_v33 = vld [vmem:[#allocation24_spill] sm:$0xff] }
 0x2fd   : > { %v5680_v38 = vpop.eup %3665  ;;  %v2163_v22 = vadd.f32 %v5663_v9, %v2162_v3  ;;  %v2170_v0 = vadd.f32 %v5675_v63, %v5670_v17  ;;  %2608 = vst [vmem:[%s5222_s6 + $0x78] sm:$0xff] %v2544_v61  ;;  %3675 = vpow2.f32 %v2021_v59  ;;  %v1782_v36 = vsub.f32 %v5564_v23, %v1698_v39  ;;  %v6282_v48 = vld [vmem:[#allocation28_spill] sm:$0xff] }
 0x2fe   : > { %v2539_v24 = vadd.f32 %v2415_v55, %v2383_v5  ;;  %v1814_v49 = vsub.f32 %v6278_v52, %v1698_v39  ;;  %v1846_v18 = vsub.f32 %v5592_v25, %v1698_v39  ;;  %v1899_v43 = vmul.f32 1.442695, %v1750_v21 }
 0x2ff   : > { %v5691_v4 = vpop.eup %3667  ;;  %3677 = vrcp.f32 %v2163_v22  ;;  %v2171_v1 = vadd.f32 %v5680_v38, %v2170_v0  ;;  %v1963_v44 = vmul.f32 1.442695, %v1782_v36  ;;  %v1695_v62 = vmax.f32 %v1694_v16, %v5638_v6  ;;  %v5716_v21 = vpop.xlane.xlu0 %1489  ;;  %v6284_v36 = vld [vmem:[#allocation26_spill] sm:$0xff] }
 0x300   : > { %v2540_v30 = vadd.f32 %v2539_v24, %v2447_v37  ;;  %3679 = vpow2.f32 %v2085_v50  ;;  %v2027_v54 = vmul.f32 1.442695, %v1814_v49  ;;  %v3670_v23 = vpop.eup %3669  ;;  %v2091_v31 = vmul.f32 1.442695, %v1846_v18  ;;  %v3871_v50 = vld [vmem:[%s4191_s22 + $0x88] sm:$0xff] }
 0x301   : > { %v2172_v52 = vadd.f32 %v5691_v4, %v2171_v1  ;;  %3681 = vpow2.f32 %v1899_v43  ;;  %v2258_v25 = vmul.f32 %v3670_v23, %v5600_v47  ;;  %v2290_v58 = vmul.f32 %v3670_v23, %v5611_v10  ;;  %v5709_v47 = vpop.xlane.xlu1 %1619 }
 0x302   : > { %v2541_v57 = vadd.f32 %v2540_v30, %v2479_v42  ;;  %v2322_v35 = vmul.f32 %v3670_v23, %v5614_v26  ;;  %v2354_v13 = vmul.f32 %v3670_v23, %v5620_v41  ;;  %v1749_v40 = vsub.f32 %v6277_v45, %v1695_v62  ;;  %v3874_v26 = vld [vmem:[%s4191_s22 + $0x388] sm:$0xff]  ;;  %v6283_v42 = vld [vmem:[#allocation30_spill] sm:$0xff] }
 0x303   : > { %3683 = vrcp.f32 %v2172_v52  ;;  %v1781_v59 = vsub.f32 %v5609_v11, %v1695_v62  ;;  %v2386_v39 = vmul.f32 %v3871_v50, %v2258_v25  ;;  %v2418_v16 = vmul.f32 %v3872_v56, %v2290_v58  ;;  %v5711_v10 = vpop.eup %3671  ;;  %v3875_v25 = vld [vmem:[%s4191_s22 + $0x80] sm:$0xff] }
 0x304   : > { %2607 = vst [vmem:[%s5222_s6 + $0x70] sm:$0xff] %v2541_v57  ;;  %v2450_v15 = vmul.f32 %v3873_v28, %v2322_v35  ;;  %3685 = vpow2.f32 %v1963_v44  ;;  %v2482_v34 = vmul.f32 %v3874_v26, %v2354_v13  ;;  %v1813_v41 = vsub.f32 %v6280_v32, %v1695_v62 }
 0x305   : > { %3687 = vpow2.f32 %v2027_v54  ;;  %v1845_v45 = vsub.f32 %v5638_v6, %v1695_v62  ;;  %v2548_v11 = vadd.f32 %v2418_v16, %v2386_v39  ;;  %v1897_v27 = vmul.f32 1.442695, %v1749_v40  ;;  %v5718_v61 = vpop.eup %3673  ;;  %v5741_v23 = vpop.xlane.xlu1 %1495  ;;  %v3878_v40 = vld [vmem:[%s4191_s22 + $0x380] sm:$0xff] }
 0x306   : > { %3689 = vpow2.f32 %v2091_v31  ;;  %v1961_v3 = vmul.f32 1.442695, %v1781_v59  ;;  %v2025_v2 = vmul.f32 1.442695, %v1813_v41  ;;  %v1699_v55 = vmax.f32 %v6281_v33, %v5668_v19 }
 0x307   : > { %v2089_v5 = vmul.f32 1.442695, %v1845_v45  ;;  %v1703_v32 = vmax.f32 %v1702_v20, %v6282_v48  ;;  %v5726_v37 = vpop.eup %3675  ;;  %v2549_v6 = vadd.f32 %v2548_v11, %v2450_v15  ;;  %v2167_v8 = vadd.f32 %v5718_v61, %v5711_v10  ;;  %v6285_v20 = vld [vmem:[#allocation29_spill] sm:$0xff] }
 0x308   : > { %3691 = vpow2.f32 %v1897_v27  ;;  %v1708_v22 = vmax.f32 %v6283_v42, %v5689_v12  ;;  %v1700_v49 = vmax.f32 %v1699_v55, %v6284_v36  ;;  %v1705_v1 = vmax.f32 %v6285_v20, %v5716_v21  ;;  %v3879_v27 = vld [vmem:[%s4191_s22 + $0x98] sm:$0xff] }
 0x309   : > { %v3678_v0 = vpop.eup %3677  ;;  %3693 = vpow2.f32 %v1961_v3  ;;  %v1704_v24 = vmax.f32 %v1703_v32, %v5659_v53  ;;  %v2550_v43 = vadd.f32 %v2549_v6, %v2482_v34  ;;  %v2168_v62 = vadd.f32 %v5726_v37, %v2167_v8  ;;  %v3880_v3 = vld [vmem:[%s4191_s22 + $0x198] sm:$0xff]  ;;  %v5774_v55 = vpop.xlane.xlu1 %1623 }
 0x30a   : > { %v5736_v18 = vpop.eup %3679  ;;  %v2257_v30 = vmul.f32 %v3678_v0, %v5640_v29  ;;  %v2289_v44 = vmul.f32 %v3678_v0, %v5650_v14  ;;  %v2321_v54 = vmul.f32 %v3678_v0, %v5655_v51  ;;  %v2353_v31 = vmul.f32 %v3678_v0, %v5663_v9  ;;  %v3876_v29 = vld [vmem:[%s4191_s22 + $0x180] sm:$0xff] }
 0x30b   : > { %v5743_v52 = vpop.eup %3681  ;;  %3695 = vpow2.f32 %v2025_v2  ;;  %v1752_v57 = vsub.f32 %v6279_v7, %v1704_v24  ;;  %2610 = vst [vmem:[%s5222_s6 + $0x88] sm:$0xff] %v2550_v43  ;;  %v3877_v14 = vld [vmem:[%s4191_s22 + $0x280] sm:$0xff]  ;;  %v2169_v50 = vadd.f32 %v5736_v18, %v2168_v62  ;;  %v1784_v9 = vsub.f32 %v5618_v60, %v1704_v24  ;;  %v3881_v2 = vld [vmem:[%s4191_s22 + $0x298] sm:$0xff]  ;;  %v6286_v62 = vld [vmem:[#allocation32_spill] sm:$0xff] }
 0x30c   : > { %v2385_v58 = vmul.f32 %v3875_v25, %v2257_v30  ;;  %v2417_v35 = vmul.f32 %v3876_v29, %v2289_v44  ;;  %v2449_v13 = vmul.f32 %v3877_v14, %v2321_v54  ;;  %3697 = vpow2.f32 %v2089_v5  ;;  %v5772_v5 = vpop.xlane.xlu0 %1617  ;;  %v6287_v29 = vld [vmem:[#allocation31_spill] sm:$0xff] }
 0x30d   : > { %v3684_v51 = vpop.eup %3683  ;;  %v2481_v59 = vmul.f32 %v3878_v40, %v2353_v31  ;;  %v1816_v39 = vsub.f32 %v6282_v48, %v1704_v24  ;;  %3699 = vrcp.f32 %v2169_v50  ;;  %v1848_v41 = vsub.f32 %v5659_v53, %v1704_v24 }
 0x30e   : > { %v5756_v7 = vpop.eup %3685  ;;  %v2545_v56 = vadd.f32 %v2417_v35, %v2385_v58  ;;  %v2260_v16 = vmul.f32 %v3684_v51, %v5670_v17  ;;  %v2292_v28 = vmul.f32 %v3684_v51, %v5675_v63  ;;  %v2324_v15 = vmul.f32 %v3684_v51, %v5680_v38 }
 0x30f   : > { %v5761_v26 = vpop.eup %3687  ;;  %v2356_v34 = vmul.f32 %v3684_v51, %v5691_v4  ;;  %v2176_v60 = vadd.f32 %v5756_v7, %v5743_v52  ;;  %v3882_v4 = vld [vmem:[%s4191_s22 + $0x398] sm:$0xff]  ;;  %v1903_v6 = vmul.f32 1.442695, %v1752_v57  ;;  %v1967_v53 = vmul.f32 1.442695, %v1784_v9 }
 0x310   : > { %v5767_v45 = vpop.eup %3689  ;;  %v2546_v11 = vadd.f32 %v2545_v56, %v2449_v13  ;;  %v2388_v17 = vmul.f32 %v3879_v27, %v2260_v16  ;;  %v2420_v63 = vmul.f32 %v3880_v3, %v2292_v28  ;;  %v2452_v38 = vmul.f32 %v3881_v2, %v2324_v15  ;;  %v5804_v9 = vpop.xlane.xlu0 %1493  ;;  %v6288_v15 = vld [vmem:[#allocation34_spill] sm:$0xff] }
 0x311   : > { %v2484_v48 = vmul.f32 %v3882_v4, %v2356_v34  ;;  %v2177_v32 = vadd.f32 %v5761_v26, %v2176_v60  ;;  %v2031_v43 = vmul.f32 1.442695, %v1816_v39  ;;  %v2095_v30 = vmul.f32 1.442695, %v1848_v41  ;;  %v6289_v60 = vld [vmem:[#allocation33_spill] sm:$0xff] }
 0x312   : > { %v5778_v8 = vpop.eup %3691  ;;  %v2547_v0 = vadd.f32 %v2546_v11, %v2481_v59  ;;  %v2554_v24 = vadd.f32 %v2420_v63, %v2388_v17  ;;  %3701 = vpow2.f32 %v1903_v6  ;;  %v1701_v31 = vmax.f32 %v1700_v49, %v5695_v46  ;;  %v6290_v11 = vld [vmem:[#allocation38_spill] sm:$0xff] }
 0x313   : > { %v5780_v44 = vpop.eup %3693  ;;  %v2178_v54 = vadd.f32 %v5767_v45, %v2177_v32  ;;  %v1709_v25 = vmax.f32 %v1708_v22, %v6286_v62  ;;  %3703 = vpow2.f32 %v1967_v53  ;;  %v1706_v35 = vmax.f32 %v1705_v1, %v6287_v29  ;;  %v5806_v1 = vpop.xlane.xlu1 %1499  ;;  %v3883_v32 = vld [vmem:[%s4191_s22 + $0x90] sm:$0xff] }
 0x314   : > { %2609 = vst [vmem:[%s5222_s6 + $0x80] sm:$0xff] %v2547_v0  ;;  %v2555_v57 = vadd.f32 %v2554_v24, %v2452_v38  ;;  %v2173_v58 = vadd.f32 %v5780_v44, %v5778_v8  ;;  %v1751_v49 = vsub.f32 %v6281_v33, %v1701_v31  ;;  %v1783_v13 = vsub.f32 %v5668_v19, %v1701_v31  ;;  %v3884_v53 = vld [vmem:[%s4191_s22 + $0x190] sm:$0xff] }
 0x315   : > { %v5795_v14 = vpop.eup %3695  ;;  %3705 = vrcp.f32 %v2178_v54  ;;  %v1815_v22 = vsub.f32 %v6284_v36, %v1701_v31  ;;  %v1847_v50 = vsub.f32 %v5695_v46, %v1701_v31  ;;  %v1710_v16 = vmax.f32 %v1709_v25, %v5709_v47  ;;  %v3885_v24 = vld [vmem:[%s4191_s22 + $0x290] sm:$0xff] }
 0x316   : > { %v5800_v51 = vpop.eup %3697  ;;  %v2556_v40 = vadd.f32 %v2555_v57, %v2484_v48  ;;  %v2174_v59 = vadd.f32 %v5795_v14, %v2173_v58  ;;  %3707 = vpow2.f32 %v2031_v43  ;;  %v1901_v39 = vmul.f32 1.442695, %v1751_v49 }
 0x317   : > { %3709 = vpow2.f32 %v2095_v30  ;;  %v1965_v56 = vmul.f32 1.442695, %v1783_v13  ;;  %v2029_v33 = vmul.f32 1.442695, %v1815_v22  ;;  %v2093_v36 = vmul.f32 1.442695, %v1847_v50  ;;  %v3700_v46 = vpop.eup %3699 }
 0x318   : > { %2612 = vst [vmem:[%s5222_s6 + $0x98] sm:$0xff] %v2556_v40  ;;  %v2175_v19 = vadd.f32 %v5800_v51, %v2174_v59  ;;  %v5812_v28 = vmax.f32 %v1706_v35, %v5772_v5  ;;  %3711 = vpow2.f32 %v1901_v39  ;;  %v1714_v34 = vmax.f32 %v6288_v15, %v5741_v23  ;;  %v5853_v39 = vpop.xlane.xlu0 %1621 }
 0x319   : > { %v1711_v41 = vmax.f32 %v6289_v60, %v5804_v9  ;;  %v1720_v27 = vmax.f32 %v6290_v11, %v5806_v1  ;;  %v2259_v17 = vmul.f32 %v3700_v46, %v5711_v10  ;;  %v2291_v3 = vmul.f32 %v3700_v46, %v5718_v61  ;;  %v3886_v10 = vld [vmem:[%s4191_s22 + $0x390] sm:$0xff] }
 0x31a   : > { %v2323_v63 = vmul.f32 %v3700_v46, %v5726_v37  ;;  %v2355_v2 = vmul.f32 %v3700_v46, %v5736_v18  ;;  %3713 = vrcp.f32 %v2175_v19  ;;  %v1754_v38 = vsub.f32 %v6283_v42, %v1710_v16  ;;  %v3890_v46 = vld [vmem:[%s4191_s22 + $0x3a8] sm:$0xff] }
 0x31b   : > { %v1786_v4 = vsub.f32 %v5689_v12, %v1710_v16  ;;  %v1818_v48 = vsub.f32 %v6286_v62, %v1710_v16  ;;  %v2387_v6 = vmul.f32 %v3883_v32, %v2259_v17  ;;  %v2419_v0 = vmul.f32 %v3884_v53, %v2291_v3  ;;  %v6291_v32 = vld [vmem:[#allocation36_spill] sm:$0xff] }
 0x31c   : > { %v2451_v43 = vmul.f32 %v3885_v24, %v2323_v63  ;;  %v2483_v30 = vmul.f32 %v3886_v10, %v2355_v2  ;;  %v5831_v61 = vpop.eup %3701  ;;  %3715 = vpow2.f32 %v1965_v56  ;;  %v1850_v37 = vsub.f32 %v5709_v47, %v1710_v16 }
 0x31d   : > { %v1907_v18 = vmul.f32 1.442695, %v1754_v38  ;;  %v1971_v54 = vmul.f32 1.442695, %v1786_v4  ;;  %v5834_v42 = vpop.eup %3703  ;;  %v2551_v12 = vadd.f32 %v2419_v0, %v2387_v6  ;;  %3717 = vpow2.f32 %v2029_v33 }
 0x31e   : > { %v2035_v31 = vmul.f32 1.442695, %v1818_v48  ;;  %v1753_v62 = vsub.f32 %v6285_v20, %v5812_v28  ;;  %v2182_v57 = vadd.f32 %v5834_v42, %v5831_v61  ;;  %3719 = vpow2.f32 %v2093_v36  ;;  %v3889_v36 = vld [vmem:[%s4191_s22 + $0x2a8] sm:$0xff] }
 0x31f   : > { %v3706_v25 = vpop.eup %3705  ;;  %v2099_v58 = vmul.f32 1.442695, %v1850_v37  ;;  %v1785_v47 = vsub.f32 %v5716_v21, %v5812_v28  ;;  %v2552_v49 = vadd.f32 %v2551_v12, %v2451_v43  ;;  %3721 = vpow2.f32 %v1907_v18  ;;  %v5880_v37 = vpop.xlane.xlu0 %1497 }
 0x320   : > { %v5842_v35 = vpop.eup %3707  ;;  %v2262_v13 = vmul.f32 %v3706_v25, %v5743_v52  ;;  %v2294_v22 = vmul.f32 %v3706_v25, %v5756_v7  ;;  %v2326_v20 = vmul.f32 %v3706_v25, %v5761_v26  ;;  %v2358_v59 = vmul.f32 %v3706_v25, %v5767_v45  ;;  %v3887_v52 = vld [vmem:[%s4191_s22 + $0xa8] sm:$0xff]  ;;  %v3894_v25 = vld [vmem:[%s4191_s22 + $0x3a0] sm:$0xff] }
 0x321   : > { %v5847_v40 = vpop.eup %3709  ;;  %v2183_v50 = vadd.f32 %v5842_v35, %v2182_v57  ;;  %v1817_v21 = vsub.f32 %v6287_v29, %v5812_v28  ;;  %v2553_v56 = vadd.f32 %v2552_v49, %v2483_v30  ;;  %v3888_v7 = vld [vmem:[%s4191_s22 + $0x1a8] sm:$0xff]  ;;  %3723 = vpow2.f32 %v1971_v54  ;;  %v3892_v54 = vld [vmem:[%s4191_s22 + $0x1a0] sm:$0xff] }
 0x322   : > { %v2390_v33 = vmul.f32 %v3887_v52, %v2262_v13  ;;  %v2422_v19 = vmul.f32 %v3888_v7, %v2294_v22  ;;  %v2454_v26 = vmul.f32 %v3889_v36, %v2326_v20  ;;  %v5858_v16 = vpop.eup %3711  ;;  %v2486_v45 = vmul.f32 %v3890_v46, %v2358_v59  ;;  %v6292_v30 = vld [vmem:[#allocation35_spill] sm:$0xff] }
 0x323   : > { %v2184_v17 = vadd.f32 %v5847_v40, %v2183_v50  ;;  %v1849_v3 = vsub.f32 %v5772_v5, %v5812_v28  ;;  %2611 = vst [vmem:[%s5222_s6 + $0x90] sm:$0xff] %v2553_v56  ;;  %3725 = vpow2.f32 %v2035_v31  ;;  %v1905_v63 = vmul.f32 1.442695, %v1753_v62  ;;  %v3893_v31 = vld [vmem:[%s4191_s22 + $0x2a0] sm:$0xff]  ;;  %v5906_v36 = vpop.xlane.xlu0 %1625 }
 0x324   : > { %v2560_v29 = vadd.f32 %v2422_v19, %v2390_v33  ;;  %v1969_v2 = vmul.f32 1.442695, %v1785_v47  ;;  %v3714_v38 = vpop.eup %3713  ;;  %v2033_v4 = vmul.f32 1.442695, %v1817_v21  ;;  %v1715_v6 = vmax.f32 %v1714_v34, %v6291_v32 }
 0x325   : > { %3727 = vrcp.f32 %v2184_v17  ;;  %v2097_v48 = vmul.f32 1.442695, %v1849_v3  ;;  %v2261_v5 = vmul.f32 %v3714_v38, %v5778_v8  ;;  %v2293_v28 = vmul.f32 %v3714_v38, %v5780_v44 }
 0x326   : > { %v2561_v53 = vadd.f32 %v2560_v29, %v2454_v26  ;;  %v2325_v0 = vmul.f32 %v3714_v38, %v5795_v14  ;;  %v5872_v24 = vpop.eup %3715  ;;  %v2357_v43 = vmul.f32 %v3714_v38, %v5800_v51  ;;  %3729 = vpow2.f32 %v2099_v58  ;;  %v3891_v14 = vld [vmem:[%s4191_s22 + $0xa0] sm:$0xff] }
 0x327   : > { %v1716_v10 = vmax.f32 %v1715_v6, %v5774_v55  ;;  %v1712_v34 = vmax.f32 %v1711_v41, %v6292_v30  ;;  %v5882_v8 = vpop.eup %3717  ;;  %v2389_v18 = vmul.f32 %v3891_v14, %v2261_v5  ;;  %v2421_v12 = vmul.f32 %v3892_v54, %v2293_v28  ;;  %v3895_v5 = vld [vmem:[%s4191_s22 + $0xb8] sm:$0xff] }
 0x328   : > { %v2562_v44 = vadd.f32 %v2561_v53, %v2486_v45  ;;  %v2453_v51 = vmul.f32 %v3893_v31, %v2325_v0  ;;  %v5887_v62 = vpop.eup %3719  ;;  %v2485_v57 = vmul.f32 %v3894_v25, %v2357_v43  ;;  %v2179_v58 = vadd.f32 %v5872_v24, %v5858_v16  ;;  %v6293_v45 = vld [vmem:[#allocation37_spill] sm:$0xff]  ;;  %v6294_v31 = vld [vmem:[#allocation40_spill] sm:$0xff] }
 0x329   : > { %3731 = vpow2.f32 %v1905_v63  ;;  %v1756_v41 = vsub.f32 %v6288_v15, %v1716_v10  ;;  %v2557_v47 = vadd.f32 %v2421_v12, %v2389_v18  ;;  %v1788_v49 = vsub.f32 %v5741_v23, %v1716_v10  ;;  %v5896_v22 = vpop.eup %3721  ;;  %v5900_v15 = vpop.xlane.xlu1 %1627  ;;  %v3896_v0 = vld [vmem:[%s4191_s22 + $0x1b8] sm:$0xff] }
 0x32a   : > { %2614 = vst [vmem:[%s5222_s6 + $0xa8] sm:$0xff] %v2562_v44  ;;  %3733 = vpow2.f32 %v1969_v2  ;;  %v1820_v13 = vsub.f32 %v6291_v32, %v1716_v10  ;;  %v2180_v20 = vadd.f32 %v5882_v8, %v2179_v58  ;;  %v1852_v59 = vsub.f32 %v5774_v55, %v1716_v10  ;;  %v3897_v10 = vld [vmem:[%s4191_s22 + $0x2b8] sm:$0xff]  ;;  %v5935_v18 = vpop.xlane.xlu0 %1501  ;;  %v6295_v58 = vld [vmem:[#allocation39_spill] sm:$0xff] }
 0x32b   : > { %3735 = vpow2.f32 %v2033_v4  ;;  %v1911_v50 = vmul.f32 1.442695, %v1756_v41  ;;  %v2558_v21 = vadd.f32 %v2557_v47, %v2453_v51  ;;  %v1975_v56 = vmul.f32 1.442695, %v1788_v49  ;;  %v5902_v33 = vpop.eup %3723  ;;  %v6296_v47 = vld [vmem:[#allocation42_spill] sm:$0xff] }
 0x32c   : > { %3737 = vpow2.f32 %v2097_v48  ;;  %v2039_v52 = vmul.f32 1.442695, %v1820_v13  ;;  %v2181_v23 = vadd.f32 %v5887_v62, %v2180_v20  ;;  %v2103_v7 = vmul.f32 1.442695, %v1852_v59 }
 0x32d   : > { %3739 = vpow2.f32 %v1911_v50  ;;  %v1713_v19 = vmax.f32 %v1712_v34, %v5853_v39  ;;  %v5908_v26 = vpop.eup %3725  ;;  %v2559_v55 = vadd.f32 %v2558_v21, %v2485_v57  ;;  %v2188_v46 = vadd.f32 %v5902_v33, %v5896_v22  ;;  %v5930_v34 = vpop.xlane.xlu1 %1503  ;;  %v6297_v50 = vld [vmem:[#allocation41_spill] sm:$0xff] }
 0x32e   : > { %3741 = vpow2.f32 %v1975_v56  ;;  %v1717_v17 = vmax.f32 %v6293_v45, %v5880_v37  ;;  %v1721_v51 = vmax.f32 %v1720_v27, %v6294_v31  ;;  %v1726_v49 = vmax.f32 %v6296_v47, %v5930_v34 }
 0x32f   : > { %v3728_v3 = vpop.eup %3727  ;;  %3743 = vrcp.f32 %v2181_v23  ;;  %v1755_v29 = vsub.f32 %v6289_v60, %v1713_v19  ;;  %v1787_v63 = vsub.f32 %v5804_v9, %v1713_v19  ;;  %v1819_v2 = vsub.f32 %v6292_v30, %v1713_v19  ;;  %2613 = vst [vmem:[%s5222_s6 + $0xa0] sm:$0xff] %v2559_v55  ;;  %v3898_v30 = vld [vmem:[%s4191_s22 + $0x3b8] sm:$0xff]  ;;  %v6298_v23 = vld [vmem:[#allocation44_spill] sm:$0xff] }
 0x330   : > { %v2264_v38 = vmul.f32 %v3728_v3, %v5831_v61  ;;  %v2296_v4 = vmul.f32 %v3728_v3, %v5834_v42  ;;  %v2328_v48 = vmul.f32 %v3728_v3, %v5842_v35  ;;  %v2360_v32 = vmul.f32 %v3728_v3, %v5847_v40  ;;  %v5922_v6 = vpop.eup %3729 }
 0x331   : > { %v2189_v53 = vadd.f32 %v5908_v26, %v2188_v46  ;;  %3745 = vpow2.f32 %v2039_v52  ;;  %v1851_v9 = vsub.f32 %v5853_v39, %v1713_v19  ;;  %v1909_v60 = vmul.f32 1.442695, %v1755_v29 }
 0x332   : > { %v2392_v28 = vmul.f32 %v3895_v5, %v2264_v38  ;;  %v2424_v43 = vmul.f32 %v3896_v0, %v2296_v4  ;;  %v2456_v61 = vmul.f32 %v3897_v10, %v2328_v48  ;;  %v2488_v42 = vmul.f32 %v3898_v30, %v2360_v32  ;;  %v3899_v5 = vld [vmem:[%s4191_s22 + $0xb0] sm:$0xff] }
 0x333   : > { %v5932_v35 = vpop.eup %3731  ;;  %v2190_v40 = vadd.f32 %v5922_v6, %v2189_v53  ;;  %3747 = vpow2.f32 %v2103_v7  ;;  %v1973_v44 = vmul.f32 1.442695, %v1787_v63  ;;  %v2037_v14 = vmul.f32 1.442695, %v1819_v2  ;;  %v3900_v0 = vld [vmem:[%s4191_s22 + $0x1b0] sm:$0xff] }
 0x334   : > { %v5937_v39 = vpop.eup %3733  ;;  %v2566_v54 = vadd.f32 %v2424_v43, %v2392_v28  ;;  %3749 = vpow2.f32 %v1909_v60  ;;  %v2101_v12 = vmul.f32 1.442695, %v1851_v9  ;;  %v1718_v41 = vmax.f32 %v1717_v17, %v6295_v58  ;;  %v3901_v43 = vld [vmem:[%s4191_s22 + $0x2b0] sm:$0xff] }
 0x335   : > { %v5943_v25 = vpop.eup %3735  ;;  %3751 = vrcp.f32 %v2190_v40  ;;  %v2185_v57 = vadd.f32 %v5937_v39, %v5932_v35  ;;  %v1722_v59 = vmax.f32 %v1721_v51, %v5900_v15  ;;  %v1723_v27 = vmax.f32 %v6297_v50, %v5935_v18 }
 0x336   : > { %v5950_v13 = vpop.eup %3737  ;;  %v2567_v20 = vadd.f32 %v2566_v54, %v2456_v61  ;;  %3753 = vpow2.f32 %v1973_v44  ;;  %v5959_v52 = vmax.f32 %v1718_v41, %v5906_v36  ;;  %v5962_v7 = vmax.f32 %v1726_v49, %v6298_v23  ;;  %v3902_v61 = vld [vmem:[%s4191_s22 + $0x3b0] sm:$0xff] }
 0x337   : > { %v5955_v21 = vpop.eup %3739  ;;  %v2186_v56 = vadd.f32 %v5943_v25, %v2185_v57  ;;  %3755 = vpow2.f32 %v2037_v14  ;;  %v1758_v46 = vsub.f32 %v6290_v11, %v1722_v59  ;;  %v1790_v17 = vsub.f32 %v5806_v1, %v1722_v59 }
 0x338   : > { %v5964_v19 = vpop.eup %3741  ;;  %v2568_v55 = vadd.f32 %v2567_v20, %v2488_v42  ;;  %3757 = vpow2.f32 %v2101_v12  ;;  %v1822_v2 = vsub.f32 %v6294_v31, %v1722_v59  ;;  %v1854_v38 = vsub.f32 %v5900_v15, %v1722_v59 }
 0x339   : > { %v3744_v3 = vpop.eup %3743  ;;  %v2187_v29 = vadd.f32 %v5950_v13, %v2186_v56  ;;  %v2194_v63 = vadd.f32 %v5964_v19, %v5955_v21  ;;  %v1915_v53 = vmul.f32 1.442695, %v1758_v46  ;;  %v1979_v9 = vmul.f32 1.442695, %v1790_v17  ;;  %v6008_v56 = vpop.xlane.xlu1 %1631  ;;  %v3904_v46 = vld [vmem:[%s4191_s22 + $0x1c8] sm:$0xff] }
 0x33a   : > { %2616 = vst [vmem:[%s5222_s6 + $0xb8] sm:$0xff] %v2568_v55  ;;  %v2263_v4 = vmul.f32 %v3744_v3, %v5858_v16  ;;  %v2295_v11 = vmul.f32 %v3744_v3, %v5872_v24  ;;  %v2327_v1 = vmul.f32 %v3744_v3, %v5882_v8  ;;  %v2359_v48 = vmul.f32 %v3744_v3, %v5887_v62  ;;  %v3903_v55 = vld [vmem:[%s4191_s22 + $0xc8] sm:$0xff] }
 0x33b   : > { %v5978_v32 = vpop.eup %3745  ;;  %3759 = vrcp.f32 %v2187_v29  ;;  %v2043_v60 = vmul.f32 1.442695, %v1822_v2  ;;  %v2107_v8 = vmul.f32 1.442695, %v1854_v38  ;;  %v1757_v62 = vsub.f32 %v6293_v45, %v5959_v52  ;;  %v3906_v29 = vld [vmem:[%s4191_s22 + $0x3c8] sm:$0xff] }
 0x33c   : > { %v2391_v28 = vmul.f32 %v3899_v5, %v2263_v4  ;;  %v2423_v15 = vmul.f32 %v3900_v0, %v2295_v11  ;;  %v2455_v10 = vmul.f32 %v3901_v43, %v2327_v1  ;;  %v2487_v16 = vmul.f32 %v3902_v61, %v2359_v48 }
 0x33d   : > { %v5984_v30 = vpop.eup %3747  ;;  %v2195_v24 = vadd.f32 %v5978_v32, %v2194_v63  ;;  %3761 = vpow2.f32 %v1915_v53  ;;  %v1789_v44 = vsub.f32 %v5880_v37, %v5959_v52  ;;  %v1821_v14 = vsub.f32 %v6295_v58, %v5959_v52  ;;  %v6299_v53 = vld [vmem:[#allocation43_spill] sm:$0xff] }
 0x33e   : > { %v5989_v42 = vpop.eup %3749  ;;  %v2563_v40 = vadd.f32 %v2423_v15, %v2391_v28  ;;  %3763 = vpow2.f32 %v1979_v9  ;;  %v1853_v31 = vsub.f32 %v5906_v36, %v5959_v52  ;;  %v1913_v51 = vmul.f32 1.442695, %v1757_v62  ;;  %v6038_v62 = vpop.xlane.xlu0 %1629 }
 0x33f   : > { %v3752_v54 = vpop.eup %3751  ;;  %v2196_v12 = vadd.f32 %v5984_v30, %v2195_v24  ;;  %3765 = vpow2.f32 %v2043_v60  ;;  %v1977_v59 = vmul.f32 1.442695, %v1789_v44  ;;  %v2041_v38 = vmul.f32 1.442695, %v1821_v14  ;;  %v3908_v24 = vld [vmem:[%s4191_s22 + $0x1c0] sm:$0xff] }
 0x340   : > { %v5998_v45 = vpop.eup %3753  ;;  %v2564_v57 = vadd.f32 %v2563_v40, %v2455_v10  ;;  %v2266_v41 = vmul.f32 %v3752_v54, %v5896_v22  ;;  %v2298_v37 = vmul.f32 %v3752_v54, %v5902_v33  ;;  %v2330_v58 = vmul.f32 %v3752_v54, %v5908_v26  ;;  %v3905_v26 = vld [vmem:[%s4191_s22 + $0x2c8] sm:$0xff] }
 0x341   : > { %v6003_v49 = vpop.eup %3755  ;;  %v2362_v20 = vmul.f32 %v3752_v54, %v5922_v6  ;;  %3767 = vrcp.f32 %v2196_v12  ;;  %v2191_v36 = vadd.f32 %v5998_v45, %v5989_v42  ;;  %v1728_v4 = vmax.f32 %v5962_v7, %v6008_v56 }
 0x342   : > { %v6010_v52 = vpop.eup %3757  ;;  %v2565_v22 = vadd.f32 %v2564_v57, %v2487_v16  ;;  %v2394_v33 = vmul.f32 %v3903_v55, %v2266_v41  ;;  %v2426_v17 = vmul.f32 %v3904_v46, %v2298_v37  ;;  %v2458_v3 = vmul.f32 %v3905_v26, %v2330_v58  ;;  %v3907_v16 = vld [vmem:[%s4191_s22 + $0xc0] sm:$0xff] }
 0x343   : > { %v2490_v63 = vmul.f32 %v3906_v29, %v2362_v20  ;;  %v2192_v6 = vadd.f32 %v6003_v49, %v2191_v36  ;;  %3769 = vpow2.f32 %v2107_v8  ;;  %v2105_v48 = vmul.f32 1.442695, %v1853_v31  ;;  %v3909_v8 = vld [vmem:[%s4191_s22 + $0x2c0] sm:$0xff] }
 0x344   : > { %2615 = vst [vmem:[%s5222_s6 + $0xb0] sm:$0xff] %v2565_v22  ;;  %v2572_v2 = vadd.f32 %v2426_v17, %v2394_v33  ;;  %3771 = vpow2.f32 %v1913_v51  ;;  %v1724_v9 = vmax.f32 %v1723_v27, %v6299_v53  ;;  %v1760_v43 = vsub.f32 %v6296_v47, %v1728_v4  ;;  %v3911_v17 = vld [vmem:[%s4191_s22 + $0xd8] sm:$0xff] }
 0x345   : > { %v3760_v11 = vpop.eup %3759  ;;  %v2193_v1 = vadd.f32 %v6010_v52, %v2192_v6  ;;  %3773 = vpow2.f32 %v1977_v59  ;;  %v1792_v10 = vsub.f32 %v5930_v34, %v1728_v4  ;;  %v1824_v34 = vsub.f32 %v6298_v23, %v1728_v4 }
 0x346   : > { %v2573_v60 = vadd.f32 %v2572_v2, %v2458_v3  ;;  %v2265_v5 = vmul.f32 %v3760_v11, %v5932_v35  ;;  %v2297_v28 = vmul.f32 %v3760_v11, %v5937_v39  ;;  %v2329_v7 = vmul.f32 %v3760_v11, %v5943_v25 }
 0x347   : > { %v6028_v0 = vpop.eup %3761  ;;  %v2361_v15 = vmul.f32 %v3760_v11, %v5950_v13  ;;  %3775 = vrcp.f32 %v2193_v1  ;;  %v3910_v13 = vld [vmem:[%s4191_s22 + $0x3c0] sm:$0xff]  ;;  %v1856_v54 = vsub.f32 %v6008_v56, %v1728_v4  ;;  %v1919_v12 = vmul.f32 1.442695, %v1760_v43 }
 0x348   : > { %v6033_v27 = vpop.eup %3763  ;;  %v2574_v61 = vadd.f32 %v2573_v60, %v2490_v63  ;;  %v2393_v35 = vmul.f32 %v3907_v16, %v2265_v5  ;;  %v2425_v39 = vmul.f32 %v3908_v24, %v2297_v28  ;;  %v2457_v25 = vmul.f32 %v3909_v8, %v2329_v7  ;;  %v3916_v16 = vld [vmem:[%s4191_s22 + $0x1d0] sm:$0xff] }
 0x349   : > { %v6040_v40 = vpop.eup %3765  ;;  %v2489_v44 = vmul.f32 %v3910_v13, %v2361_v15  ;;  %v2200_v47 = vadd.f32 %v6033_v27, %v6028_v0  ;;  %3777 = vpow2.f32 %v2041_v38  ;;  %v1983_v57 = vmul.f32 1.442695, %v1792_v10  ;;  %v3915_v10 = vld [vmem:[%s4191_s22 + $0xd0] sm:$0xff] }
 0x34a   : > { %2618 = vst [vmem:[%s5222_s6 + $0xc8] sm:$0xff] %v2574_v61  ;;  %v2569_v14 = vadd.f32 %v2425_v39, %v2393_v35  ;;  %3779 = vpow2.f32 %v2105_v48  ;;  %v2047_v41 = vmul.f32 1.442695, %v1824_v34  ;;  %v1725_v37 = vmax.f32 %v1724_v9, %v6038_v62 }
 0x34b   : > { %v3768_v31 = vpop.eup %3767  ;;  %v2201_v51 = vadd.f32 %v6040_v40, %v2200_v47  ;;  %3781 = vpow2.f32 %v1919_v12  ;;  %v2111_v22 = vmul.f32 1.442695, %v1856_v54 }
 0x34c   : > { %v2570_v58 = vadd.f32 %v2569_v14, %v2457_v25  ;;  %v2268_v20 = vmul.f32 %v3768_v31, %v5955_v21  ;;  %v2300_v23 = vmul.f32 %v3768_v31, %v5964_v19  ;;  %v2332_v36 = vmul.f32 %v3768_v31, %v5978_v32  ;;  %v3912_v21 = vld [vmem:[%s4191_s22 + $0x1d8] sm:$0xff] }
 0x34d   : > { %v6053_v59 = vpop.eup %3769  ;;  %v2364_v56 = vmul.f32 %v3768_v31, %v5984_v30  ;;  %v1759_v55 = vsub.f32 %v6297_v50, %v1725_v37  ;;  %v3913_v19 = vld [vmem:[%s4191_s22 + $0x2d8] sm:$0xff]  ;;  %3783 = vpow2.f32 %v1983_v57  ;;  %v1791_v2 = vsub.f32 %v5935_v18, %v1725_v37 }
 0x34e   : > { %v6057_v33 = vpop.eup %3771  ;;  %v2571_v46 = vadd.f32 %v2570_v58, %v2489_v44  ;;  %v2396_v26 = vmul.f32 %v3911_v17, %v2268_v20  ;;  %v2428_v3 = vmul.f32 %v3912_v21, %v2300_v23  ;;  %v2460_v29 = vmul.f32 %v3913_v19, %v2332_v36  ;;  %v3914_v32 = vld [vmem:[%s4191_s22 + $0x3d8] sm:$0xff]  ;;  %v3919_v20 = vld [vmem:[%s4191_s22 + $0xe8] sm:$0xff] }
 0x34f   : > { %v6062_v63 = vpop.eup %3773  ;;  %v2492_v6 = vmul.f32 %v3914_v32, %v2364_v56  ;;  %v2202_v30 = vadd.f32 %v6053_v59, %v2201_v51  ;;  %3785 = vpow2.f32 %v2047_v41  ;;  %v1823_v4 = vsub.f32 %v6299_v53, %v1725_v37  ;;  %v3920_v36 = vld [vmem:[%s4191_s22 + $0x1e8] sm:$0xff] }
 0x350   : > { %2617 = vst [vmem:[%s5222_s6 + $0xc0] sm:$0xff] %v2571_v46  ;;  %v2578_v50 = vadd.f32 %v2428_v3, %v2396_v26  ;;  %v2197_v38 = vadd.f32 %v6062_v63, %v6057_v33  ;;  %v1855_v1 = vsub.f32 %v6038_v62, %v1725_v37  ;;  %v1917_v48 = vmul.f32 1.442695, %v1759_v55  ;;  %v3918_v62 = vld [vmem:[%s4191_s22 + $0x3d0] sm:$0xff]  ;;  %v3921_v17 = vld [vmem:[%s4191_s22 + $0x2e8] sm:$0xff] }
 0x351   : > { %v3776_v11 = vpop.eup %3775  ;;  %3787 = vrcp.f32 %v2202_v30  ;;  %v1981_v9 = vmul.f32 1.442695, %v1791_v2  ;;  %v2045_v24 = vmul.f32 1.442695, %v1823_v4  ;;  %v3922_v21 = vld [vmem:[%s4191_s22 + $0x3e8] sm:$0xff] }
 0x352   : > { %v2579_v60 = vadd.f32 %v2578_v50, %v2460_v29  ;;  %v2267_v18 = vmul.f32 %v3776_v11, %v5989_v42  ;;  %v2299_v5 = vmul.f32 %v3776_v11, %v5998_v45  ;;  %v2331_v28 = vmul.f32 %v3776_v11, %v6003_v49  ;;  %v3917_v42 = vld [vmem:[%s4191_s22 + $0x2d0] sm:$0xff] }
 0x353   : > { %v3778_v7 = vpop.eup %3777  ;;  %v2363_v15 = vmul.f32 %v3776_v11, %v6010_v52  ;;  %3789 = vpow2.f32 %v2111_v22  ;;  %v2109_v49 = vmul.f32 1.442695, %v1855_v1  ;;  %v3923_v11 = vld [vmem:[%s4191_s22 + $0xe0] sm:$0xff] }
 0x354   : > { %v3780_v53 = vpop.eup %3779  ;;  %v2580_v43 = vadd.f32 %v2579_v60, %v2492_v6  ;;  %v2395_v61 = vmul.f32 %v3915_v10, %v2267_v18  ;;  %v2427_v35 = vmul.f32 %v3916_v16, %v2299_v5  ;;  %v2198_v39 = vadd.f32 %v3778_v7, %v2197_v38  ;;  %v3925_v60 = vld [vmem:[%s4191_s22 + $0x2e0] sm:$0xff]  ;;  %v3927_v16 = vld [vmem:[%s4191_s22 + $0xf8] sm:$0xff] }
 0x355   : > { %3791 = vpow2.f32 %v1917_v48  ;;  %v2459_v8 = vmul.f32 %v3917_v42, %v2331_v28  ;;  %v3782_v25 = vpop.eup %3781  ;;  %v2491_v13 = vmul.f32 %v3918_v62, %v2363_v15  ;;  %v3924_v48 = vld [vmem:[%s4191_s22 + $0x1e0] sm:$0xff]  ;;  %v3929_v42 = vld [vmem:[%s4191_s22 + $0x2f8] sm:$0xff] }
 0x356   : > { %2620 = vst [vmem:[%s5222_s6 + $0xd8] sm:$0xff] %v2580_v43  ;;  %v2575_v45 = vadd.f32 %v2427_v35, %v2395_v61  ;;  %3793 = vpow2.f32 %v1981_v9  ;;  %v2199_v52 = vadd.f32 %v3780_v53, %v2198_v39  ;;  %v3926_v28 = vld [vmem:[%s4191_s22 + $0x3e0] sm:$0xff] }
 0x357   : > { %3795 = vpow2.f32 %v2045_v24  ;;  %v3784_v47 = vpop.eup %3783  ;;  %v3928_v24 = vld [vmem:[%s4191_s22 + $0x1f8] sm:$0xff] }
 0x358   : > { %v2576_v44 = vadd.f32 %v2575_v45, %v2459_v8  ;;  %3797 = vrcp.f32 %v2199_v52  ;;  %v2206_v54 = vadd.f32 %v3784_v47, %v3782_v25  ;;  %v3930_v52 = vld [vmem:[%s4191_s22 + $0x3f8] sm:$0xff] }
 0x359   : > { %v3786_v34 = vpop.eup %3785  ;;  %3799 = vpow2.f32 %v2109_v49 }
 0x35a   : > { %v2577_v14 = vadd.f32 %v2576_v44, %v2491_v13  ;;  %v2207_v37 = vadd.f32 %v3786_v34, %v2206_v54  ;;  %v3931_v54 = vld [vmem:[%s4191_s22 + $0xf0] sm:$0xff] }
 0x35b   : > { %v3788_v12 = vpop.eup %3787 }
 0x35c   : > { %2619 = vst [vmem:[%s5222_s6 + $0xd0] sm:$0xff] %v2577_v14  ;;  %v2270_v31 = vmul.f32 %v3788_v12, %v6028_v0  ;;  %v2302_v51 = vmul.f32 %v3788_v12, %v6033_v27  ;;  %v2334_v57 = vmul.f32 %v3788_v12, %v6040_v40  ;;  %v2366_v58 = vmul.f32 %v3788_v12, %v6053_v59 }
 0x35d   : > { %v3790_v41 = vpop.eup %3789 }
 0x35e   : > { %v2398_v23 = vmul.f32 %v3919_v20, %v2270_v31  ;;  %v2430_v56 = vmul.f32 %v3920_v36, %v2302_v51  ;;  %v2208_v55 = vadd.f32 %v3790_v41, %v2207_v37  ;;  %v2462_v26 = vmul.f32 %v3921_v17, %v2334_v57  ;;  %v3932_v31 = vld [vmem:[%s4191_s22 + $0x1f0] sm:$0xff] }
 0x35f   : > { %v3792_v22 = vpop.eup %3791  ;;  %v2494_v3 = vmul.f32 %v3922_v21, %v2366_v58  ;;  %v3933_v57 = vld [vmem:[%s4191_s22 + $0x2f0] sm:$0xff] }
 0x360   : > { %v3794_v46 = vpop.eup %3793  ;;  %v2584_v0 = vadd.f32 %v2430_v56, %v2398_v23  ;;  %3801 = vrcp.f32 %v2208_v55  ;;  %v3934_v58 = vld [vmem:[%s4191_s22 + $0x3f0] sm:$0xff]  ;;  %s3967_s22 = sshll.u32 %s4044_s19, 4  ;;  %s3968_s22 = int_to_ptr.vmem [resolvable:$false] %s3967_s22 }
 0x361   : > { %v2203_v27 = vadd.f32 %v3794_v46, %v3792_v22  ;;  %v3796_v40 = vpop.eup %3795  ;;  %s3969_s29 = scalar_lea.vmem %s3968_s22, 8192  ;;  %p3970_p8 = scmp.lt.s32.totalorder %s6114_s10, %s3968_s22 }
 0x362   : > { %v2585_v19 = vadd.f32 %v2584_v0, %v2462_v26  ;;  %v3798_v59 = vpop.eup %3797  ;;  %p3971_p9 = scmp.lt.s32.totalorder %s3969_s29, %s3963_s26 }
 0x363   : > { %v2204_v29 = vadd.f32 %v3796_v40, %v2203_v27  ;;  %v3800_v32 = vpop.eup %3799  ;;  %v2269_v30 = vmul.f32 %v3798_v59, %v6057_v33  ;;  %v2301_v2 = vmul.f32 %v3798_v59, %v6062_v63  ;;  %v2333_v50 = vmul.f32 %v3798_v59, %v3778_v7 }
 0x364   : > { %v2586_v6 = vadd.f32 %v2585_v19, %v2494_v3  ;;  %v2365_v4 = vmul.f32 %v3798_v59, %v3780_v53  ;;  %p3972_p10 = por %p3971_p9, %p3970_p8 }
 0x365   : > { %v2205_v38 = vadd.f32 %v3800_v32, %v2204_v29  ;;  %v2397_v1 = vmul.f32 %v3923_v11, %v2269_v30  ;;  %v2429_v9 = vmul.f32 %v3924_v48, %v2301_v2  ;;  %v2461_v18 = vmul.f32 %v3925_v60, %v2333_v50 }
 0x366   : > { %2622 = vst [vmem:[%s5222_s6 + $0xe8] sm:$0xff] %v2586_v6  ;;  %v2493_v33 = vmul.f32 %v3926_v28, %v2365_v4  ;;  %p3973_p1 = pnand %p3972_p10, %p3966_p7 }
 0x367   : > { %3803 = vrcp.f32 %v2205_v38  ;;  %v2581_v5 = vadd.f32 %v2429_v9, %v2397_v1 }
 0x369   : > { %v2582_v15 = vadd.f32 %v2581_v5, %v2461_v18 }
 0x36a   : > { %v3802_v63 = vpop.eup %3801 }
 0x36b   : > { %v2583_v7 = vadd.f32 %v2582_v15, %v2493_v33  ;;  %v2272_v43 = vmul.f32 %v3802_v63, %v3782_v25  ;;  %v2304_v53 = vmul.f32 %v3802_v63, %v3784_v47  ;;  %v2336_v10 = vmul.f32 %v3802_v63, %v3786_v34 }
 0x36c   : > { %v2368_v61 = vmul.f32 %v3802_v63, %v3790_v41 }
 0x36d   : > { %2621 = vst [vmem:[%s5222_s6 + $0xe0] sm:$0xff] %v2583_v7  ;;  %v2400_v35 = vmul.f32 %v3927_v16, %v2272_v43  ;;  %v2432_v39 = vmul.f32 %v3928_v24, %v2304_v53  ;;  %v2464_v8 = vmul.f32 %v3929_v42, %v2336_v10 }
 0x36e   : > { %v2496_v62 = vmul.f32 %v3930_v52, %v2368_v61 }
 0x36f   : > { %v2590_v45 = vadd.f32 %v2432_v39, %v2400_v35 }
 0x371   : > { %v3804_v49 = vpop.eup %3803  ;;  %v2591_v25 = vadd.f32 %v2590_v45, %v2464_v8 }
 0x372   : > { %v2271_v13 = vmul.f32 %v3804_v49, %v3792_v22  ;;  %v2303_v44 = vmul.f32 %v3804_v49, %v3794_v46  ;;  %v2335_v47 = vmul.f32 %v3804_v49, %v3796_v40  ;;  %v2367_v14 = vmul.f32 %v3804_v49, %v3800_v32 }
 0x373   : > { %v2592_v34 = vadd.f32 %v2591_v25, %v2496_v62 }
 0x374   : > { %v2399_v12 = vmul.f32 %v3931_v54, %v2271_v13  ;;  %v2431_v51 = vmul.f32 %v3932_v31, %v2303_v44  ;;  %v2463_v41 = vmul.f32 %v3933_v57, %v2335_v47  ;;  %v2495_v20 = vmul.f32 %v3934_v58, %v2367_v14 }
 0x375   : > { %2624 = vst [vmem:[%s5222_s6 + $0xf8] sm:$0xff] %v2592_v34 }
 0x376   : > { %v2587_v37 = vadd.f32 %v2431_v51, %v2399_v12 }
 0x378   : > { %v2588_v23 = vadd.f32 %v2587_v37, %v2463_v41 }
 0x37a   : > { %v2589_v36 = vadd.f32 %v2588_v23, %v2495_v20 }
 0x37c   : > { %2623 = vst [vmem:[%s5222_s6 + $0xf0] sm:$0xff] %v2589_v36 }
 0x37d   : > { %3976 = shalt.err (!%p3973_p1)
}
 0x37e   : > { %s3977_s7 = scalar_lea.hbm %s6112_s14, 4096  ;;  %s3981_s23 = scalar_lea.hbm %s6163_s4, 8192 }
 0x37f   : > { %p3978_p4 = scmp.ne.s32.totalorder %s6112_s14, %s3977_s7  ;;  %p3982_p11 = scmp.lt.u32.totalorder %s6112_s14, %s6163_s4 }
 0x380   : > { %p3983_p12 = scmp.lt.u32.totalorder %s3981_s23, %s3977_s7  ;;  %p3985_p3 = scmp.lt.u32.totalorder %s3977_s7, %s6112_s14 }
 0x381   : > { %p3979_p5 = pnand %p3978_p4, %p6300_p2 }
 0x382   : > { %p3984_p13 = por %p3983_p12, %p3982_p11 }
 0x383   : > { %p3980_p6 = pneg %p3979_p5 }
 0x384   : > { %p3986_p7 = por %p3985_p3, %p3984_p13 }
 0x386   : > { %p3987_p8 = pnand %p3986_p7, %p3980_p6 }
 0x388   : > { %3990 = shalt.err (!%p3987_p8)
}
 0x389   : > { %s4045_s6 = smov 128   ;;  %s4046_s9 = smov 8  }
 0x38a   : > { %3173 = dma.vmem_to_hbm [thread:$0]  (%p6300_p2), %s6114_s10, 4096, %s6112_s14, %s2626_s25, %s4045_s6, %s4045_s6, %s4046_s9  }
 0x38b PF: > { %s2654_s11 = sand.u32 1, %s4021_s15   ;;  %p6301_p9 = scmp.ne.s32.totalorder %s6203_s28, 0 }
 0x38c   : > { %s2655_s20 = scalar_lea.sflag [#allocation4], %s2654_s11 }
 0x38d   : > { %p3180_p10 = pnand %p2725_p0, %p6301_p9 }
 0x38f   : > { %4016 = dma.done.wait (!%p3180_p10), %s2655_s20, 4096  }
 0x390   : > { %4018 = vsyncadd (!%p3180_p10), %s2655_s20, 4294963200  ;;  %p18_p1 = scmp.ge.s32.totalorder %s4097_s21, 4   ;;  %s6302_s15 = smov %s4025_s16 }
 0x391   : > { %s6303_s16 = smov %s4029_s17  ;;  %s6304_s17 = smov %s4109_s24 }
 0x392   : > { %s6305_s18 = smov %s4097_s21  ;;  %20 = sbr.rel (!%p18_p1) target bundleno = 6 (0x6), region = 90 }
 0x399   :  { %2660 = vsyncpa [#allocation3], 1 }
 0x39a   :  { %2662 = vsyncpa [#allocation3 + $0x1], 1 }
 0x39b   :  { %2663 = vsyncpa [#allocation6], 1 }
 0x39c   :  { %2664 = vsyncpa [#allocation4], 1 }
 0x39d   :  { %2666 = vsyncpa [#allocation4 + $0x1], 1 }

</bundles_post_ra>
